<compile_context>
chip_gen: v7x
topology: tpu7x:2x2x1
jax: 0.10.0
libtpu: 0.0.40
codegen_flags: <defaults>
</compile_context>

<pallas_src>
import functools
import math

import jax
import jax.numpy as jnp
from jax.experimental import pallas as pl
from jax.experimental.pallas import tpu as pltpu

_SQRT_HALF = 0.7071067811865476          # 1/sqrt(2) for exact erf-gelu
_INV_SQRT2 = 1.0 / math.sqrt(2.0)
_LN_EPS = 1e-5


# --------------------------------------------------------------------------- in-kernel helpers

def _layernorm_cm(y, g, b, eps):
    """LayerNorm over the channel axis of a channel-major (C, T) slab; g, b are (C, 1), f32."""
    mu = jnp.mean(y, axis=0, keepdims=True)
    var = jnp.mean(jnp.square(y - mu), axis=0, keepdims=True)
    return (y - mu) * jax.lax.rsqrt(var + eps) * g + b


def _gelu_exact(x):
    return 0.5 * x * (1.0 + jax.lax.erf(x * _SQRT_HALF))


# --------------------------------------------------------------------------- fused encoder layer

def _encoder_layer_kernel(x_ref, w_in_ref, b_in_ref, w_out_ref, b_out_ref,
                          ln1_g_ref, ln1_b_ref, w_ff1_ref, b_ff1_ref,
                          w_ff2_ref, b_ff2_ref, ln2_g_ref, ln2_b_ref,
                          o_ref, qkv_ref, ctx_ref, *, n_seq, S, nheads, eps):
    """Post-norm TransformerEncoderLayer (eval mode) on one channel-major (C, n_seq*S) slab."""
    C = o_ref.shape[1]
    dh = C // nheads
    bf16 = jnp.bfloat16

    xs = x_ref[0].astype(jnp.float32)                       # (C, T), T = n_seq*S

    # ---- hoisted, batched QKV projection over ALL sequences (lane dim = n_seq*S).
    #      1/sqrt(dh) is pre-folded into the Q rows of w_in/b_in (wrapper-side).
    qkv_ref[...] = jnp.dot(w_in_ref[...], xs.astype(bf16),
                           preferred_element_type=jnp.float32) + b_in_ref[...]

    # ---- per-sequence scaled-dot-product attention (only the SxS part is per-sequence).
    for n in range(n_seq):                                   # static unroll: tiny trip counts here
        c0 = n * S
        for h in range(nheads):                              # static unroll over heads
            r = h * dh
            qh = qkv_ref[r:r + dh, c0:c0 + S]                # (dh, S)
            kh = qkv_ref[C + r:C + r + dh, c0:c0 + S]        # (dh, S)
            vh = qkv_ref[2 * C + r:2 * C + r + dh, c0:c0 + S]
            # scores without an explicit q transpose: contract the dh axis of q and k.
            s = jax.lax.dot_general(qh.astype(bf16), kh.astype(bf16),
                                    (((0,), (0,)), ((), ())),
                                    preferred_element_type=jnp.float32)        # (S, S)
            s = s - jnp.max(s, axis=-1, keepdims=True)
            p = jnp.exp(s)
            # softmax denominator on the EUP (approximate reciprocal, off the VALU slots)
            p = p * pl.reciprocal(jnp.sum(p, axis=-1, keepdims=True), approx=True)
            # context: oh[d, i] = sum_j vh[d, j] * p[i, j]
            oh = jax.lax.dot_general(vh.astype(bf16), p.astype(bf16),
                                     (((1,), (1,)), ((), ())),
                                     preferred_element_type=jnp.float32)       # (dh, S)
            ctx_ref[r:r + dh, c0:c0 + S] = oh                # assemble concat-of-heads in VMEM

    # ---- hoisted out-projection + post-norm residual + FFN + post-norm on the full slab.
    attn = jnp.dot(w_out_ref[...], ctx_ref[...].astype(bf16),
                   preferred_element_type=jnp.float32) + b_out_ref[...]        # (C, T)
    h1 = _layernorm_cm(xs + attn, ln1_g_ref[...], ln1_b_ref[...], eps)
    f = jnp.dot(w_ff1_ref[...], h1.astype(bf16),
                preferred_element_type=jnp.float32) + b_ff1_ref[...]
    f = _gelu_exact(f)
    f = jnp.dot(w_ff2_ref[...], f.astype(bf16),
                preferred_element_type=jnp.float32) + b_ff2_ref[...]
    h2 = _layernorm_cm(h1 + f, ln2_g_ref[...], ln2_b_ref[...], eps)

    o_ref[0] = h2.astype(o_ref.dtype)                        # one lane-dense full-width store


def _prep_encoder_weights(p, nheads):
    """bf16 matmul weights, f32 biases/LN params, attention scale folded into Q rows."""
    C = p["out_w"].shape[0]
    dh = C // nheads
    scale = jnp.float32(1.0 / math.sqrt(dh))
    w_in = p["in_w"].at[:C, :].multiply(scale)
    b_in = p["in_b"].at[:C].multiply(scale)
    bf = lambda a: a.astype(jnp.bfloat16)
    col = lambda a: a.astype(jnp.float32).reshape(-1, 1)
    return [bf(w_in), col(b_in),
            bf(p["out_w"]), col(p["out_b"]),
            col(p["ln1_g"]), col(p["ln1_b"]),
            bf(p["ff1_w"]), col(p["ff1_b"]),
            bf(p["ff2_w"]), col(p["ff2_b"]),
            col(p["ln2_g"]), col(p["ln2_b"])]


def pallas_encoder_layer(x2d, p, nheads, n_seq, seq_len):
    """Fused post-norm TransformerEncoderLayer over contiguous length-`seq_len` column groups
    of a (B, C, n_seq*seq_len) channel-major slab."""
    B, C, T = x2d.shape
    assert T == n_seq * seq_len
    weights = _prep_encoder_weights(p, nheads)

    in_specs = [pl.BlockSpec((1, C, T), lambda b: (b, 0, 0))]
    in_specs += [pl.BlockSpec(w.shape, lambda b: (0, 0)) for w in weights]

    kernel = functools.partial(_encoder_layer_kernel, n_seq=n_seq, S=seq_len,
                               nheads=nheads, eps=_LN_EPS)
    return pl.pallas_call(
        kernel,
        out_shape=jax.ShapeDtypeStruct((B, C, T), jnp.bfloat16),
        grid=(B,),
        in_specs=in_specs,
        out_specs=pl.BlockSpec((1, C, T), lambda b: (b, 0, 0)),
        scratch_shapes=[pltpu.VMEM((3 * C, T), jnp.float32),    # qkv slab
                        pltpu.VMEM((C, T), jnp.float32)],       # attention context slab
        compiler_params=pltpu.CompilerParams(dimension_semantics=("parallel",)),
    )(x2d, *weights)


# --------------------------------------------------------------------------- fused tail

def _tail_kernel(y_ref, c_ref, x_ref, w_mid_ref, w_cond_ref, b_mc_ref, w_out_ref, b_out_ref,
                 res_ref, skip_ref, *, channels):
    C = channels
    bf16 = jnp.bfloat16
    # mid_projection(y) + cond_projection(cond) + pre-summed bias (no staging copy).
    ymid = (jnp.dot(w_mid_ref[...], y_ref[0].astype(bf16), preferred_element_type=jnp.float32)
            + jnp.dot(w_cond_ref[...], c_ref[0].astype(bf16), preferred_element_type=jnp.float32)
            + b_mc_ref[...])                                                     # (2C, tm) f32
    z = jax.nn.sigmoid(ymid[:C]) * jnp.tanh(ymid[C:])                            # (C, tm) f32
    out = jnp.dot(w_out_ref[...], z.astype(bf16),
                  preferred_element_type=jnp.float32) + b_out_ref[...]           # (2C, tm) f32
    res_ref[0] = ((x_ref[0] + out[:C]) * _INV_SQRT2).astype(res_ref.dtype)
    skip_ref[0] = out[C:].astype(skip_ref.dtype)


def _pick_token_tile(M, cap=2048):
    """Largest multiple-of-128 divisor of M that is <= cap; M itself when M <= cap or no
    aligned divisor exists (keeps the BlockSpec (8,128)-rule satisfied in every case)."""
    if M <= cap:
        return M
    d = (cap // 128) * 128
    while d >= 128:
        if M % d == 0:
            return d
        d -= 128
    # TODO(synk): pad M to a multiple of 128 instead of falling back, for v7x VMEM headroom.
    return M


def pallas_tail(y, cond, x, params, token_block=2048):
    B, C, M = x.shape
    side = cond.shape[1]
    bf16 = jnp.bfloat16
    w_mid = params["mid_w"].astype(bf16)
    w_cond = params["cond_w"].astype(bf16)
    b_mc = (params["mid_b"] + params["cond_b"]).astype(jnp.float32).reshape(2 * C, 1)
    w_out = params["out_w"].astype(bf16)
    b_out = params["out_b"].astype(jnp.float32).reshape(2 * C, 1)

    tm = _pick_token_tile(M, token_block)
    grid = (B, M // tm)

    tok = lambda b, m: (b, 0, m)
    const = lambda b, m: (0, 0)
    return pl.pallas_call(
        functools.partial(_tail_kernel, channels=C),
        out_shape=(jax.ShapeDtypeStruct((B, C, M), x.dtype),
                   jax.ShapeDtypeStruct((B, C, M), x.dtype)),
        grid=grid,
        in_specs=[pl.BlockSpec((1, C, tm), tok),
                  pl.BlockSpec((1, side, tm), tok),
                  pl.BlockSpec((1, C, tm), tok),
                  pl.BlockSpec(w_mid.shape, const),
                  pl.BlockSpec(w_cond.shape, const),
                  pl.BlockSpec(b_mc.shape, const),
                  pl.BlockSpec(w_out.shape, const),
                  pl.BlockSpec(b_out.shape, const)],
        out_specs=(pl.BlockSpec((1, C, tm), tok),
                   pl.BlockSpec((1, C, tm), tok)),
        compiler_params=pltpu.CompilerParams(
            dimension_semantics=("parallel", "parallel")),
    )(y, cond, x, w_mid, w_cond, b_mc, w_out, b_out)


# --------------------------------------------------------------------------- full forward

def residual_block_forward(x, cond_info, params, nheads):
    """x: (B, C, K, L), cond_info: (B, side_dim, K, L) -> ((x+res)/sqrt2, skip), both (B, C, K, L)."""
    B, C, K, L = x.shape
    KL = K * L
    xt = x.reshape(B, C, KL)                                     # time layout (K-major, L-minor)

    # time layer: attend over L for every (b, k)
    y = pallas_encoder_layer(xt, params["time"], nheads, n_seq=K, seq_len=L)
    # single XLA relayout to the feature layout (L-major, K-minor); intermediate stays bf16.
    y = y.reshape(B, C, K, L).transpose(0, 1, 3, 2).reshape(B, C, KL)
    # feature layer: attend over K for every (b, l)
    y = pallas_encoder_layer(y, params["feature"], nheads, n_seq=L, seq_len=K)
    # back to the time layout so y/cond/x/res/skip all share one token ordering.
    y = y.reshape(B, C, L, K).transpose(0, 1, 3, 2).reshape(B, C, KL)

    res, skip = pallas_tail(y, cond_info.reshape(B, cond_info.shape[1], KL), xt, params)
    return res.reshape(B, C, K, L), skip.reshape(B, C, K, L)


# --------------------------------------------------------------------------- pure-JAX reference

def _ref_layernorm(y, g, b, eps=_LN_EPS):
    mu = jnp.mean(y, axis=-1, keepdims=True)
    var = jnp.mean(jnp.square(y - mu), axis=-1, keepdims=True)
    return (y - mu) * jax.lax.rsqrt(var + eps) * g + b


def _ref_encoder_layer(x, p, nheads):
    N, S, C = x.shape
    dh = C // nheads
    x2 = x.reshape(N * S, C)
    qkv = x2 @ p["in_w"].T + p["in_b"]
    q, k, v = qkv[:, :C], qkv[:, C:2 * C], qkv[:, 2 * C:]

    def split(t):
        return t.reshape(N, S, nheads, dh).transpose(0, 2, 1, 3)

    q, k, v = split(q), split(k), split(v)
    s = jnp.einsum("nhid,nhjd->nhij", q, k) / math.sqrt(dh)
    a = jax.nn.softmax(s, axis=-1)
    o = jnp.einsum("nhij,nhjd->nhid", a, v).transpose(0, 2, 1, 3).reshape(N * S, C)
    attn = o @ p["out_w"].T + p["out_b"]
    h1 = _ref_layernorm(x2 + attn, p["ln1_g"], p["ln1_b"])
    f = h1 @ p["ff1_w"].T + p["ff1_b"]
    f = 0.5 * f * (1.0 + jax.lax.erf(f * _SQRT_HALF))
    f = f @ p["ff2_w"].T + p["ff2_b"]
    h2 = _ref_layernorm(h1 + f, p["ln2_g"], p["ln2_b"])
    return h2.reshape(N, S, C)


def ref_residual_block(x, cond_info, params, nheads):
    B, C, K, L = x.shape
    yt = x.transpose(0, 2, 3, 1).reshape(B * K, L, C)
    yt = _ref_encoder_layer(yt, params["time"], nheads)
    y1 = yt.reshape(B, K, L, C).transpose(0, 3, 1, 2)
    yf = y1.transpose(0, 3, 2, 1).reshape(B * L, K, C)
    yf = _ref_encoder_layer(yf, params["feature"], nheads)
    y2 = yf.reshape(B, L, K, C).transpose(0, 3, 2, 1)
    ymid = (jnp.einsum("oc,bckl->bokl", params["mid_w"], y2)
            + params["mid_b"][None, :, None, None]
            + jnp.einsum("oc,bckl->bokl", params["cond_w"], cond_info)
            + params["cond_b"][None, :, None, None])
    z = jax.nn.sigmoid(ymid[:, :C]) * jnp.tanh(ymid[:, C:])
    out = jnp.einsum("oc,bckl->bokl", params["out_w"], z) + params["out_b"][None, :, None, None]
    return (x + out[:, :C]) * _INV_SQRT2, out[:, C:]


# --------------------------------------------------------------------------- deterministic params

def init_params(key, side_dim, channels, dff=64):
    C = channels
    keys = iter(jax.random.split(key, 32))

    def nrm(shape, scale):
        return scale * jax.random.normal(next(keys), shape, dtype=jnp.float32)

    def encoder():
        return dict(
            in_w=nrm((3 * C, C), 1.0 / math.sqrt(C)), in_b=nrm((3 * C,), 0.02),
            out_w=nrm((C, C), 1.0 / math.sqrt(C)), out_b=nrm((C,), 0.02),
            ff1_w=nrm((dff, C), 1.0 / math.sqrt(C)), ff1_b=nrm((dff,), 0.02),
            ff2_w=nrm((C, dff), 1.0 / math.sqrt(dff)), ff2_b=nrm((C,), 0.02),
            ln1_g=jnp.ones((C,), jnp.float32), ln1_b=jnp.zeros((C,), jnp.float32),
            ln2_g=jnp.ones((C,), jnp.float32), ln2_b=jnp.zeros((C,), jnp.float32),
        )

    return dict(
        time=encoder(),
        feature=encoder(),
        # Conv1d(kernel_size=1) weights in PyTorch (out, in) layout, kaiming-normal scale.
        cond_w=nrm((2 * C, side_dim), math.sqrt(2.0 / side_dim)), cond_b=nrm((2 * C,), 0.02),
        mid_w=nrm((2 * C, C), math.sqrt(2.0 / C)), mid_b=nrm((2 * C,), 0.02),
        out_w=nrm((2 * C, C), math.sqrt(2.0 / C)), out_b=nrm((2 * C,), 0.02),
    )


# --------------------------------------------------------------------------- main

if __name__ == "__main__":
    B, C, K, L = 2, 8, 4, 8
    side_dim, nheads = 6, 2

    key = jax.random.PRNGKey(0)
    kx, kc, kp = jax.random.split(key, 3)
    x = jax.random.normal(kx, (B, C, K, L), dtype=jnp.float32)
    cond_info = jax.random.normal(kc, (B, side_dim, K, L), dtype=jnp.float32)
    params = init_params(kp, side_dim, C)

    fwd = jax.jit(functools.partial(residual_block_forward, nheads=nheads))
    res, skip = fwd(x, cond_info, params)
    jax.block_until_ready((res, skip))

    with jax.default_matmul_precision("highest"):
        ref_res, ref_skip = ref_residual_block(x, cond_info, params, nheads)

    assert res.shape == (B, C, K, L) and skip.shape == (B, C, K, L)
    err_res = float(jnp.max(jnp.abs(res - ref_res)))
    err_skip = float(jnp.max(jnp.abs(skip - ref_skip)))
    mean_res = float(jnp.mean(jnp.abs(res - ref_res)))
    mean_skip = float(jnp.mean(jnp.abs(skip - ref_skip)))
    # bf16 MXU operands (per perf review) dominate the deviation from the f32 "highest" reference
    # (expected max ~3e-2..8e-2, mean ~1e-2).  Structural/layout bugs would produce O(1) errors,
    # far above both bounds, so the check still discriminates correctness.
    assert err_res < 2.5e-1 and err_skip < 2.5e-1, (err_res, err_skip)
    assert mean_res < 4e-2 and mean_skip < 4e-2, (mean_res, mean_skip)
    print("KERNEL_OK")
</pallas_src>

<mosaic_0001>
module attributes {stable_mosaic.version = 11 : i64} {
  func.func @_encoder_layer_kernel(%arg0: i32, %arg1: memref<1x8x32xbf16, #tpu.memory_space<vmem>>, %arg2: memref<24x8xbf16, #tpu.memory_space<vmem>>, %arg3: memref<24x1xf32, #tpu.memory_space<vmem>>, %arg4: memref<8x8xbf16, #tpu.memory_space<vmem>>, %arg5: memref<8x1xf32, #tpu.memory_space<vmem>>, %arg6: memref<8x1xf32, #tpu.memory_space<vmem>>, %arg7: memref<8x1xf32, #tpu.memory_space<vmem>>, %arg8: memref<64x8xbf16, #tpu.memory_space<vmem>>, %arg9: memref<64x1xf32, #tpu.memory_space<vmem>>, %arg10: memref<8x64xbf16, #tpu.memory_space<vmem>>, %arg11: memref<8x1xf32, #tpu.memory_space<vmem>>, %arg12: memref<8x1xf32, #tpu.memory_space<vmem>>, %arg13: memref<8x1xf32, #tpu.memory_space<vmem>>, %arg14: memref<1x8x32xbf16, #tpu.memory_space<vmem>>, %arg15: memref<24x32xf32, #tpu.memory_space<vmem>>, %arg16: memref<8x32xf32, #tpu.memory_space<vmem>>) attributes {dimension_semantics = [#tpu.dimension_semantics<parallel>], iteration_bounds = array<i64: 2>, scalar_prefetch = 0 : i64, scratch_operands = 2 : i64, tpu.core_type = #tpu.core_type<tc>, window_params = [{transform_indices = @transform_0, window_bounds = array<i64: 1, 8, 32>}, {pipeline_mode = #tpu.pipeline_mode<synchronous>, transform_indices = @transform_1, window_bounds = array<i64: 24, 8>}, {pipeline_mode = #tpu.pipeline_mode<synchronous>, transform_indices = @transform_2, window_bounds = array<i64: 24, 1>}, {pipeline_mode = #tpu.pipeline_mode<synchronous>, transform_indices = @transform_3, window_bounds = array<i64: 8, 8>}, {pipeline_mode = #tpu.pipeline_mode<synchronous>, transform_indices = @transform_4, window_bounds = array<i64: 8, 1>}, {pipeline_mode = #tpu.pipeline_mode<synchronous>, transform_indices = @transform_5, window_bounds = array<i64: 8, 1>}, {pipeline_mode = #tpu.pipeline_mode<synchronous>, transform_indices = @transform_6, window_bounds = array<i64: 8, 1>}, {pipeline_mode = #tpu.pipeline_mode<synchronous>, transform_indices = @transform_7, window_bounds = array<i64: 64, 8>}, {pipeline_mode = #tpu.pipeline_mode<synchronous>, transform_indices = @transform_8, window_bounds = array<i64: 64, 1>}, {pipeline_mode = #tpu.pipeline_mode<synchronous>, transform_indices = @transform_9, window_bounds = array<i64: 8, 64>}, {pipeline_mode = #tpu.pipeline_mode<synchronous>, transform_indices = @transform_10, window_bounds = array<i64: 8, 1>}, {pipeline_mode = #tpu.pipeline_mode<synchronous>, transform_indices = @transform_11, window_bounds = array<i64: 8, 1>}, {pipeline_mode = #tpu.pipeline_mode<synchronous>, transform_indices = @transform_12, window_bounds = array<i64: 8, 1>}, {transform_indices = @transform_13, window_bounds = array<i64: 1, 8, 32>}]} {
    %c0 = arith.constant 0 : index
    %c0_0 = arith.constant 0 : index
    %c0_1 = arith.constant 0 : index
    %0 = vector.load %arg1[%c0, %c0_0, %c0_1] : memref<1x8x32xbf16, #tpu.memory_space<vmem>>, vector<1x8x32xbf16>
    %1 = vector.shape_cast %0 : vector<1x8x32xbf16> to vector<8x32xbf16>
    %2 = arith.extf %1 : vector<8x32xbf16> to vector<8x32xf32>
    %c0_2 = arith.constant 0 : index
    %c0_3 = arith.constant 0 : index
    %3 = vector.load %arg2[%c0_2, %c0_3] : memref<24x8xbf16, #tpu.memory_space<vmem>>, vector<24x8xbf16>
    %4 = arith.truncf %2 : vector<8x32xf32> to vector<8x32xbf16>
    %cst = arith.constant dense<0.000000e+00> : vector<24x32xf32>
    %5 = tpu.matmul %3, %4, %cst {dimension_numbers = #tpu.dot_dimension_numbers<[1], [0], [0], [1], [0, 0, 1, 1], [], []>} : vector<24x8xbf16>, vector<8x32xbf16>, vector<24x32xf32> -> vector<24x32xf32>
    %c0_4 = arith.constant 0 : index
    %c0_5 = arith.constant 0 : index
    %6 = vector.load %arg3[%c0_4, %c0_5] : memref<24x1xf32, #tpu.memory_space<vmem>>, vector<24x1xf32>
    %7 = vector.broadcast %6 : vector<24x1xf32> to vector<24x32xf32>
    %8 = arith.addf %5, %7 : vector<24x32xf32>
    %c0_6 = arith.constant 0 : index
    %c0_7 = arith.constant 0 : index
    %9 = vector.load %arg15[%c0_6, %c0_7] : memref<24x32xf32, #tpu.memory_space<vmem>>, vector<24x32xf32>
    tpu.vector_store %arg15[%c0_6, %c0_7], %8 {strides = array<i32>} : memref<24x32xf32, #tpu.memory_space<vmem>>, vector<24x32xf32>,
    %c0_8 = arith.constant 0 : index
    %c0_9 = arith.constant 0 : index
    %10 = vector.load %arg15[%c0_8, %c0_9] : memref<24x32xf32, #tpu.memory_space<vmem>>, vector<4x4xf32>
    %c8 = arith.constant 8 : index
    %c0_10 = arith.constant 0 : index
    %11 = vector.load %arg15[%c8, %c0_10] : memref<24x32xf32, #tpu.memory_space<vmem>>, vector<4x4xf32>
    %c16 = arith.constant 16 : index
    %c0_11 = arith.constant 0 : index
    %12 = vector.load %arg15[%c16, %c0_11] : memref<24x32xf32, #tpu.memory_space<vmem>>, vector<4x4xf32>
    %13 = arith.truncf %10 : vector<4x4xf32> to vector<4x4xbf16>
    %14 = arith.truncf %11 : vector<4x4xf32> to vector<4x4xbf16>
    %cst_12 = arith.constant dense<0.000000e+00> : vector<4x4xf32>
    %15 = tpu.matmul %13, %14, %cst_12 {dimension_numbers = #tpu.dot_dimension_numbers<[0], [0], [1], [1], [0, 1, 1, 1], [], []>} : vector<4x4xbf16>, vector<4x4xbf16>, vector<4x4xf32> -> vector<4x4xf32>
    %cst_13 = arith.constant dense<0xFF800000> : vector<4xf32>
    %16 = vector.multi_reduction <maximumf>, %15, %cst_13 [1] : vector<4x4xf32> to vector<4xf32>
    %17 = vector.shape_cast %16 : vector<4xf32> to vector<4x1xf32>
    %18 = vector.broadcast %17 : vector<4x1xf32> to vector<4x4xf32>
    %19 = arith.subf %15, %18 : vector<4x4xf32>
    %20 = math.exp %19 : vector<4x4xf32>
    %cst_14 = arith.constant dense<0.000000e+00> : vector<4xf32>
    %21 = vector.multi_reduction <add>, %20, %cst_14 [1] : vector<4x4xf32> to vector<4xf32>
    %22 = vector.shape_cast %21 : vector<4xf32> to vector<4x1xf32>
    %23 = tpu.reciprocal %22 {approx = true} : vector<4x1xf32> -> vector<4x1xf32>
    %24 = vector.broadcast %23 : vector<4x1xf32> to vector<4x4xf32>
    %25 = arith.mulf %20, %24 : vector<4x4xf32>
    %26 = arith.truncf %12 : vector<4x4xf32> to vector<4x4xbf16>
    %27 = arith.truncf %25 : vector<4x4xf32> to vector<4x4xbf16>
    %cst_15 = arith.constant dense<0.000000e+00> : vector<4x4xf32>
    %28 = tpu.matmul %26, %27, %cst_15 {dimension_numbers = #tpu.dot_dimension_numbers<[1], [1], [0], [0], [0, 0, 1, 0], [], []>} : vector<4x4xbf16>, vector<4x4xbf16>, vector<4x4xf32> -> vector<4x4xf32>
    %c0_16 = arith.constant 0 : index
    %c0_17 = arith.constant 0 : index
    %29 = vector.load %arg16[%c0_16, %c0_17] : memref<8x32xf32, #tpu.memory_space<vmem>>, vector<4x4xf32>
    tpu.vector_store %arg16[%c0_16, %c0_17], %28 {strides = array<i32>} : memref<8x32xf32, #tpu.memory_space<vmem>>, vector<4x4xf32>,
    %c4 = arith.constant 4 : index
    %c0_18 = arith.constant 0 : index
    %30 = vector.load %arg15[%c4, %c0_18] : memref<24x32xf32, #tpu.memory_space<vmem>>, vector<4x4xf32>
    %c12 = arith.constant 12 : index
    %c0_19 = arith.constant 0 : index
    %31 = vector.load %arg15[%c12, %c0_19] : memref<24x32xf32, #tpu.memory_space<vmem>>, vector<4x4xf32>
    %c20 = arith.constant 20 : index
    %c0_20 = arith.constant 0 : index
    %32 = vector.load %arg15[%c20, %c0_20] : memref<24x32xf32, #tpu.memory_space<vmem>>, vector<4x4xf32>
    %33 = arith.truncf %30 : vector<4x4xf32> to vector<4x4xbf16>
    %34 = arith.truncf %31 : vector<4x4xf32> to vector<4x4xbf16>
    %cst_21 = arith.constant dense<0.000000e+00> : vector<4x4xf32>
    %35 = tpu.matmul %33, %34, %cst_21 {dimension_numbers = #tpu.dot_dimension_numbers<[0], [0], [1], [1], [0, 1, 1, 1], [], []>} : vector<4x4xbf16>, vector<4x4xbf16>, vector<4x4xf32> -> vector<4x4xf32>
    %cst_22 = arith.constant dense<0xFF800000> : vector<4xf32>
    %36 = vector.multi_reduction <maximumf>, %35, %cst_22 [1] : vector<4x4xf32> to vector<4xf32>
    %37 = vector.shape_cast %36 : vector<4xf32> to vector<4x1xf32>
    %38 = vector.broadcast %37 : vector<4x1xf32> to vector<4x4xf32>
    %39 = arith.subf %35, %38 : vector<4x4xf32>
    %40 = math.exp %39 : vector<4x4xf32>
    %cst_23 = arith.constant dense<0.000000e+00> : vector<4xf32>
    %41 = vector.multi_reduction <add>, %40, %cst_23 [1] : vector<4x4xf32> to vector<4xf32>
    %42 = vector.shape_cast %41 : vector<4xf32> to vector<4x1xf32>
    %43 = tpu.reciprocal %42 {approx = true} : vector<4x1xf32> -> vector<4x1xf32>
    %44 = vector.broadcast %43 : vector<4x1xf32> to vector<4x4xf32>
    %45 = arith.mulf %40, %44 : vector<4x4xf32>
    %46 = arith.truncf %32 : vector<4x4xf32> to vector<4x4xbf16>
    %47 = arith.truncf %45 : vector<4x4xf32> to vector<4x4xbf16>
    %cst_24 = arith.constant dense<0.000000e+00> : vector<4x4xf32>
    %48 = tpu.matmul %46, %47, %cst_24 {dimension_numbers = #tpu.dot_dimension_numbers<[1], [1], [0], [0], [0, 0, 1, 0], [], []>} : vector<4x4xbf16>, vector<4x4xbf16>, vector<4x4xf32> -> vector<4x4xf32>
    %c4_25 = arith.constant 4 : index
    %c0_26 = arith.constant 0 : index
    %49 = vector.load %arg16[%c4_25, %c0_26] : memref<8x32xf32, #tpu.memory_space<vmem>>, vector<4x4xf32>
    tpu.vector_store %arg16[%c4_25, %c0_26], %48 {strides = array<i32>} : memref<8x32xf32, #tpu.memory_space<vmem>>, vector<4x4xf32>,
    %c0_27 = arith.constant 0 : index
    %c4_28 = arith.constant 4 : index
    %50 = vector.load %arg15[%c0_27, %c4_28] : memref<24x32xf32, #tpu.memory_space<vmem>>, vector<4x4xf32>
    %c8_29 = arith.constant 8 : index
    %c4_30 = arith.constant 4 : index
    %51 = vector.load %arg15[%c8_29, %c4_30] : memref<24x32xf32, #tpu.memory_space<vmem>>, vector<4x4xf32>
    %c16_31 = arith.constant 16 : index
    %c4_32 = arith.constant 4 : index
    %52 = vector.load %arg15[%c16_31, %c4_32] : memref<24x32xf32, #tpu.memory_space<vmem>>, vector<4x4xf32>
    %53 = arith.truncf %50 : vector<4x4xf32> to vector<4x4xbf16>
    %54 = arith.truncf %51 : vector<4x4xf32> to vector<4x4xbf16>
    %cst_33 = arith.constant dense<0.000000e+00> : vector<4x4xf32>
    %55 = tpu.matmul %53, %54, %cst_33 {dimension_numbers = #tpu.dot_dimension_numbers<[0], [0], [1], [1], [0, 1, 1, 1], [], []>} : vector<4x4xbf16>, vector<4x4xbf16>, vector<4x4xf32> -> vector<4x4xf32>
    %cst_34 = arith.constant dense<0xFF800000> : vector<4xf32>
    %56 = vector.multi_reduction <maximumf>, %55, %cst_34 [1] : vector<4x4xf32> to vector<4xf32>
    %57 = vector.shape_cast %56 : vector<4xf32> to vector<4x1xf32>
    %58 = vector.broadcast %57 : vector<4x1xf32> to vector<4x4xf32>
    %59 = arith.subf %55, %58 : vector<4x4xf32>
    %60 = math.exp %59 : vector<4x4xf32>
    %cst_35 = arith.constant dense<0.000000e+00> : vector<4xf32>
    %61 = vector.multi_reduction <add>, %60, %cst_35 [1] : vector<4x4xf32> to vector<4xf32>
    %62 = vector.shape_cast %61 : vector<4xf32> to vector<4x1xf32>
    %63 = tpu.reciprocal %62 {approx = true} : vector<4x1xf32> -> vector<4x1xf32>
    %64 = vector.broadcast %63 : vector<4x1xf32> to vector<4x4xf32>
    %65 = arith.mulf %60, %64 : vector<4x4xf32>
    %66 = arith.truncf %52 : vector<4x4xf32> to vector<4x4xbf16>
    %67 = arith.truncf %65 : vector<4x4xf32> to vector<4x4xbf16>
    %cst_36 = arith.constant dense<0.000000e+00> : vector<4x4xf32>
    %68 = tpu.matmul %66, %67, %cst_36 {dimension_numbers = #tpu.dot_dimension_numbers<[1], [1], [0], [0], [0, 0, 1, 0], [], []>} : vector<4x4xbf16>, vector<4x4xbf16>, vector<4x4xf32> -> vector<4x4xf32>
    %c0_37 = arith.constant 0 : index
    %c4_38 = arith.constant 4 : index
    %69 = vector.load %arg16[%c0_37, %c4_38] : memref<8x32xf32, #tpu.memory_space<vmem>>, vector<4x4xf32>
    tpu.vector_store %arg16[%c0_37, %c4_38], %68 {strides = array<i32>} : memref<8x32xf32, #tpu.memory_space<vmem>>, vector<4x4xf32>,
    %c4_39 = arith.constant 4 : index
    %c4_40 = arith.constant 4 : index
    %70 = vector.load %arg15[%c4_39, %c4_40] : memref<24x32xf32, #tpu.memory_space<vmem>>, vector<4x4xf32>
    %c12_41 = arith.constant 12 : index
    %c4_42 = arith.constant 4 : index
    %71 = vector.load %arg15[%c12_41, %c4_42] : memref<24x32xf32, #tpu.memory_space<vmem>>, vector<4x4xf32>
    %c20_43 = arith.constant 20 : index
    %c4_44 = arith.constant 4 : index
    %72 = vector.load %arg15[%c20_43, %c4_44] : memref<24x32xf32, #tpu.memory_space<vmem>>, vector<4x4xf32>
    %73 = arith.truncf %70 : vector<4x4xf32> to vector<4x4xbf16>
    %74 = arith.truncf %71 : vector<4x4xf32> to vector<4x4xbf16>
    %cst_45 = arith.constant dense<0.000000e+00> : vector<4x4xf32>
    %75 = tpu.matmul %73, %74, %cst_45 {dimension_numbers = #tpu.dot_dimension_numbers<[0], [0], [1], [1], [0, 1, 1, 1], [], []>} : vector<4x4xbf16>, vector<4x4xbf16>, vector<4x4xf32> -> vector<4x4xf32>
    %cst_46 = arith.constant dense<0xFF800000> : vector<4xf32>
    %76 = vector.multi_reduction <maximumf>, %75, %cst_46 [1] : vector<4x4xf32> to vector<4xf32>
    %77 = vector.shape_cast %76 : vector<4xf32> to vector<4x1xf32>
    %78 = vector.broadcast %77 : vector<4x1xf32> to vector<4x4xf32>
    %79 = arith.subf %75, %78 : vector<4x4xf32>
    %80 = math.exp %79 : vector<4x4xf32>
    %cst_47 = arith.constant dense<0.000000e+00> : vector<4xf32>
    %81 = vector.multi_reduction <add>, %80, %cst_47 [1] : vector<4x4xf32> to vector<4xf32>
    %82 = vector.shape_cast %81 : vector<4xf32> to vector<4x1xf32>
    %83 = tpu.reciprocal %82 {approx = true} : vector<4x1xf32> -> vector<4x1xf32>
    %84 = vector.broadcast %83 : vector<4x1xf32> to vector<4x4xf32>
    %85 = arith.mulf %80, %84 : vector<4x4xf32>
    %86 = arith.truncf %72 : vector<4x4xf32> to vector<4x4xbf16>
    %87 = arith.truncf %85 : vector<4x4xf32> to vector<4x4xbf16>
    %cst_48 = arith.constant dense<0.000000e+00> : vector<4x4xf32>
    %88 = tpu.matmul %86, %87, %cst_48 {dimension_numbers = #tpu.dot_dimension_numbers<[1], [1], [0], [0], [0, 0, 1, 0], [], []>} : vector<4x4xbf16>, vector<4x4xbf16>, vector<4x4xf32> -> vector<4x4xf32>
    %c4_49 = arith.constant 4 : index
    %c4_50 = arith.constant 4 : index
    %89 = vector.load %arg16[%c4_49, %c4_50] : memref<8x32xf32, #tpu.memory_space<vmem>>, vector<4x4xf32>
    tpu.vector_store %arg16[%c4_49, %c4_50], %88 {strides = array<i32>} : memref<8x32xf32, #tpu.memory_space<vmem>>, vector<4x4xf32>,
    %c0_51 = arith.constant 0 : index
    %c8_52 = arith.constant 8 : index
    %90 = vector.load %arg15[%c0_51, %c8_52] : memref<24x32xf32, #tpu.memory_space<vmem>>, vector<4x4xf32>
    %c8_53 = arith.constant 8 : index
    %c8_54 = arith.constant 8 : index
    %91 = vector.load %arg15[%c8_53, %c8_54] : memref<24x32xf32, #tpu.memory_space<vmem>>, vector<4x4xf32>
    %c16_55 = arith.constant 16 : index
    %c8_56 = arith.constant 8 : index
    %92 = vector.load %arg15[%c16_55, %c8_56] : memref<24x32xf32, #tpu.memory_space<vmem>>, vector<4x4xf32>
    %93 = arith.truncf %90 : vector<4x4xf32> to vector<4x4xbf16>
    %94 = arith.truncf %91 : vector<4x4xf32> to vector<4x4xbf16>
    %cst_57 = arith.constant dense<0.000000e+00> : vector<4x4xf32>
    %95 = tpu.matmul %93, %94, %cst_57 {dimension_numbers = #tpu.dot_dimension_numbers<[0], [0], [1], [1], [0, 1, 1, 1], [], []>} : vector<4x4xbf16>, vector<4x4xbf16>, vector<4x4xf32> -> vector<4x4xf32>
    %cst_58 = arith.constant dense<0xFF800000> : vector<4xf32>
    %96 = vector.multi_reduction <maximumf>, %95, %cst_58 [1] : vector<4x4xf32> to vector<4xf32>
    %97 = vector.shape_cast %96 : vector<4xf32> to vector<4x1xf32>
    %98 = vector.broadcast %97 : vector<4x1xf32> to vector<4x4xf32>
    %99 = arith.subf %95, %98 : vector<4x4xf32>
    %100 = math.exp %99 : vector<4x4xf32>
    %cst_59 = arith.constant dense<0.000000e+00> : vector<4xf32>
    %101 = vector.multi_reduction <add>, %100, %cst_59 [1] : vector<4x4xf32> to vector<4xf32>
    %102 = vector.shape_cast %101 : vector<4xf32> to vector<4x1xf32>
    %103 = tpu.reciprocal %102 {approx = true} : vector<4x1xf32> -> vector<4x1xf32>
    %104 = vector.broadcast %103 : vector<4x1xf32> to vector<4x4xf32>
    %105 = arith.mulf %100, %104 : vector<4x4xf32>
    %106 = arith.truncf %92 : vector<4x4xf32> to vector<4x4xbf16>
    %107 = arith.truncf %105 : vector<4x4xf32> to vector<4x4xbf16>
    %cst_60 = arith.constant dense<0.000000e+00> : vector<4x4xf32>
    %108 = tpu.matmul %106, %107, %cst_60 {dimension_numbers = #tpu.dot_dimension_numbers<[1], [1], [0], [0], [0, 0, 1, 0], [], []>} : vector<4x4xbf16>, vector<4x4xbf16>, vector<4x4xf32> -> vector<4x4xf32>
    %c0_61 = arith.constant 0 : index
    %c8_62 = arith.constant 8 : index
    %109 = vector.load %arg16[%c0_61, %c8_62] : memref<8x32xf32, #tpu.memory_space<vmem>>, vector<4x4xf32>
    tpu.vector_store %arg16[%c0_61, %c8_62], %108 {strides = array<i32>} : memref<8x32xf32, #tpu.memory_space<vmem>>, vector<4x4xf32>,
    %c4_63 = arith.constant 4 : index
    %c8_64 = arith.constant 8 : index
    %110 = vector.load %arg15[%c4_63, %c8_64] : memref<24x32xf32, #tpu.memory_space<vmem>>, vector<4x4xf32>
    %c12_65 = arith.constant 12 : index
    %c8_66 = arith.constant 8 : index
    %111 = vector.load %arg15[%c12_65, %c8_66] : memref<24x32xf32, #tpu.memory_space<vmem>>, vector<4x4xf32>
    %c20_67 = arith.constant 20 : index
    %c8_68 = arith.constant 8 : index
    %112 = vector.load %arg15[%c20_67, %c8_68] : memref<24x32xf32, #tpu.memory_space<vmem>>, vector<4x4xf32>
    %113 = arith.truncf %110 : vector<4x4xf32> to vector<4x4xbf16>
    %114 = arith.truncf %111 : vector<4x4xf32> to vector<4x4xbf16>
    %cst_69 = arith.constant dense<0.000000e+00> : vector<4x4xf32>
    %115 = tpu.matmul %113, %114, %cst_69 {dimension_numbers = #tpu.dot_dimension_numbers<[0], [0], [1], [1], [0, 1, 1, 1], [], []>} : vector<4x4xbf16>, vector<4x4xbf16>, vector<4x4xf32> -> vector<4x4xf32>
    %cst_70 = arith.constant dense<0xFF800000> : vector<4xf32>
    %116 = vector.multi_reduction <maximumf>, %115, %cst_70 [1] : vector<4x4xf32> to vector<4xf32>
    %117 = vector.shape_cast %116 : vector<4xf32> to vector<4x1xf32>
    %118 = vector.broadcast %117 : vector<4x1xf32> to vector<4x4xf32>
    %119 = arith.subf %115, %118 : vector<4x4xf32>
    %120 = math.exp %119 : vector<4x4xf32>
    %cst_71 = arith.constant dense<0.000000e+00> : vector<4xf32>
    %121 = vector.multi_reduction <add>, %120, %cst_71 [1] : vector<4x4xf32> to vector<4xf32>
    %122 = vector.shape_cast %121 : vector<4xf32> to vector<4x1xf32>
    %123 = tpu.reciprocal %122 {approx = true} : vector<4x1xf32> -> vector<4x1xf32>
    %124 = vector.broadcast %123 : vector<4x1xf32> to vector<4x4xf32>
    %125 = arith.mulf %120, %124 : vector<4x4xf32>
    %126 = arith.truncf %112 : vector<4x4xf32> to vector<4x4xbf16>
    %127 = arith.truncf %125 : vector<4x4xf32> to vector<4x4xbf16>
    %cst_72 = arith.constant dense<0.000000e+00> : vector<4x4xf32>
    %128 = tpu.matmul %126, %127, %cst_72 {dimension_numbers = #tpu.dot_dimension_numbers<[1], [1], [0], [0], [0, 0, 1, 0], [], []>} : vector<4x4xbf16>, vector<4x4xbf16>, vector<4x4xf32> -> vector<4x4xf32>
    %c4_73 = arith.constant 4 : index
    %c8_74 = arith.constant 8 : index
    %129 = vector.load %arg16[%c4_73, %c8_74] : memref<8x32xf32, #tpu.memory_space<vmem>>, vector<4x4xf32>
    tpu.vector_store %arg16[%c4_73, %c8_74], %128 {strides = array<i32>} : memref<8x32xf32, #tpu.memory_space<vmem>>, vector<4x4xf32>,
    %c0_75 = arith.constant 0 : index
    %c12_76 = arith.constant 12 : index
    %130 = vector.load %arg15[%c0_75, %c12_76] : memref<24x32xf32, #tpu.memory_space<vmem>>, vector<4x4xf32>
    %c8_77 = arith.constant 8 : index
    %c12_78 = arith.constant 12 : index
    %131 = vector.load %arg15[%c8_77, %c12_78] : memref<24x32xf32, #tpu.memory_space<vmem>>, vector<4x4xf32>
    %c16_79 = arith.constant 16 : index
    %c12_80 = arith.constant 12 : index
    %132 = vector.load %arg15[%c16_79, %c12_80] : memref<24x32xf32, #tpu.memory_space<vmem>>, vector<4x4xf32>
    %133 = arith.truncf %130 : vector<4x4xf32> to vector<4x4xbf16>
    %134 = arith.truncf %131 : vector<4x4xf32> to vector<4x4xbf16>
    %cst_81 = arith.constant dense<0.000000e+00> : vector<4x4xf32>
    %135 = tpu.matmul %133, %134, %cst_81 {dimension_numbers = #tpu.dot_dimension_numbers<[0], [0], [1], [1], [0, 1, 1, 1], [], []>} : vector<4x4xbf16>, vector<4x4xbf16>, vector<4x4xf32> -> vector<4x4xf32>
    %cst_82 = arith.constant dense<0xFF800000> : vector<4xf32>
    %136 = vector.multi_reduction <maximumf>, %135, %cst_82 [1] : vector<4x4xf32> to vector<4xf32>
    %137 = vector.shape_cast %136 : vector<4xf32> to vector<4x1xf32>
    %138 = vector.broadcast %137 : vector<4x1xf32> to vector<4x4xf32>
    %139 = arith.subf %135, %138 : vector<4x4xf32>
    %140 = math.exp %139 : vector<4x4xf32>
    %cst_83 = arith.constant dense<0.000000e+00> : vector<4xf32>
    %141 = vector.multi_reduction <add>, %140, %cst_83 [1] : vector<4x4xf32> to vector<4xf32>
    %142 = vector.shape_cast %141 : vector<4xf32> to vector<4x1xf32>
    %143 = tpu.reciprocal %142 {approx = true} : vector<4x1xf32> -> vector<4x1xf32>
    %144 = vector.broadcast %143 : vector<4x1xf32> to vector<4x4xf32>
    %145 = arith.mulf %140, %144 : vector<4x4xf32>
    %146 = arith.truncf %132 : vector<4x4xf32> to vector<4x4xbf16>
    %147 = arith.truncf %145 : vector<4x4xf32> to vector<4x4xbf16>
    %cst_84 = arith.constant dense<0.000000e+00> : vector<4x4xf32>
    %148 = tpu.matmul %146, %147, %cst_84 {dimension_numbers = #tpu.dot_dimension_numbers<[1], [1], [0], [0], [0, 0, 1, 0], [], []>} : vector<4x4xbf16>, vector<4x4xbf16>, vector<4x4xf32> -> vector<4x4xf32>
    %c0_85 = arith.constant 0 : index
    %c12_86 = arith.constant 12 : index
    %149 = vector.load %arg16[%c0_85, %c12_86] : memref<8x32xf32, #tpu.memory_space<vmem>>, vector<4x4xf32>
    tpu.vector_store %arg16[%c0_85, %c12_86], %148 {strides = array<i32>} : memref<8x32xf32, #tpu.memory_space<vmem>>, vector<4x4xf32>,
    %c4_87 = arith.constant 4 : index
    %c12_88 = arith.constant 12 : index
    %150 = vector.load %arg15[%c4_87, %c12_88] : memref<24x32xf32, #tpu.memory_space<vmem>>, vector<4x4xf32>
    %c12_89 = arith.constant 12 : index
    %c12_90 = arith.constant 12 : index
    %151 = vector.load %arg15[%c12_89, %c12_90] : memref<24x32xf32, #tpu.memory_space<vmem>>, vector<4x4xf32>
    %c20_91 = arith.constant 20 : index
    %c12_92 = arith.constant 12 : index
    %152 = vector.load %arg15[%c20_91, %c12_92] : memref<24x32xf32, #tpu.memory_space<vmem>>, vector<4x4xf32>
    %153 = arith.truncf %150 : vector<4x4xf32> to vector<4x4xbf16>
    %154 = arith.truncf %151 : vector<4x4xf32> to vector<4x4xbf16>
    %cst_93 = arith.constant dense<0.000000e+00> : vector<4x4xf32>
    %155 = tpu.matmul %153, %154, %cst_93 {dimension_numbers = #tpu.dot_dimension_numbers<[0], [0], [1], [1], [0, 1, 1, 1], [], []>} : vector<4x4xbf16>, vector<4x4xbf16>, vector<4x4xf32> -> vector<4x4xf32>
    %cst_94 = arith.constant dense<0xFF800000> : vector<4xf32>
    %156 = vector.multi_reduction <maximumf>, %155, %cst_94 [1] : vector<4x4xf32> to vector<4xf32>
    %157 = vector.shape_cast %156 : vector<4xf32> to vector<4x1xf32>
    %158 = vector.broadcast %157 : vector<4x1xf32> to vector<4x4xf32>
    %159 = arith.subf %155, %158 : vector<4x4xf32>
    %160 = math.exp %159 : vector<4x4xf32>
    %cst_95 = arith.constant dense<0.000000e+00> : vector<4xf32>
    %161 = vector.multi_reduction <add>, %160, %cst_95 [1] : vector<4x4xf32> to vector<4xf32>
    %162 = vector.shape_cast %161 : vector<4xf32> to vector<4x1xf32>
    %163 = tpu.reciprocal %162 {approx = true} : vector<4x1xf32> -> vector<4x1xf32>
    %164 = vector.broadcast %163 : vector<4x1xf32> to vector<4x4xf32>
    %165 = arith.mulf %160, %164 : vector<4x4xf32>
    %166 = arith.truncf %152 : vector<4x4xf32> to vector<4x4xbf16>
    %167 = arith.truncf %165 : vector<4x4xf32> to vector<4x4xbf16>
    %cst_96 = arith.constant dense<0.000000e+00> : vector<4x4xf32>
    %168 = tpu.matmul %166, %167, %cst_96 {dimension_numbers = #tpu.dot_dimension_numbers<[1], [1], [0], [0], [0, 0, 1, 0], [], []>} : vector<4x4xbf16>, vector<4x4xbf16>, vector<4x4xf32> -> vector<4x4xf32>
    %c4_97 = arith.constant 4 : index
    %c12_98 = arith.constant 12 : index
    %169 = vector.load %arg16[%c4_97, %c12_98] : memref<8x32xf32, #tpu.memory_space<vmem>>, vector<4x4xf32>
    tpu.vector_store %arg16[%c4_97, %c12_98], %168 {strides = array<i32>} : memref<8x32xf32, #tpu.memory_space<vmem>>, vector<4x4xf32>,
    %c0_99 = arith.constant 0 : index
    %c16_100 = arith.constant 16 : index
    %170 = vector.load %arg15[%c0_99, %c16_100] : memref<24x32xf32, #tpu.memory_space<vmem>>, vector<4x4xf32>
    %c8_101 = arith.constant 8 : index
    %c16_102 = arith.constant 16 : index
    %171 = vector.load %arg15[%c8_101, %c16_102] : memref<24x32xf32, #tpu.memory_space<vmem>>, vector<4x4xf32>
    %c16_103 = arith.constant 16 : index
    %c16_104 = arith.constant 16 : index
    %172 = vector.load %arg15[%c16_103, %c16_104] : memref<24x32xf32, #tpu.memory_space<vmem>>, vector<4x4xf32>
    %173 = arith.truncf %170 : vector<4x4xf32> to vector<4x4xbf16>
    %174 = arith.truncf %171 : vector<4x4xf32> to vector<4x4xbf16>
    %cst_105 = arith.constant dense<0.000000e+00> : vector<4x4xf32>
    %175 = tpu.matmul %173, %174, %cst_105 {dimension_numbers = #tpu.dot_dimension_numbers<[0], [0], [1], [1], [0, 1, 1, 1], [], []>} : vector<4x4xbf16>, vector<4x4xbf16>, vector<4x4xf32> -> vector<4x4xf32>
    %cst_106 = arith.constant dense<0xFF800000> : vector<4xf32>
    %176 = vector.multi_reduction <maximumf>, %175, %cst_106 [1] : vector<4x4xf32> to vector<4xf32>
    %177 = vector.shape_cast %176 : vector<4xf32> to vector<4x1xf32>
    %178 = vector.broadcast %177 : vector<4x1xf32> to vector<4x4xf32>
    %179 = arith.subf %175, %178 : vector<4x4xf32>
    %180 = math.exp %179 : vector<4x4xf32>
    %cst_107 = arith.constant dense<0.000000e+00> : vector<4xf32>
    %181 = vector.multi_reduction <add>, %180, %cst_107 [1] : vector<4x4xf32> to vector<4xf32>
    %182 = vector.shape_cast %181 : vector<4xf32> to vector<4x1xf32>
    %183 = tpu.reciprocal %182 {approx = true} : vector<4x1xf32> -> vector<4x1xf32>
    %184 = vector.broadcast %183 : vector<4x1xf32> to vector<4x4xf32>
    %185 = arith.mulf %180, %184 : vector<4x4xf32>
    %186 = arith.truncf %172 : vector<4x4xf32> to vector<4x4xbf16>
    %187 = arith.truncf %185 : vector<4x4xf32> to vector<4x4xbf16>
    %cst_108 = arith.constant dense<0.000000e+00> : vector<4x4xf32>
    %188 = tpu.matmul %186, %187, %cst_108 {dimension_numbers = #tpu.dot_dimension_numbers<[1], [1], [0], [0], [0, 0, 1, 0], [], []>} : vector<4x4xbf16>, vector<4x4xbf16>, vector<4x4xf32> -> vector<4x4xf32>
    %c0_109 = arith.constant 0 : index
    %c16_110 = arith.constant 16 : index
    %189 = vector.load %arg16[%c0_109, %c16_110] : memref<8x32xf32, #tpu.memory_space<vmem>>, vector<4x4xf32>
    tpu.vector_store %arg16[%c0_109, %c16_110], %188 {strides = array<i32>} : memref<8x32xf32, #tpu.memory_space<vmem>>, vector<4x4xf32>,
    %c4_111 = arith.constant 4 : index
    %c16_112 = arith.constant 16 : index
    %190 = vector.load %arg15[%c4_111, %c16_112] : memref<24x32xf32, #tpu.memory_space<vmem>>, vector<4x4xf32>
    %c12_113 = arith.constant 12 : index
    %c16_114 = arith.constant 16 : index
    %191 = vector.load %arg15[%c12_113, %c16_114] : memref<24x32xf32, #tpu.memory_space<vmem>>, vector<4x4xf32>
    %c20_115 = arith.constant 20 : index
    %c16_116 = arith.constant 16 : index
    %192 = vector.load %arg15[%c20_115, %c16_116] : memref<24x32xf32, #tpu.memory_space<vmem>>, vector<4x4xf32>
    %193 = arith.truncf %190 : vector<4x4xf32> to vector<4x4xbf16>
    %194 = arith.truncf %191 : vector<4x4xf32> to vector<4x4xbf16>
    %cst_117 = arith.constant dense<0.000000e+00> : vector<4x4xf32>
    %195 = tpu.matmul %193, %194, %cst_117 {dimension_numbers = #tpu.dot_dimension_numbers<[0], [0], [1], [1], [0, 1, 1, 1], [], []>} : vector<4x4xbf16>, vector<4x4xbf16>, vector<4x4xf32> -> vector<4x4xf32>
    %cst_118 = arith.constant dense<0xFF800000> : vector<4xf32>
    %196 = vector.multi_reduction <maximumf>, %195, %cst_118 [1] : vector<4x4xf32> to vector<4xf32>
    %197 = vector.shape_cast %196 : vector<4xf32> to vector<4x1xf32>
    %198 = vector.broadcast %197 : vector<4x1xf32> to vector<4x4xf32>
    %199 = arith.subf %195, %198 : vector<4x4xf32>
    %200 = math.exp %199 : vector<4x4xf32>
    %cst_119 = arith.constant dense<0.000000e+00> : vector<4xf32>
    %201 = vector.multi_reduction <add>, %200, %cst_119 [1] : vector<4x4xf32> to vector<4xf32>
    %202 = vector.shape_cast %201 : vector<4xf32> to vector<4x1xf32>
    %203 = tpu.reciprocal %202 {approx = true} : vector<4x1xf32> -> vector<4x1xf32>
    %204 = vector.broadcast %203 : vector<4x1xf32> to vector<4x4xf32>
    %205 = arith.mulf %200, %204 : vector<4x4xf32>
    %206 = arith.truncf %192 : vector<4x4xf32> to vector<4x4xbf16>
    %207 = arith.truncf %205 : vector<4x4xf32> to vector<4x4xbf16>
    %cst_120 = arith.constant dense<0.000000e+00> : vector<4x4xf32>
    %208 = tpu.matmul %206, %207, %cst_120 {dimension_numbers = #tpu.dot_dimension_numbers<[1], [1], [0], [0], [0, 0, 1, 0], [], []>} : vector<4x4xbf16>, vector<4x4xbf16>, vector<4x4xf32> -> vector<4x4xf32>
    %c4_121 = arith.constant 4 : index
    %c16_122 = arith.constant 16 : index
    %209 = vector.load %arg16[%c4_121, %c16_122] : memref<8x32xf32, #tpu.memory_space<vmem>>, vector<4x4xf32>
    tpu.vector_store %arg16[%c4_121, %c16_122], %208 {strides = array<i32>} : memref<8x32xf32, #tpu.memory_space<vmem>>, vector<4x4xf32>,
    %c0_123 = arith.constant 0 : index
    %c20_124 = arith.constant 20 : index
    %210 = vector.load %arg15[%c0_123, %c20_124] : memref<24x32xf32, #tpu.memory_space<vmem>>, vector<4x4xf32>
    %c8_125 = arith.constant 8 : index
    %c20_126 = arith.constant 20 : index
    %211 = vector.load %arg15[%c8_125, %c20_126] : memref<24x32xf32, #tpu.memory_space<vmem>>, vector<4x4xf32>
    %c16_127 = arith.constant 16 : index
    %c20_128 = arith.constant 20 : index
    %212 = vector.load %arg15[%c16_127, %c20_128] : memref<24x32xf32, #tpu.memory_space<vmem>>, vector<4x4xf32>
    %213 = arith.truncf %210 : vector<4x4xf32> to vector<4x4xbf16>
    %214 = arith.truncf %211 : vector<4x4xf32> to vector<4x4xbf16>
    %cst_129 = arith.constant dense<0.000000e+00> : vector<4x4xf32>
    %215 = tpu.matmul %213, %214, %cst_129 {dimension_numbers = #tpu.dot_dimension_numbers<[0], [0], [1], [1], [0, 1, 1, 1], [], []>} : vector<4x4xbf16>, vector<4x4xbf16>, vector<4x4xf32> -> vector<4x4xf32>
    %cst_130 = arith.constant dense<0xFF800000> : vector<4xf32>
    %216 = vector.multi_reduction <maximumf>, %215, %cst_130 [1] : vector<4x4xf32> to vector<4xf32>
    %217 = vector.shape_cast %216 : vector<4xf32> to vector<4x1xf32>
    %218 = vector.broadcast %217 : vector<4x1xf32> to vector<4x4xf32>
    %219 = arith.subf %215, %218 : vector<4x4xf32>
    %220 = math.exp %219 : vector<4x4xf32>
    %cst_131 = arith.constant dense<0.000000e+00> : vector<4xf32>
    %221 = vector.multi_reduction <add>, %220, %cst_131 [1] : vector<4x4xf32> to vector<4xf32>
    %222 = vector.shape_cast %221 : vector<4xf32> to vector<4x1xf32>
    %223 = tpu.reciprocal %222 {approx = true} : vector<4x1xf32> -> vector<4x1xf32>
    %224 = vector.broadcast %223 : vector<4x1xf32> to vector<4x4xf32>
    %225 = arith.mulf %220, %224 : vector<4x4xf32>
    %226 = arith.truncf %212 : vector<4x4xf32> to vector<4x4xbf16>
    %227 = arith.truncf %225 : vector<4x4xf32> to vector<4x4xbf16>
    %cst_132 = arith.constant dense<0.000000e+00> : vector<4x4xf32>
    %228 = tpu.matmul %226, %227, %cst_132 {dimension_numbers = #tpu.dot_dimension_numbers<[1], [1], [0], [0], [0, 0, 1, 0], [], []>} : vector<4x4xbf16>, vector<4x4xbf16>, vector<4x4xf32> -> vector<4x4xf32>
    %c0_133 = arith.constant 0 : index
    %c20_134 = arith.constant 20 : index
    %229 = vector.load %arg16[%c0_133, %c20_134] : memref<8x32xf32, #tpu.memory_space<vmem>>, vector<4x4xf32>
    tpu.vector_store %arg16[%c0_133, %c20_134], %228 {strides = array<i32>} : memref<8x32xf32, #tpu.memory_space<vmem>>, vector<4x4xf32>,
    %c4_135 = arith.constant 4 : index
    %c20_136 = arith.constant 20 : index
    %230 = vector.load %arg15[%c4_135, %c20_136] : memref<24x32xf32, #tpu.memory_space<vmem>>, vector<4x4xf32>
    %c12_137 = arith.constant 12 : index
    %c20_138 = arith.constant 20 : index
    %231 = vector.load %arg15[%c12_137, %c20_138] : memref<24x32xf32, #tpu.memory_space<vmem>>, vector<4x4xf32>
    %c20_139 = arith.constant 20 : index
    %c20_140 = arith.constant 20 : index
    %232 = vector.load %arg15[%c20_139, %c20_140] : memref<24x32xf32, #tpu.memory_space<vmem>>, vector<4x4xf32>
    %233 = arith.truncf %230 : vector<4x4xf32> to vector<4x4xbf16>
    %234 = arith.truncf %231 : vector<4x4xf32> to vector<4x4xbf16>
    %cst_141 = arith.constant dense<0.000000e+00> : vector<4x4xf32>
    %235 = tpu.matmul %233, %234, %cst_141 {dimension_numbers = #tpu.dot_dimension_numbers<[0], [0], [1], [1], [0, 1, 1, 1], [], []>} : vector<4x4xbf16>, vector<4x4xbf16>, vector<4x4xf32> -> vector<4x4xf32>
    %cst_142 = arith.constant dense<0xFF800000> : vector<4xf32>
    %236 = vector.multi_reduction <maximumf>, %235, %cst_142 [1] : vector<4x4xf32> to vector<4xf32>
    %237 = vector.shape_cast %236 : vector<4xf32> to vector<4x1xf32>
    %238 = vector.broadcast %237 : vector<4x1xf32> to vector<4x4xf32>
    %239 = arith.subf %235, %238 : vector<4x4xf32>
    %240 = math.exp %239 : vector<4x4xf32>
    %cst_143 = arith.constant dense<0.000000e+00> : vector<4xf32>
    %241 = vector.multi_reduction <add>, %240, %cst_143 [1] : vector<4x4xf32> to vector<4xf32>
    %242 = vector.shape_cast %241 : vector<4xf32> to vector<4x1xf32>
    %243 = tpu.reciprocal %242 {approx = true} : vector<4x1xf32> -> vector<4x1xf32>
    %244 = vector.broadcast %243 : vector<4x1xf32> to vector<4x4xf32>
    %245 = arith.mulf %240, %244 : vector<4x4xf32>
    %246 = arith.truncf %232 : vector<4x4xf32> to vector<4x4xbf16>
    %247 = arith.truncf %245 : vector<4x4xf32> to vector<4x4xbf16>
    %cst_144 = arith.constant dense<0.000000e+00> : vector<4x4xf32>
    %248 = tpu.matmul %246, %247, %cst_144 {dimension_numbers = #tpu.dot_dimension_numbers<[1], [1], [0], [0], [0, 0, 1, 0], [], []>} : vector<4x4xbf16>, vector<4x4xbf16>, vector<4x4xf32> -> vector<4x4xf32>
    %c4_145 = arith.constant 4 : index
    %c20_146 = arith.constant 20 : index
    %249 = vector.load %arg16[%c4_145, %c20_146] : memref<8x32xf32, #tpu.memory_space<vmem>>, vector<4x4xf32>
    tpu.vector_store %arg16[%c4_145, %c20_146], %248 {strides = array<i32>} : memref<8x32xf32, #tpu.memory_space<vmem>>, vector<4x4xf32>,
    %c0_147 = arith.constant 0 : index
    %c24 = arith.constant 24 : index
    %250 = vector.load %arg15[%c0_147, %c24] : memref<24x32xf32, #tpu.memory_space<vmem>>, vector<4x4xf32>
    %c8_148 = arith.constant 8 : index
    %c24_149 = arith.constant 24 : index
    %251 = vector.load %arg15[%c8_148, %c24_149] : memref<24x32xf32, #tpu.memory_space<vmem>>, vector<4x4xf32>
    %c16_150 = arith.constant 16 : index
    %c24_151 = arith.constant 24 : index
    %252 = vector.load %arg15[%c16_150, %c24_151] : memref<24x32xf32, #tpu.memory_space<vmem>>, vector<4x4xf32>
    %253 = arith.truncf %250 : vector<4x4xf32> to vector<4x4xbf16>
    %254 = arith.truncf %251 : vector<4x4xf32> to vector<4x4xbf16>
    %cst_152 = arith.constant dense<0.000000e+00> : vector<4x4xf32>
    %255 = tpu.matmul %253, %254, %cst_152 {dimension_numbers = #tpu.dot_dimension_numbers<[0], [0], [1], [1], [0, 1, 1, 1], [], []>} : vector<4x4xbf16>, vector<4x4xbf16>, vector<4x4xf32> -> vector<4x4xf32>
    %cst_153 = arith.constant dense<0xFF800000> : vector<4xf32>
    %256 = vector.multi_reduction <maximumf>, %255, %cst_153 [1] : vector<4x4xf32> to vector<4xf32>
    %257 = vector.shape_cast %256 : vector<4xf32> to vector<4x1xf32>
    %258 = vector.broadcast %257 : vector<4x1xf32> to vector<4x4xf32>
    %259 = arith.subf %255, %258 : vector<4x4xf32>
    %260 = math.exp %259 : vector<4x4xf32>
    %cst_154 = arith.constant dense<0.000000e+00> : vector<4xf32>
    %261 = vector.multi_reduction <add>, %260, %cst_154 [1] : vector<4x4xf32> to vector<4xf32>
    %262 = vector.shape_cast %261 : vector<4xf32> to vector<4x1xf32>
    %263 = tpu.reciprocal %262 {approx = true} : vector<4x1xf32> -> vector<4x1xf32>
    %264 = vector.broadcast %263 : vector<4x1xf32> to vector<4x4xf32>
    %265 = arith.mulf %260, %264 : vector<4x4xf32>
    %266 = arith.truncf %252 : vector<4x4xf32> to vector<4x4xbf16>
    %267 = arith.truncf %265 : vector<4x4xf32> to vector<4x4xbf16>
    %cst_155 = arith.constant dense<0.000000e+00> : vector<4x4xf32>
    %268 = tpu.matmul %266, %267, %cst_155 {dimension_numbers = #tpu.dot_dimension_numbers<[1], [1], [0], [0], [0, 0, 1, 0], [], []>} : vector<4x4xbf16>, vector<4x4xbf16>, vector<4x4xf32> -> vector<4x4xf32>
    %c0_156 = arith.constant 0 : index
    %c24_157 = arith.constant 24 : index
    %269 = vector.load %arg16[%c0_156, %c24_157] : memref<8x32xf32, #tpu.memory_space<vmem>>, vector<4x4xf32>
    tpu.vector_store %arg16[%c0_156, %c24_157], %268 {strides = array<i32>} : memref<8x32xf32, #tpu.memory_space<vmem>>, vector<4x4xf32>,
    %c4_158 = arith.constant 4 : index
    %c24_159 = arith.constant 24 : index
    %270 = vector.load %arg15[%c4_158, %c24_159] : memref<24x32xf32, #tpu.memory_space<vmem>>, vector<4x4xf32>
    %c12_160 = arith.constant 12 : index
    %c24_161 = arith.constant 24 : index
    %271 = vector.load %arg15[%c12_160, %c24_161] : memref<24x32xf32, #tpu.memory_space<vmem>>, vector<4x4xf32>
    %c20_162 = arith.constant 20 : index
    %c24_163 = arith.constant 24 : index
    %272 = vector.load %arg15[%c20_162, %c24_163] : memref<24x32xf32, #tpu.memory_space<vmem>>, vector<4x4xf32>
    %273 = arith.truncf %270 : vector<4x4xf32> to vector<4x4xbf16>
    %274 = arith.truncf %271 : vector<4x4xf32> to vector<4x4xbf16>
    %cst_164 = arith.constant dense<0.000000e+00> : vector<4x4xf32>
    %275 = tpu.matmul %273, %274, %cst_164 {dimension_numbers = #tpu.dot_dimension_numbers<[0], [0], [1], [1], [0, 1, 1, 1], [], []>} : vector<4x4xbf16>, vector<4x4xbf16>, vector<4x4xf32> -> vector<4x4xf32>
    %cst_165 = arith.constant dense<0xFF800000> : vector<4xf32>
    %276 = vector.multi_reduction <maximumf>, %275, %cst_165 [1] : vector<4x4xf32> to vector<4xf32>
    %277 = vector.shape_cast %276 : vector<4xf32> to vector<4x1xf32>
    %278 = vector.broadcast %277 : vector<4x1xf32> to vector<4x4xf32>
    %279 = arith.subf %275, %278 : vector<4x4xf32>
    %280 = math.exp %279 : vector<4x4xf32>
    %cst_166 = arith.constant dense<0.000000e+00> : vector<4xf32>
    %281 = vector.multi_reduction <add>, %280, %cst_166 [1] : vector<4x4xf32> to vector<4xf32>
    %282 = vector.shape_cast %281 : vector<4xf32> to vector<4x1xf32>
    %283 = tpu.reciprocal %282 {approx = true} : vector<4x1xf32> -> vector<4x1xf32>
    %284 = vector.broadcast %283 : vector<4x1xf32> to vector<4x4xf32>
    %285 = arith.mulf %280, %284 : vector<4x4xf32>
    %286 = arith.truncf %272 : vector<4x4xf32> to vector<4x4xbf16>
    %287 = arith.truncf %285 : vector<4x4xf32> to vector<4x4xbf16>
    %cst_167 = arith.constant dense<0.000000e+00> : vector<4x4xf32>
    %288 = tpu.matmul %286, %287, %cst_167 {dimension_numbers = #tpu.dot_dimension_numbers<[1], [1], [0], [0], [0, 0, 1, 0], [], []>} : vector<4x4xbf16>, vector<4x4xbf16>, vector<4x4xf32> -> vector<4x4xf32>
    %c4_168 = arith.constant 4 : index
    %c24_169 = arith.constant 24 : index
    %289 = vector.load %arg16[%c4_168, %c24_169] : memref<8x32xf32, #tpu.memory_space<vmem>>, vector<4x4xf32>
    tpu.vector_store %arg16[%c4_168, %c24_169], %288 {strides = array<i32>} : memref<8x32xf32, #tpu.memory_space<vmem>>, vector<4x4xf32>,
    %c0_170 = arith.constant 0 : index
    %c28 = arith.constant 28 : index
    %290 = vector.load %arg15[%c0_170, %c28] : memref<24x32xf32, #tpu.memory_space<vmem>>, vector<4x4xf32>
    %c8_171 = arith.constant 8 : index
    %c28_172 = arith.constant 28 : index
    %291 = vector.load %arg15[%c8_171, %c28_172] : memref<24x32xf32, #tpu.memory_space<vmem>>, vector<4x4xf32>
    %c16_173 = arith.constant 16 : index
    %c28_174 = arith.constant 28 : index
    %292 = vector.load %arg15[%c16_173, %c28_174] : memref<24x32xf32, #tpu.memory_space<vmem>>, vector<4x4xf32>
    %293 = arith.truncf %290 : vector<4x4xf32> to vector<4x4xbf16>
    %294 = arith.truncf %291 : vector<4x4xf32> to vector<4x4xbf16>
    %cst_175 = arith.constant dense<0.000000e+00> : vector<4x4xf32>
    %295 = tpu.matmul %293, %294, %cst_175 {dimension_numbers = #tpu.dot_dimension_numbers<[0], [0], [1], [1], [0, 1, 1, 1], [], []>} : vector<4x4xbf16>, vector<4x4xbf16>, vector<4x4xf32> -> vector<4x4xf32>
    %cst_176 = arith.constant dense<0xFF800000> : vector<4xf32>
    %296 = vector.multi_reduction <maximumf>, %295, %cst_176 [1] : vector<4x4xf32> to vector<4xf32>
    %297 = vector.shape_cast %296 : vector<4xf32> to vector<4x1xf32>
    %298 = vector.broadcast %297 : vector<4x1xf32> to vector<4x4xf32>
    %299 = arith.subf %295, %298 : vector<4x4xf32>
    %300 = math.exp %299 : vector<4x4xf32>
    %cst_177 = arith.constant dense<0.000000e+00> : vector<4xf32>
    %301 = vector.multi_reduction <add>, %300, %cst_177 [1] : vector<4x4xf32> to vector<4xf32>
    %302 = vector.shape_cast %301 : vector<4xf32> to vector<4x1xf32>
    %303 = tpu.reciprocal %302 {approx = true} : vector<4x1xf32> -> vector<4x1xf32>
    %304 = vector.broadcast %303 : vector<4x1xf32> to vector<4x4xf32>
    %305 = arith.mulf %300, %304 : vector<4x4xf32>
    %306 = arith.truncf %292 : vector<4x4xf32> to vector<4x4xbf16>
    %307 = arith.truncf %305 : vector<4x4xf32> to vector<4x4xbf16>
    %cst_178 = arith.constant dense<0.000000e+00> : vector<4x4xf32>
    %308 = tpu.matmul %306, %307, %cst_178 {dimension_numbers = #tpu.dot_dimension_numbers<[1], [1], [0], [0], [0, 0, 1, 0], [], []>} : vector<4x4xbf16>, vector<4x4xbf16>, vector<4x4xf32> -> vector<4x4xf32>
    %c0_179 = arith.constant 0 : index
    %c28_180 = arith.constant 28 : index
    %309 = vector.load %arg16[%c0_179, %c28_180] : memref<8x32xf32, #tpu.memory_space<vmem>>, vector<4x4xf32>
    tpu.vector_store %arg16[%c0_179, %c28_180], %308 {strides = array<i32>} : memref<8x32xf32, #tpu.memory_space<vmem>>, vector<4x4xf32>,
    %c4_181 = arith.constant 4 : index
    %c28_182 = arith.constant 28 : index
    %310 = vector.load %arg15[%c4_181, %c28_182] : memref<24x32xf32, #tpu.memory_space<vmem>>, vector<4x4xf32>
    %c12_183 = arith.constant 12 : index
    %c28_184 = arith.constant 28 : index
    %311 = vector.load %arg15[%c12_183, %c28_184] : memref<24x32xf32, #tpu.memory_space<vmem>>, vector<4x4xf32>
    %c20_185 = arith.constant 20 : index
    %c28_186 = arith.constant 28 : index
    %312 = vector.load %arg15[%c20_185, %c28_186] : memref<24x32xf32, #tpu.memory_space<vmem>>, vector<4x4xf32>
    %313 = arith.truncf %310 : vector<4x4xf32> to vector<4x4xbf16>
    %314 = arith.truncf %311 : vector<4x4xf32> to vector<4x4xbf16>
    %cst_187 = arith.constant dense<0.000000e+00> : vector<4x4xf32>
    %315 = tpu.matmul %313, %314, %cst_187 {dimension_numbers = #tpu.dot_dimension_numbers<[0], [0], [1], [1], [0, 1, 1, 1], [], []>} : vector<4x4xbf16>, vector<4x4xbf16>, vector<4x4xf32> -> vector<4x4xf32>
    %cst_188 = arith.constant dense<0xFF800000> : vector<4xf32>
    %316 = vector.multi_reduction <maximumf>, %315, %cst_188 [1] : vector<4x4xf32> to vector<4xf32>
    %317 = vector.shape_cast %316 : vector<4xf32> to vector<4x1xf32>
    %318 = vector.broadcast %317 : vector<4x1xf32> to vector<4x4xf32>
    %319 = arith.subf %315, %318 : vector<4x4xf32>
    %320 = math.exp %319 : vector<4x4xf32>
    %cst_189 = arith.constant dense<0.000000e+00> : vector<4xf32>
    %321 = vector.multi_reduction <add>, %320, %cst_189 [1] : vector<4x4xf32> to vector<4xf32>
    %322 = vector.shape_cast %321 : vector<4xf32> to vector<4x1xf32>
    %323 = tpu.reciprocal %322 {approx = true} : vector<4x1xf32> -> vector<4x1xf32>
    %324 = vector.broadcast %323 : vector<4x1xf32> to vector<4x4xf32>
    %325 = arith.mulf %320, %324 : vector<4x4xf32>
    %326 = arith.truncf %312 : vector<4x4xf32> to vector<4x4xbf16>
    %327 = arith.truncf %325 : vector<4x4xf32> to vector<4x4xbf16>
    %cst_190 = arith.constant dense<0.000000e+00> : vector<4x4xf32>
    %328 = tpu.matmul %326, %327, %cst_190 {dimension_numbers = #tpu.dot_dimension_numbers<[1], [1], [0], [0], [0, 0, 1, 0], [], []>} : vector<4x4xbf16>, vector<4x4xbf16>, vector<4x4xf32> -> vector<4x4xf32>
    %c4_191 = arith.constant 4 : index
    %c28_192 = arith.constant 28 : index
    %329 = vector.load %arg16[%c4_191, %c28_192] : memref<8x32xf32, #tpu.memory_space<vmem>>, vector<4x4xf32>
    tpu.vector_store %arg16[%c4_191, %c28_192], %328 {strides = array<i32>} : memref<8x32xf32, #tpu.memory_space<vmem>>, vector<4x4xf32>,
    %c0_193 = arith.constant 0 : index
    %c0_194 = arith.constant 0 : index
    %330 = vector.load %arg4[%c0_193, %c0_194] : memref<8x8xbf16, #tpu.memory_space<vmem>>, vector<8x8xbf16>
    %c0_195 = arith.constant 0 : index
    %c0_196 = arith.constant 0 : index
    %331 = vector.load %arg16[%c0_195, %c0_196] : memref<8x32xf32, #tpu.memory_space<vmem>>, vector<8x32xf32>
    %332 = arith.truncf %331 : vector<8x32xf32> to vector<8x32xbf16>
    %cst_197 = arith.constant dense<0.000000e+00> : vector<8x32xf32>
    %333 = tpu.matmul %330, %332, %cst_197 {dimension_numbers = #tpu.dot_dimension_numbers<[1], [0], [0], [1], [0, 0, 1, 1], [], []>} : vector<8x8xbf16>, vector<8x32xbf16>, vector<8x32xf32> -> vector<8x32xf32>
    %c0_198 = arith.constant 0 : index
    %c0_199 = arith.constant 0 : index
    %334 = vector.load %arg5[%c0_198, %c0_199] : memref<8x1xf32, #tpu.memory_space<vmem>>, vector<8x1xf32>
    %335 = vector.broadcast %334 : vector<8x1xf32> to vector<8x32xf32>
    %336 = arith.addf %333, %335 : vector<8x32xf32>
    %337 = arith.addf %2, %336 : vector<8x32xf32>
    %c0_200 = arith.constant 0 : index
    %c0_201 = arith.constant 0 : index
    %338 = vector.load %arg6[%c0_200, %c0_201] : memref<8x1xf32, #tpu.memory_space<vmem>>, vector<8x1xf32>
    %c0_202 = arith.constant 0 : index
    %c0_203 = arith.constant 0 : index
    %339 = vector.load %arg7[%c0_202, %c0_203] : memref<8x1xf32, #tpu.memory_space<vmem>>, vector<8x1xf32>
    %cst_204 = arith.constant dense<0.000000e+00> : vector<32xf32>
    %340 = vector.multi_reduction <add>, %337, %cst_204 [0] : vector<8x32xf32> to vector<32xf32>
    %341 = vector.shape_cast %340 : vector<32xf32> to vector<1x32xf32>
    %cst_205 = arith.constant 8.000000e+00 : f32
    %342 = vector.broadcast %cst_205 : f32 to vector<1x32xf32>
    %343 = arith.divf %341, %342 : vector<1x32xf32>
    %344 = vector.broadcast %343 : vector<1x32xf32> to vector<8x32xf32>
    %345 = arith.subf %337, %344 : vector<8x32xf32>
    %346 = arith.mulf %345, %345 : vector<8x32xf32>
    %cst_206 = arith.constant dense<0.000000e+00> : vector<32xf32>
    %347 = vector.multi_reduction <add>, %346, %cst_206 [0] : vector<8x32xf32> to vector<32xf32>
    %348 = vector.shape_cast %347 : vector<32xf32> to vector<1x32xf32>
    %cst_207 = arith.constant 8.000000e+00 : f32
    %349 = vector.broadcast %cst_207 : f32 to vector<1x32xf32>
    %350 = arith.divf %348, %349 : vector<1x32xf32>
    %351 = vector.broadcast %343 : vector<1x32xf32> to vector<8x32xf32>
    %352 = arith.subf %337, %351 : vector<8x32xf32>
    %cst_208 = arith.constant 9.99999974E-6 : f32
    %353 = vector.broadcast %cst_208 : f32 to vector<1x32xf32>
    %354 = arith.addf %350, %353 : vector<1x32xf32>
    %355 = math.rsqrt %354 : vector<1x32xf32>
    %356 = vector.broadcast %355 : vector<1x32xf32> to vector<8x32xf32>
    %357 = arith.mulf %352, %356 : vector<8x32xf32>
    %358 = vector.broadcast %338 : vector<8x1xf32> to vector<8x32xf32>
    %359 = arith.mulf %357, %358 : vector<8x32xf32>
    %360 = vector.broadcast %339 : vector<8x1xf32> to vector<8x32xf32>
    %361 = arith.addf %359, %360 : vector<8x32xf32>
    %c0_209 = arith.constant 0 : index
    %c0_210 = arith.constant 0 : index
    %362 = vector.load %arg8[%c0_209, %c0_210] : memref<64x8xbf16, #tpu.memory_space<vmem>>, vector<64x8xbf16>
    %363 = arith.truncf %361 : vector<8x32xf32> to vector<8x32xbf16>
    %cst_211 = arith.constant dense<0.000000e+00> : vector<64x32xf32>
    %364 = tpu.matmul %362, %363, %cst_211 {dimension_numbers = #tpu.dot_dimension_numbers<[1], [0], [0], [1], [0, 0, 1, 1], [], []>} : vector<64x8xbf16>, vector<8x32xbf16>, vector<64x32xf32> -> vector<64x32xf32>
    %c0_212 = arith.constant 0 : index
    %c0_213 = arith.constant 0 : index
    %365 = vector.load %arg9[%c0_212, %c0_213] : memref<64x1xf32, #tpu.memory_space<vmem>>, vector<64x1xf32>
    %366 = vector.broadcast %365 : vector<64x1xf32> to vector<64x32xf32>
    %367 = arith.addf %364, %366 : vector<64x32xf32>
    %cst_214 = arith.constant 5.000000e-01 : f32
    %368 = vector.broadcast %cst_214 : f32 to vector<64x32xf32>
    %369 = arith.mulf %368, %367 : vector<64x32xf32>
    %cst_215 = arith.constant 0.707106769 : f32
    %370 = vector.broadcast %cst_215 : f32 to vector<64x32xf32>
    %371 = arith.mulf %367, %370 : vector<64x32xf32>
    %372 = math.erf %371 : vector<64x32xf32>
    %cst_216 = arith.constant 1.000000e+00 : f32
    %373 = vector.broadcast %cst_216 : f32 to vector<64x32xf32>
    %374 = arith.addf %373, %372 : vector<64x32xf32>
    %375 = arith.mulf %369, %374 : vector<64x32xf32>
    %c0_217 = arith.constant 0 : index
    %c0_218 = arith.constant 0 : index
    %376 = vector.load %arg10[%c0_217, %c0_218] : memref<8x64xbf16, #tpu.memory_space<vmem>>, vector<8x64xbf16>
    %377 = arith.truncf %375 : vector<64x32xf32> to vector<64x32xbf16>
    %cst_219 = arith.constant dense<0.000000e+00> : vector<8x32xf32>
    %378 = tpu.matmul %376, %377, %cst_219 {dimension_numbers = #tpu.dot_dimension_numbers<[1], [0], [0], [1], [0, 0, 1, 1], [], []>} : vector<8x64xbf16>, vector<64x32xbf16>, vector<8x32xf32> -> vector<8x32xf32>
    %c0_220 = arith.constant 0 : index
    %c0_221 = arith.constant 0 : index
    %379 = vector.load %arg11[%c0_220, %c0_221] : memref<8x1xf32, #tpu.memory_space<vmem>>, vector<8x1xf32>
    %380 = vector.broadcast %379 : vector<8x1xf32> to vector<8x32xf32>
    %381 = arith.addf %378, %380 : vector<8x32xf32>
    %382 = arith.addf %361, %381 : vector<8x32xf32>
    %c0_222 = arith.constant 0 : index
    %c0_223 = arith.constant 0 : index
    %383 = vector.load %arg12[%c0_222, %c0_223] : memref<8x1xf32, #tpu.memory_space<vmem>>, vector<8x1xf32>
    %c0_224 = arith.constant 0 : index
    %c0_225 = arith.constant 0 : index
    %384 = vector.load %arg13[%c0_224, %c0_225] : memref<8x1xf32, #tpu.memory_space<vmem>>, vector<8x1xf32>
    %cst_226 = arith.constant dense<0.000000e+00> : vector<32xf32>
    %385 = vector.multi_reduction <add>, %382, %cst_226 [0] : vector<8x32xf32> to vector<32xf32>
    %386 = vector.shape_cast %385 : vector<32xf32> to vector<1x32xf32>
    %cst_227 = arith.constant 8.000000e+00 : f32
    %387 = vector.broadcast %cst_227 : f32 to vector<1x32xf32>
    %388 = arith.divf %386, %387 : vector<1x32xf32>
    %389 = vector.broadcast %388 : vector<1x32xf32> to vector<8x32xf32>
    %390 = arith.subf %382, %389 : vector<8x32xf32>
    %391 = arith.mulf %390, %390 : vector<8x32xf32>
    %cst_228 = arith.constant dense<0.000000e+00> : vector<32xf32>
    %392 = vector.multi_reduction <add>, %391, %cst_228 [0] : vector<8x32xf32> to vector<32xf32>
    %393 = vector.shape_cast %392 : vector<32xf32> to vector<1x32xf32>
    %cst_229 = arith.constant 8.000000e+00 : f32
    %394 = vector.broadcast %cst_229 : f32 to vector<1x32xf32>
    %395 = arith.divf %393, %394 : vector<1x32xf32>
    %396 = vector.broadcast %388 : vector<1x32xf32> to vector<8x32xf32>
    %397 = arith.subf %382, %396 : vector<8x32xf32>
    %cst_230 = arith.constant 9.99999974E-6 : f32
    %398 = vector.broadcast %cst_230 : f32 to vector<1x32xf32>
    %399 = arith.addf %395, %398 : vector<1x32xf32>
    %400 = math.rsqrt %399 : vector<1x32xf32>
    %401 = vector.broadcast %400 : vector<1x32xf32> to vector<8x32xf32>
    %402 = arith.mulf %397, %401 : vector<8x32xf32>
    %403 = vector.broadcast %383 : vector<8x1xf32> to vector<8x32xf32>
    %404 = arith.mulf %402, %403 : vector<8x32xf32>
    %405 = vector.broadcast %384 : vector<8x1xf32> to vector<8x32xf32>
    %406 = arith.addf %404, %405 : vector<8x32xf32>
    %407 = arith.truncf %406 : vector<8x32xf32> to vector<8x32xbf16>
    %c0_231 = arith.constant 0 : index
    %c0_232 = arith.constant 0 : index
    %c0_233 = arith.constant 0 : index
    %408 = vector.load %arg14[%c0_231, %c0_232, %c0_233] : memref<1x8x32xbf16, #tpu.memory_space<vmem>>, vector<1x8x32xbf16>
    %409 = vector.shape_cast %408 : vector<1x8x32xbf16> to vector<8x32xbf16>
    %410 = vector.shape_cast %407 : vector<8x32xbf16> to vector<1x8x32xbf16>
    tpu.vector_store %arg14[%c0_231, %c0_232, %c0_233], %410 {strides = array<i32>} : memref<1x8x32xbf16, #tpu.memory_space<vmem>>, vector<1x8x32xbf16>,
    return
  }
  func.func @transform_0(%arg0: i32) -> (i32, i32, i32) {
    %c0_i32 = arith.constant 0 : i32
    %c0_i32_0 = arith.constant 0 : i32
    %c0_i32_1 = arith.constant 0 : i32
    return %arg0, %c0_i32, %c0_i32_0 : i32, i32, i32
  }
  func.func @transform_1(%arg0: i32) -> (i32, i32) {
    %c0_i32 = arith.constant 0 : i32
    %c0_i32_0 = arith.constant 0 : i32
    %c0_i32_1 = arith.constant 0 : i32
    return %c0_i32, %c0_i32_0 : i32, i32
  }
  func.func @transform_2(%arg0: i32) -> (i32, i32) {
    %c0_i32 = arith.constant 0 : i32
    %c0_i32_0 = arith.constant 0 : i32
    %c0_i32_1 = arith.constant 0 : i32
    return %c0_i32, %c0_i32_0 : i32, i32
  }
  func.func @transform_3(%arg0: i32) -> (i32, i32) {
    %c0_i32 = arith.constant 0 : i32
    %c0_i32_0 = arith.constant 0 : i32
    %c0_i32_1 = arith.constant 0 : i32
    return %c0_i32, %c0_i32_0 : i32, i32
  }
  func.func @transform_4(%arg0: i32) -> (i32, i32) {
    %c0_i32 = arith.constant 0 : i32
    %c0_i32_0 = arith.constant 0 : i32
    %c0_i32_1 = arith.constant 0 : i32
    return %c0_i32, %c0_i32_0 : i32, i32
  }
  func.func @transform_5(%arg0: i32) -> (i32, i32) {
    %c0_i32 = arith.constant 0 : i32
    %c0_i32_0 = arith.constant 0 : i32
    %c0_i32_1 = arith.constant 0 : i32
    return %c0_i32, %c0_i32_0 : i32, i32
  }
  func.func @transform_6(%arg0: i32) -> (i32, i32) {
    %c0_i32 = arith.constant 0 : i32
    %c0_i32_0 = arith.constant 0 : i32
    %c0_i32_1 = arith.constant 0 : i32
    return %c0_i32, %c0_i32_0 : i32, i32
  }
  func.func @transform_7(%arg0: i32) -> (i32, i32) {
    %c0_i32 = arith.constant 0 : i32
    %c0_i32_0 = arith.constant 0 : i32
    %c0_i32_1 = arith.constant 0 : i32
    return %c0_i32, %c0_i32_0 : i32, i32
  }
  func.func @transform_8(%arg0: i32) -> (i32, i32) {
    %c0_i32 = arith.constant 0 : i32
    %c0_i32_0 = arith.constant 0 : i32
    %c0_i32_1 = arith.constant 0 : i32
    return %c0_i32, %c0_i32_0 : i32, i32
  }
  func.func @transform_9(%arg0: i32) -> (i32, i32) {
    %c0_i32 = arith.constant 0 : i32
    %c0_i32_0 = arith.constant 0 : i32
    %c0_i32_1 = arith.constant 0 : i32
    return %c0_i32, %c0_i32_0 : i32, i32
  }
  func.func @transform_10(%arg0: i32) -> (i32, i32) {
    %c0_i32 = arith.constant 0 : i32
    %c0_i32_0 = arith.constant 0 : i32
    %c0_i32_1 = arith.constant 0 : i32
    return %c0_i32, %c0_i32_0 : i32, i32
  }
  func.func @transform_11(%arg0: i32) -> (i32, i32) {
    %c0_i32 = arith.constant 0 : i32
    %c0_i32_0 = arith.constant 0 : i32
    %c0_i32_1 = arith.constant 0 : i32
    return %c0_i32, %c0_i32_0 : i32, i32
  }
  func.func @transform_12(%arg0: i32) -> (i32, i32) {
    %c0_i32 = arith.constant 0 : i32
    %c0_i32_0 = arith.constant 0 : i32
    %c0_i32_1 = arith.constant 0 : i32
    return %c0_i32, %c0_i32_0 : i32, i32
  }
  func.func @transform_13(%arg0: i32) -> (i32, i32, i32) {
    %c0_i32 = arith.constant 0 : i32
    %c0_i32_0 = arith.constant 0 : i32
    %c0_i32_1 = arith.constant 0 : i32
    return %arg0, %c0_i32, %c0_i32_0 : i32, i32, i32
  }
}

module attributes {stable_mosaic.version = 11 : i64} {
  func.func @_encoder_layer_kernel(%arg0: i32, %arg1: memref<1x8x32xf32, #tpu.memory_space<vmem>>, %arg2: memref<24x8xbf16, #tpu.memory_space<vmem>>, %arg3: memref<24x1xf32, #tpu.memory_space<vmem>>, %arg4: memref<8x8xbf16, #tpu.memory_space<vmem>>, %arg5: memref<8x1xf32, #tpu.memory_space<vmem>>, %arg6: memref<8x1xf32, #tpu.memory_space<vmem>>, %arg7: memref<8x1xf32, #tpu.memory_space<vmem>>, %arg8: memref<64x8xbf16, #tpu.memory_space<vmem>>, %arg9: memref<64x1xf32, #tpu.memory_space<vmem>>, %arg10: memref<8x64xbf16, #tpu.memory_space<vmem>>, %arg11: memref<8x1xf32, #tpu.memory_space<vmem>>, %arg12: memref<8x1xf32, #tpu.memory_space<vmem>>, %arg13: memref<8x1xf32, #tpu.memory_space<vmem>>, %arg14: memref<1x8x32xbf16, #tpu.memory_space<vmem>>, %arg15: memref<24x32xf32, #tpu.memory_space<vmem>>, %arg16: memref<8x32xf32, #tpu.memory_space<vmem>>) attributes {dimension_semantics = [#tpu.dimension_semantics<parallel>], iteration_bounds = array<i64: 2>, scalar_prefetch = 0 : i64, scratch_operands = 2 : i64, tpu.core_type = #tpu.core_type<tc>, window_params = [{transform_indices = @transform_0, window_bounds = array<i64: 1, 8, 32>}, {pipeline_mode = #tpu.pipeline_mode<synchronous>, transform_indices = @transform_1, window_bounds = array<i64: 24, 8>}, {pipeline_mode = #tpu.pipeline_mode<synchronous>, transform_indices = @transform_2, window_bounds = array<i64: 24, 1>}, {pipeline_mode = #tpu.pipeline_mode<synchronous>, transform_indices = @transform_3, window_bounds = array<i64: 8, 8>}, {pipeline_mode = #tpu.pipeline_mode<synchronous>, transform_indices = @transform_4, window_bounds = array<i64: 8, 1>}, {pipeline_mode = #tpu.pipeline_mode<synchronous>, transform_indices = @transform_5, window_bounds = array<i64: 8, 1>}, {pipeline_mode = #tpu.pipeline_mode<synchronous>, transform_indices = @transform_6, window_bounds = array<i64: 8, 1>}, {pipeline_mode = #tpu.pipeline_mode<synchronous>, transform_indices = @transform_7, window_bounds = array<i64: 64, 8>}, {pipeline_mode = #tpu.pipeline_mode<synchronous>, transform_indices = @transform_8, window_bounds = array<i64: 64, 1>}, {pipeline_mode = #tpu.pipeline_mode<synchronous>, transform_indices = @transform_9, window_bounds = array<i64: 8, 64>}, {pipeline_mode = #tpu.pipeline_mode<synchronous>, transform_indices = @transform_10, window_bounds = array<i64: 8, 1>}, {pipeline_mode = #tpu.pipeline_mode<synchronous>, transform_indices = @transform_11, window_bounds = array<i64: 8, 1>}, {pipeline_mode = #tpu.pipeline_mode<synchronous>, transform_indices = @transform_12, window_bounds = array<i64: 8, 1>}, {transform_indices = @transform_13, window_bounds = array<i64: 1, 8, 32>}]} {
    %c0 = arith.constant 0 : index
    %c0_0 = arith.constant 0 : index
    %c0_1 = arith.constant 0 : index
    %0 = vector.load %arg1[%c0, %c0_0, %c0_1] : memref<1x8x32xf32, #tpu.memory_space<vmem>>, vector<1x8x32xf32>
    %1 = vector.shape_cast %0 : vector<1x8x32xf32> to vector<8x32xf32>
    %c0_2 = arith.constant 0 : index
    %c0_3 = arith.constant 0 : index
    %2 = vector.load %arg2[%c0_2, %c0_3] : memref<24x8xbf16, #tpu.memory_space<vmem>>, vector<24x8xbf16>
    %3 = arith.truncf %1 : vector<8x32xf32> to vector<8x32xbf16>
    %cst = arith.constant dense<0.000000e+00> : vector<24x32xf32>
    %4 = tpu.matmul %2, %3, %cst {dimension_numbers = #tpu.dot_dimension_numbers<[1], [0], [0], [1], [0, 0, 1, 1], [], []>} : vector<24x8xbf16>, vector<8x32xbf16>, vector<24x32xf32> -> vector<24x32xf32>
    %c0_4 = arith.constant 0 : index
    %c0_5 = arith.constant 0 : index
    %5 = vector.load %arg3[%c0_4, %c0_5] : memref<24x1xf32, #tpu.memory_space<vmem>>, vector<24x1xf32>
    %6 = vector.broadcast %5 : vector<24x1xf32> to vector<24x32xf32>
    %7 = arith.addf %4, %6 : vector<24x32xf32>
    %c0_6 = arith.constant 0 : index
    %c0_7 = arith.constant 0 : index
    %8 = vector.load %arg15[%c0_6, %c0_7] : memref<24x32xf32, #tpu.memory_space<vmem>>, vector<24x32xf32>
    tpu.vector_store %arg15[%c0_6, %c0_7], %7 {strides = array<i32>} : memref<24x32xf32, #tpu.memory_space<vmem>>, vector<24x32xf32>,
    %c0_8 = arith.constant 0 : index
    %c0_9 = arith.constant 0 : index
    %9 = vector.load %arg15[%c0_8, %c0_9] : memref<24x32xf32, #tpu.memory_space<vmem>>, vector<4x8xf32>
    %c8 = arith.constant 8 : index
    %c0_10 = arith.constant 0 : index
    %10 = vector.load %arg15[%c8, %c0_10] : memref<24x32xf32, #tpu.memory_space<vmem>>, vector<4x8xf32>
    %c16 = arith.constant 16 : index
    %c0_11 = arith.constant 0 : index
    %11 = vector.load %arg15[%c16, %c0_11] : memref<24x32xf32, #tpu.memory_space<vmem>>, vector<4x8xf32>
    %12 = arith.truncf %9 : vector<4x8xf32> to vector<4x8xbf16>
    %13 = arith.truncf %10 : vector<4x8xf32> to vector<4x8xbf16>
    %cst_12 = arith.constant dense<0.000000e+00> : vector<8x8xf32>
    %14 = tpu.matmul %12, %13, %cst_12 {dimension_numbers = #tpu.dot_dimension_numbers<[0], [0], [1], [1], [0, 1, 1, 1], [], []>} : vector<4x8xbf16>, vector<4x8xbf16>, vector<8x8xf32> -> vector<8x8xf32>
    %cst_13 = arith.constant dense<0xFF800000> : vector<8xf32>
    %15 = vector.multi_reduction <maximumf>, %14, %cst_13 [1] : vector<8x8xf32> to vector<8xf32>
    %16 = vector.shape_cast %15 : vector<8xf32> to vector<8x1xf32>
    %17 = vector.broadcast %16 : vector<8x1xf32> to vector<8x8xf32>
    %18 = arith.subf %14, %17 : vector<8x8xf32>
    %19 = math.exp %18 : vector<8x8xf32>
    %cst_14 = arith.constant dense<0.000000e+00> : vector<8xf32>
    %20 = vector.multi_reduction <add>, %19, %cst_14 [1] : vector<8x8xf32> to vector<8xf32>
    %21 = vector.shape_cast %20 : vector<8xf32> to vector<8x1xf32>
    %22 = tpu.reciprocal %21 {approx = true} : vector<8x1xf32> -> vector<8x1xf32>
    %23 = vector.broadcast %22 : vector<8x1xf32> to vector<8x8xf32>
    %24 = arith.mulf %19, %23 : vector<8x8xf32>
    %25 = arith.truncf %11 : vector<4x8xf32> to vector<4x8xbf16>
    %26 = arith.truncf %24 : vector<8x8xf32> to vector<8x8xbf16>
    %cst_15 = arith.constant dense<0.000000e+00> : vector<4x8xf32>
    %27 = tpu.matmul %25, %26, %cst_15 {dimension_numbers = #tpu.dot_dimension_numbers<[1], [1], [0], [0], [0, 0, 1, 0], [], []>} : vector<4x8xbf16>, vector<8x8xbf16>, vector<4x8xf32> -> vector<4x8xf32>
    %c0_16 = arith.constant 0 : index
    %c0_17 = arith.constant 0 : index
    %28 = vector.load %arg16[%c0_16, %c0_17] : memref<8x32xf32, #tpu.memory_space<vmem>>, vector<4x8xf32>
    tpu.vector_store %arg16[%c0_16, %c0_17], %27 {strides = array<i32>} : memref<8x32xf32, #tpu.memory_space<vmem>>, vector<4x8xf32>,
    %c4 = arith.constant 4 : index
    %c0_18 = arith.constant 0 : index
    %29 = vector.load %arg15[%c4, %c0_18] : memref<24x32xf32, #tpu.memory_space<vmem>>, vector<4x8xf32>
    %c12 = arith.constant 12 : index
    %c0_19 = arith.constant 0 : index
    %30 = vector.load %arg15[%c12, %c0_19] : memref<24x32xf32, #tpu.memory_space<vmem>>, vector<4x8xf32>
    %c20 = arith.constant 20 : index
    %c0_20 = arith.constant 0 : index
    %31 = vector.load %arg15[%c20, %c0_20] : memref<24x32xf32, #tpu.memory_space<vmem>>, vector<4x8xf32>
    %32 = arith.truncf %29 : vector<4x8xf32> to vector<4x8xbf16>
    %33 = arith.truncf %30 : vector<4x8xf32> to vector<4x8xbf16>
    %cst_21 = arith.constant dense<0.000000e+00> : vector<8x8xf32>
    %34 = tpu.matmul %32, %33, %cst_21 {dimension_numbers = #tpu.dot_dimension_numbers<[0], [0], [1], [1], [0, 1, 1, 1], [], []>} : vector<4x8xbf16>, vector<4x8xbf16>, vector<8x8xf32> -> vector<8x8xf32>
    %cst_22 = arith.constant dense<0xFF800000> : vector<8xf32>
    %35 = vector.multi_reduction <maximumf>, %34, %cst_22 [1] : vector<8x8xf32> to vector<8xf32>
    %36 = vector.shape_cast %35 : vector<8xf32> to vector<8x1xf32>
    %37 = vector.broadcast %36 : vector<8x1xf32> to vector<8x8xf32>
    %38 = arith.subf %34, %37 : vector<8x8xf32>
    %39 = math.exp %38 : vector<8x8xf32>
    %cst_23 = arith.constant dense<0.000000e+00> : vector<8xf32>
    %40 = vector.multi_reduction <add>, %39, %cst_23 [1] : vector<8x8xf32> to vector<8xf32>
    %41 = vector.shape_cast %40 : vector<8xf32> to vector<8x1xf32>
    %42 = tpu.reciprocal %41 {approx = true} : vector<8x1xf32> -> vector<8x1xf32>
    %43 = vector.broadcast %42 : vector<8x1xf32> to vector<8x8xf32>
    %44 = arith.mulf %39, %43 : vector<8x8xf32>
    %45 = arith.truncf %31 : vector<4x8xf32> to vector<4x8xbf16>
    %46 = arith.truncf %44 : vector<8x8xf32> to vector<8x8xbf16>
    %cst_24 = arith.constant dense<0.000000e+00> : vector<4x8xf32>
    %47 = tpu.matmul %45, %46, %cst_24 {dimension_numbers = #tpu.dot_dimension_numbers<[1], [1], [0], [0], [0, 0, 1, 0], [], []>} : vector<4x8xbf16>, vector<8x8xbf16>, vector<4x8xf32> -> vector<4x8xf32>
    %c4_25 = arith.constant 4 : index
    %c0_26 = arith.constant 0 : index
    %48 = vector.load %arg16[%c4_25, %c0_26] : memref<8x32xf32, #tpu.memory_space<vmem>>, vector<4x8xf32>
    tpu.vector_store %arg16[%c4_25, %c0_26], %47 {strides = array<i32>} : memref<8x32xf32, #tpu.memory_space<vmem>>, vector<4x8xf32>,
    %c0_27 = arith.constant 0 : index
    %c8_28 = arith.constant 8 : index
    %49 = vector.load %arg15[%c0_27, %c8_28] : memref<24x32xf32, #tpu.memory_space<vmem>>, vector<4x8xf32>
    %c8_29 = arith.constant 8 : index
    %c8_30 = arith.constant 8 : index
    %50 = vector.load %arg15[%c8_29, %c8_30] : memref<24x32xf32, #tpu.memory_space<vmem>>, vector<4x8xf32>
    %c16_31 = arith.constant 16 : index
    %c8_32 = arith.constant 8 : index
    %51 = vector.load %arg15[%c16_31, %c8_32] : memref<24x32xf32, #tpu.memory_space<vmem>>, vector<4x8xf32>
    %52 = arith.truncf %49 : vector<4x8xf32> to vector<4x8xbf16>
    %53 = arith.truncf %50 : vector<4x8xf32> to vector<4x8xbf16>
    %cst_33 = arith.constant dense<0.000000e+00> : vector<8x8xf32>
    %54 = tpu.matmul %52, %53, %cst_33 {dimension_numbers = #tpu.dot_dimension_numbers<[0], [0], [1], [1], [0, 1, 1, 1], [], []>} : vector<4x8xbf16>, vector<4x8xbf16>, vector<8x8xf32> -> vector<8x8xf32>
    %cst_34 = arith.constant dense<0xFF800000> : vector<8xf32>
    %55 = vector.multi_reduction <maximumf>, %54, %cst_34 [1] : vector<8x8xf32> to vector<8xf32>
    %56 = vector.shape_cast %55 : vector<8xf32> to vector<8x1xf32>
    %57 = vector.broadcast %56 : vector<8x1xf32> to vector<8x8xf32>
    %58 = arith.subf %54, %57 : vector<8x8xf32>
    %59 = math.exp %58 : vector<8x8xf32>
    %cst_35 = arith.constant dense<0.000000e+00> : vector<8xf32>
    %60 = vector.multi_reduction <add>, %59, %cst_35 [1] : vector<8x8xf32> to vector<8xf32>
    %61 = vector.shape_cast %60 : vector<8xf32> to vector<8x1xf32>
    %62 = tpu.reciprocal %61 {approx = true} : vector<8x1xf32> -> vector<8x1xf32>
    %63 = vector.broadcast %62 : vector<8x1xf32> to vector<8x8xf32>
    %64 = arith.mulf %59, %63 : vector<8x8xf32>
    %65 = arith.truncf %51 : vector<4x8xf32> to vector<4x8xbf16>
    %66 = arith.truncf %64 : vector<8x8xf32> to vector<8x8xbf16>
    %cst_36 = arith.constant dense<0.000000e+00> : vector<4x8xf32>
    %67 = tpu.matmul %65, %66, %cst_36 {dimension_numbers = #tpu.dot_dimension_numbers<[1], [1], [0], [0], [0, 0, 1, 0], [], []>} : vector<4x8xbf16>, vector<8x8xbf16>, vector<4x8xf32> -> vector<4x8xf32>
    %c0_37 = arith.constant 0 : index
    %c8_38 = arith.constant 8 : index
    %68 = vector.load %arg16[%c0_37, %c8_38] : memref<8x32xf32, #tpu.memory_space<vmem>>, vector<4x8xf32>
    tpu.vector_store %arg16[%c0_37, %c8_38], %67 {strides = array<i32>} : memref<8x32xf32, #tpu.memory_space<vmem>>, vector<4x8xf32>,
    %c4_39 = arith.constant 4 : index
    %c8_40 = arith.constant 8 : index
    %69 = vector.load %arg15[%c4_39, %c8_40] : memref<24x32xf32, #tpu.memory_space<vmem>>, vector<4x8xf32>
    %c12_41 = arith.constant 12 : index
    %c8_42 = arith.constant 8 : index
    %70 = vector.load %arg15[%c12_41, %c8_42] : memref<24x32xf32, #tpu.memory_space<vmem>>, vector<4x8xf32>
    %c20_43 = arith.constant 20 : index
    %c8_44 = arith.constant 8 : index
    %71 = vector.load %arg15[%c20_43, %c8_44] : memref<24x32xf32, #tpu.memory_space<vmem>>, vector<4x8xf32>
    %72 = arith.truncf %69 : vector<4x8xf32> to vector<4x8xbf16>
    %73 = arith.truncf %70 : vector<4x8xf32> to vector<4x8xbf16>
    %cst_45 = arith.constant dense<0.000000e+00> : vector<8x8xf32>
    %74 = tpu.matmul %72, %73, %cst_45 {dimension_numbers = #tpu.dot_dimension_numbers<[0], [0], [1], [1], [0, 1, 1, 1], [], []>} : vector<4x8xbf16>, vector<4x8xbf16>, vector<8x8xf32> -> vector<8x8xf32>
    %cst_46 = arith.constant dense<0xFF800000> : vector<8xf32>
    %75 = vector.multi_reduction <maximumf>, %74, %cst_46 [1] : vector<8x8xf32> to vector<8xf32>
    %76 = vector.shape_cast %75 : vector<8xf32> to vector<8x1xf32>
    %77 = vector.broadcast %76 : vector<8x1xf32> to vector<8x8xf32>
    %78 = arith.subf %74, %77 : vector<8x8xf32>
    %79 = math.exp %78 : vector<8x8xf32>
    %cst_47 = arith.constant dense<0.000000e+00> : vector<8xf32>
    %80 = vector.multi_reduction <add>, %79, %cst_47 [1] : vector<8x8xf32> to vector<8xf32>
    %81 = vector.shape_cast %80 : vector<8xf32> to vector<8x1xf32>
    %82 = tpu.reciprocal %81 {approx = true} : vector<8x1xf32> -> vector<8x1xf32>
    %83 = vector.broadcast %82 : vector<8x1xf32> to vector<8x8xf32>
    %84 = arith.mulf %79, %83 : vector<8x8xf32>
    %85 = arith.truncf %71 : vector<4x8xf32> to vector<4x8xbf16>
    %86 = arith.truncf %84 : vector<8x8xf32> to vector<8x8xbf16>
    %cst_48 = arith.constant dense<0.000000e+00> : vector<4x8xf32>
    %87 = tpu.matmul %85, %86, %cst_48 {dimension_numbers = #tpu.dot_dimension_numbers<[1], [1], [0], [0], [0, 0, 1, 0], [], []>} : vector<4x8xbf16>, vector<8x8xbf16>, vector<4x8xf32> -> vector<4x8xf32>
    %c4_49 = arith.constant 4 : index
    %c8_50 = arith.constant 8 : index
    %88 = vector.load %arg16[%c4_49, %c8_50] : memref<8x32xf32, #tpu.memory_space<vmem>>, vector<4x8xf32>
    tpu.vector_store %arg16[%c4_49, %c8_50], %87 {strides = array<i32>} : memref<8x32xf32, #tpu.memory_space<vmem>>, vector<4x8xf32>,
    %c0_51 = arith.constant 0 : index
    %c16_52 = arith.constant 16 : index
    %89 = vector.load %arg15[%c0_51, %c16_52] : memref<24x32xf32, #tpu.memory_space<vmem>>, vector<4x8xf32>
    %c8_53 = arith.constant 8 : index
    %c16_54 = arith.constant 16 : index
    %90 = vector.load %arg15[%c8_53, %c16_54] : memref<24x32xf32, #tpu.memory_space<vmem>>, vector<4x8xf32>
    %c16_55 = arith.constant 16 : index
    %c16_56 = arith.constant 16 : index
    %91 = vector.load %arg15[%c16_55, %c16_56] : memref<24x32xf32, #tpu.memory_space<vmem>>, vector<4x8xf32>
    %92 = arith.truncf %89 : vector<4x8xf32> to vector<4x8xbf16>
    %93 = arith.truncf %90 : vector<4x8xf32> to vector<4x8xbf16>
    %cst_57 = arith.constant dense<0.000000e+00> : vector<8x8xf32>
    %94 = tpu.matmul %92, %93, %cst_57 {dimension_numbers = #tpu.dot_dimension_numbers<[0], [0], [1], [1], [0, 1, 1, 1], [], []>} : vector<4x8xbf16>, vector<4x8xbf16>, vector<8x8xf32> -> vector<8x8xf32>
    %cst_58 = arith.constant dense<0xFF800000> : vector<8xf32>
    %95 = vector.multi_reduction <maximumf>, %94, %cst_58 [1] : vector<8x8xf32> to vector<8xf32>
    %96 = vector.shape_cast %95 : vector<8xf32> to vector<8x1xf32>
    %97 = vector.broadcast %96 : vector<8x1xf32> to vector<8x8xf32>
    %98 = arith.subf %94, %97 : vector<8x8xf32>
    %99 = math.exp %98 : vector<8x8xf32>
    %cst_59 = arith.constant dense<0.000000e+00> : vector<8xf32>
    %100 = vector.multi_reduction <add>, %99, %cst_59 [1] : vector<8x8xf32> to vector<8xf32>
    %101 = vector.shape_cast %100 : vector<8xf32> to vector<8x1xf32>
    %102 = tpu.reciprocal %101 {approx = true} : vector<8x1xf32> -> vector<8x1xf32>
    %103 = vector.broadcast %102 : vector<8x1xf32> to vector<8x8xf32>
    %104 = arith.mulf %99, %103 : vector<8x8xf32>
    %105 = arith.truncf %91 : vector<4x8xf32> to vector<4x8xbf16>
    %106 = arith.truncf %104 : vector<8x8xf32> to vector<8x8xbf16>
    %cst_60 = arith.constant dense<0.000000e+00> : vector<4x8xf32>
    %107 = tpu.matmul %105, %106, %cst_60 {dimension_numbers = #tpu.dot_dimension_numbers<[1], [1], [0], [0], [0, 0, 1, 0], [], []>} : vector<4x8xbf16>, vector<8x8xbf16>, vector<4x8xf32> -> vector<4x8xf32>
    %c0_61 = arith.constant 0 : index
    %c16_62 = arith.constant 16 : index
    %108 = vector.load %arg16[%c0_61, %c16_62] : memref<8x32xf32, #tpu.memory_space<vmem>>, vector<4x8xf32>
    tpu.vector_store %arg16[%c0_61, %c16_62], %107 {strides = array<i32>} : memref<8x32xf32, #tpu.memory_space<vmem>>, vector<4x8xf32>,
    %c4_63 = arith.constant 4 : index
    %c16_64 = arith.constant 16 : index
    %109 = vector.load %arg15[%c4_63, %c16_64] : memref<24x32xf32, #tpu.memory_space<vmem>>, vector<4x8xf32>
    %c12_65 = arith.constant 12 : index
    %c16_66 = arith.constant 16 : index
    %110 = vector.load %arg15[%c12_65, %c16_66] : memref<24x32xf32, #tpu.memory_space<vmem>>, vector<4x8xf32>
    %c20_67 = arith.constant 20 : index
    %c16_68 = arith.constant 16 : index
    %111 = vector.load %arg15[%c20_67, %c16_68] : memref<24x32xf32, #tpu.memory_space<vmem>>, vector<4x8xf32>
    %112 = arith.truncf %109 : vector<4x8xf32> to vector<4x8xbf16>
    %113 = arith.truncf %110 : vector<4x8xf32> to vector<4x8xbf16>
    %cst_69 = arith.constant dense<0.000000e+00> : vector<8x8xf32>
    %114 = tpu.matmul %112, %113, %cst_69 {dimension_numbers = #tpu.dot_dimension_numbers<[0], [0], [1], [1], [0, 1, 1, 1], [], []>} : vector<4x8xbf16>, vector<4x8xbf16>, vector<8x8xf32> -> vector<8x8xf32>
    %cst_70 = arith.constant dense<0xFF800000> : vector<8xf32>
    %115 = vector.multi_reduction <maximumf>, %114, %cst_70 [1] : vector<8x8xf32> to vector<8xf32>
    %116 = vector.shape_cast %115 : vector<8xf32> to vector<8x1xf32>
    %117 = vector.broadcast %116 : vector<8x1xf32> to vector<8x8xf32>
    %118 = arith.subf %114, %117 : vector<8x8xf32>
    %119 = math.exp %118 : vector<8x8xf32>
    %cst_71 = arith.constant dense<0.000000e+00> : vector<8xf32>
    %120 = vector.multi_reduction <add>, %119, %cst_71 [1] : vector<8x8xf32> to vector<8xf32>
    %121 = vector.shape_cast %120 : vector<8xf32> to vector<8x1xf32>
    %122 = tpu.reciprocal %121 {approx = true} : vector<8x1xf32> -> vector<8x1xf32>
    %123 = vector.broadcast %122 : vector<8x1xf32> to vector<8x8xf32>
    %124 = arith.mulf %119, %123 : vector<8x8xf32>
    %125 = arith.truncf %111 : vector<4x8xf32> to vector<4x8xbf16>
    %126 = arith.truncf %124 : vector<8x8xf32> to vector<8x8xbf16>
    %cst_72 = arith.constant dense<0.000000e+00> : vector<4x8xf32>
    %127 = tpu.matmul %125, %126, %cst_72 {dimension_numbers = #tpu.dot_dimension_numbers<[1], [1], [0], [0], [0, 0, 1, 0], [], []>} : vector<4x8xbf16>, vector<8x8xbf16>, vector<4x8xf32> -> vector<4x8xf32>
    %c4_73 = arith.constant 4 : index
    %c16_74 = arith.constant 16 : index
    %128 = vector.load %arg16[%c4_73, %c16_74] : memref<8x32xf32, #tpu.memory_space<vmem>>, vector<4x8xf32>
    tpu.vector_store %arg16[%c4_73, %c16_74], %127 {strides = array<i32>} : memref<8x32xf32, #tpu.memory_space<vmem>>, vector<4x8xf32>,
    %c0_75 = arith.constant 0 : index
    %c24 = arith.constant 24 : index
    %129 = vector.load %arg15[%c0_75, %c24] : memref<24x32xf32, #tpu.memory_space<vmem>>, vector<4x8xf32>
    %c8_76 = arith.constant 8 : index
    %c24_77 = arith.constant 24 : index
    %130 = vector.load %arg15[%c8_76, %c24_77] : memref<24x32xf32, #tpu.memory_space<vmem>>, vector<4x8xf32>
    %c16_78 = arith.constant 16 : index
    %c24_79 = arith.constant 24 : index
    %131 = vector.load %arg15[%c16_78, %c24_79] : memref<24x32xf32, #tpu.memory_space<vmem>>, vector<4x8xf32>
    %132 = arith.truncf %129 : vector<4x8xf32> to vector<4x8xbf16>
    %133 = arith.truncf %130 : vector<4x8xf32> to vector<4x8xbf16>
    %cst_80 = arith.constant dense<0.000000e+00> : vector<8x8xf32>
    %134 = tpu.matmul %132, %133, %cst_80 {dimension_numbers = #tpu.dot_dimension_numbers<[0], [0], [1], [1], [0, 1, 1, 1], [], []>} : vector<4x8xbf16>, vector<4x8xbf16>, vector<8x8xf32> -> vector<8x8xf32>
    %cst_81 = arith.constant dense<0xFF800000> : vector<8xf32>
    %135 = vector.multi_reduction <maximumf>, %134, %cst_81 [1] : vector<8x8xf32> to vector<8xf32>
    %136 = vector.shape_cast %135 : vector<8xf32> to vector<8x1xf32>
    %137 = vector.broadcast %136 : vector<8x1xf32> to vector<8x8xf32>
    %138 = arith.subf %134, %137 : vector<8x8xf32>
    %139 = math.exp %138 : vector<8x8xf32>
    %cst_82 = arith.constant dense<0.000000e+00> : vector<8xf32>
    %140 = vector.multi_reduction <add>, %139, %cst_82 [1] : vector<8x8xf32> to vector<8xf32>
    %141 = vector.shape_cast %140 : vector<8xf32> to vector<8x1xf32>
    %142 = tpu.reciprocal %141 {approx = true} : vector<8x1xf32> -> vector<8x1xf32>
    %143 = vector.broadcast %142 : vector<8x1xf32> to vector<8x8xf32>
    %144 = arith.mulf %139, %143 : vector<8x8xf32>
    %145 = arith.truncf %131 : vector<4x8xf32> to vector<4x8xbf16>
    %146 = arith.truncf %144 : vector<8x8xf32> to vector<8x8xbf16>
    %cst_83 = arith.constant dense<0.000000e+00> : vector<4x8xf32>
    %147 = tpu.matmul %145, %146, %cst_83 {dimension_numbers = #tpu.dot_dimension_numbers<[1], [1], [0], [0], [0, 0, 1, 0], [], []>} : vector<4x8xbf16>, vector<8x8xbf16>, vector<4x8xf32> -> vector<4x8xf32>
    %c0_84 = arith.constant 0 : index
    %c24_85 = arith.constant 24 : index
    %148 = vector.load %arg16[%c0_84, %c24_85] : memref<8x32xf32, #tpu.memory_space<vmem>>, vector<4x8xf32>
    tpu.vector_store %arg16[%c0_84, %c24_85], %147 {strides = array<i32>} : memref<8x32xf32, #tpu.memory_space<vmem>>, vector<4x8xf32>,
    %c4_86 = arith.constant 4 : index
    %c24_87 = arith.constant 24 : index
    %149 = vector.load %arg15[%c4_86, %c24_87] : memref<24x32xf32, #tpu.memory_space<vmem>>, vector<4x8xf32>
    %c12_88 = arith.constant 12 : index
    %c24_89 = arith.constant 24 : index
    %150 = vector.load %arg15[%c12_88, %c24_89] : memref<24x32xf32, #tpu.memory_space<vmem>>, vector<4x8xf32>
    %c20_90 = arith.constant 20 : index
    %c24_91 = arith.constant 24 : index
    %151 = vector.load %arg15[%c20_90, %c24_91] : memref<24x32xf32, #tpu.memory_space<vmem>>, vector<4x8xf32>
    %152 = arith.truncf %149 : vector<4x8xf32> to vector<4x8xbf16>
    %153 = arith.truncf %150 : vector<4x8xf32> to vector<4x8xbf16>
    %cst_92 = arith.constant dense<0.000000e+00> : vector<8x8xf32>
    %154 = tpu.matmul %152, %153, %cst_92 {dimension_numbers = #tpu.dot_dimension_numbers<[0], [0], [1], [1], [0, 1, 1, 1], [], []>} : vector<4x8xbf16>, vector<4x8xbf16>, vector<8x8xf32> -> vector<8x8xf32>
    %cst_93 = arith.constant dense<0xFF800000> : vector<8xf32>
    %155 = vector.multi_reduction <maximumf>, %154, %cst_93 [1] : vector<8x8xf32> to vector<8xf32>
    %156 = vector.shape_cast %155 : vector<8xf32> to vector<8x1xf32>
    %157 = vector.broadcast %156 : vector<8x1xf32> to vector<8x8xf32>
    %158 = arith.subf %154, %157 : vector<8x8xf32>
    %159 = math.exp %158 : vector<8x8xf32>
    %cst_94 = arith.constant dense<0.000000e+00> : vector<8xf32>
    %160 = vector.multi_reduction <add>, %159, %cst_94 [1] : vector<8x8xf32> to vector<8xf32>
    %161 = vector.shape_cast %160 : vector<8xf32> to vector<8x1xf32>
    %162 = tpu.reciprocal %161 {approx = true} : vector<8x1xf32> -> vector<8x1xf32>
    %163 = vector.broadcast %162 : vector<8x1xf32> to vector<8x8xf32>
    %164 = arith.mulf %159, %163 : vector<8x8xf32>
    %165 = arith.truncf %151 : vector<4x8xf32> to vector<4x8xbf16>
    %166 = arith.truncf %164 : vector<8x8xf32> to vector<8x8xbf16>
    %cst_95 = arith.constant dense<0.000000e+00> : vector<4x8xf32>
    %167 = tpu.matmul %165, %166, %cst_95 {dimension_numbers = #tpu.dot_dimension_numbers<[1], [1], [0], [0], [0, 0, 1, 0], [], []>} : vector<4x8xbf16>, vector<8x8xbf16>, vector<4x8xf32> -> vector<4x8xf32>
    %c4_96 = arith.constant 4 : index
    %c24_97 = arith.constant 24 : index
    %168 = vector.load %arg16[%c4_96, %c24_97] : memref<8x32xf32, #tpu.memory_space<vmem>>, vector<4x8xf32>
    tpu.vector_store %arg16[%c4_96, %c24_97], %167 {strides = array<i32>} : memref<8x32xf32, #tpu.memory_space<vmem>>, vector<4x8xf32>,
    %c0_98 = arith.constant 0 : index
    %c0_99 = arith.constant 0 : index
    %169 = vector.load %arg4[%c0_98, %c0_99] : memref<8x8xbf16, #tpu.memory_space<vmem>>, vector<8x8xbf16>
    %c0_100 = arith.constant 0 : index
    %c0_101 = arith.constant 0 : index
    %170 = vector.load %arg16[%c0_100, %c0_101] : memref<8x32xf32, #tpu.memory_space<vmem>>, vector<8x32xf32>
    %171 = arith.truncf %170 : vector<8x32xf32> to vector<8x32xbf16>
    %cst_102 = arith.constant dense<0.000000e+00> : vector<8x32xf32>
    %172 = tpu.matmul %169, %171, %cst_102 {dimension_numbers = #tpu.dot_dimension_numbers<[1], [0], [0], [1], [0, 0, 1, 1], [], []>} : vector<8x8xbf16>, vector<8x32xbf16>, vector<8x32xf32> -> vector<8x32xf32>
    %c0_103 = arith.constant 0 : index
    %c0_104 = arith.constant 0 : index
    %173 = vector.load %arg5[%c0_103, %c0_104] : memref<8x1xf32, #tpu.memory_space<vmem>>, vector<8x1xf32>
    %174 = vector.broadcast %173 : vector<8x1xf32> to vector<8x32xf32>
    %175 = arith.addf %172, %174 : vector<8x32xf32>
    %176 = arith.addf %1, %175 : vector<8x32xf32>
    %c0_105 = arith.constant 0 : index
    %c0_106 = arith.constant 0 : index
    %177 = vector.load %arg6[%c0_105, %c0_106] : memref<8x1xf32, #tpu.memory_space<vmem>>, vector<8x1xf32>
    %c0_107 = arith.constant 0 : index
    %c0_108 = arith.constant 0 : index
    %178 = vector.load %arg7[%c0_107, %c0_108] : memref<8x1xf32, #tpu.memory_space<vmem>>, vector<8x1xf32>
    %cst_109 = arith.constant dense<0.000000e+00> : vector<32xf32>
    %179 = vector.multi_reduction <add>, %176, %cst_109 [0] : vector<8x32xf32> to vector<32xf32>
    %180 = vector.shape_cast %179 : vector<32xf32> to vector<1x32xf32>
    %cst_110 = arith.constant 8.000000e+00 : f32
    %181 = vector.broadcast %cst_110 : f32 to vector<1x32xf32>
    %182 = arith.divf %180, %181 : vector<1x32xf32>
    %183 = vector.broadcast %182 : vector<1x32xf32> to vector<8x32xf32>
    %184 = arith.subf %176, %183 : vector<8x32xf32>
    %185 = arith.mulf %184, %184 : vector<8x32xf32>
    %cst_111 = arith.constant dense<0.000000e+00> : vector<32xf32>
    %186 = vector.multi_reduction <add>, %185, %cst_111 [0] : vector<8x32xf32> to vector<32xf32>
    %187 = vector.shape_cast %186 : vector<32xf32> to vector<1x32xf32>
    %cst_112 = arith.constant 8.000000e+00 : f32
    %188 = vector.broadcast %cst_112 : f32 to vector<1x32xf32>
    %189 = arith.divf %187, %188 : vector<1x32xf32>
    %190 = vector.broadcast %182 : vector<1x32xf32> to vector<8x32xf32>
    %191 = arith.subf %176, %190 : vector<8x32xf32>
    %cst_113 = arith.constant 9.99999974E-6 : f32
    %192 = vector.broadcast %cst_113 : f32 to vector<1x32xf32>
    %193 = arith.addf %189, %192 : vector<1x32xf32>
    %194 = math.rsqrt %193 : vector<1x32xf32>
    %195 = vector.broadcast %194 : vector<1x32xf32> to vector<8x32xf32>
    %196 = arith.mulf %191, %195 : vector<8x32xf32>
    %197 = vector.broadcast %177 : vector<8x1xf32> to vector<8x32xf32>
    %198 = arith.mulf %196, %197 : vector<8x32xf32>
    %199 = vector.broadcast %178 : vector<8x1xf32> to vector<8x32xf32>
    %200 = arith.addf %198, %199 : vector<8x32xf32>
    %c0_114 = arith.constant 0 : index
    %c0_115 = arith.constant 0 : index
    %201 = vector.load %arg8[%c0_114, %c0_115] : memref<64x8xbf16, #tpu.memory_space<vmem>>, vector<64x8xbf16>
    %202 = arith.truncf %200 : vector<8x32xf32> to vector<8x32xbf16>
    %cst_116 = arith.constant dense<0.000000e+00> : vector<64x32xf32>
    %203 = tpu.matmul %201, %202, %cst_116 {dimension_numbers = #tpu.dot_dimension_numbers<[1], [0], [0], [1], [0, 0, 1, 1], [], []>} : vector<64x8xbf16>, vector<8x32xbf16>, vector<64x32xf32> -> vector<64x32xf32>
    %c0_117 = arith.constant 0 : index
    %c0_118 = arith.constant 0 : index
    %204 = vector.load %arg9[%c0_117, %c0_118] : memref<64x1xf32, #tpu.memory_space<vmem>>, vector<64x1xf32>
    %205 = vector.broadcast %204 : vector<64x1xf32> to vector<64x32xf32>
    %206 = arith.addf %203, %205 : vector<64x32xf32>
    %cst_119 = arith.constant 5.000000e-01 : f32
    %207 = vector.broadcast %cst_119 : f32 to vector<64x32xf32>
    %208 = arith.mulf %207, %206 : vector<64x32xf32>
    %cst_120 = arith.constant 0.707106769 : f32
    %209 = vector.broadcast %cst_120 : f32 to vector<64x32xf32>
    %210 = arith.mulf %206, %209 : vector<64x32xf32>
    %211 = math.erf %210 : vector<64x32xf32>
    %cst_121 = arith.constant 1.000000e+00 : f32
    %212 = vector.broadcast %cst_121 : f32 to vector<64x32xf32>
    %213 = arith.addf %212, %211 : vector<64x32xf32>
    %214 = arith.mulf %208, %213 : vector<64x32xf32>
    %c0_122 = arith.constant 0 : index
    %c0_123 = arith.constant 0 : index
    %215 = vector.load %arg10[%c0_122, %c0_123] : memref<8x64xbf16, #tpu.memory_space<vmem>>, vector<8x64xbf16>
    %216 = arith.truncf %214 : vector<64x32xf32> to vector<64x32xbf16>
    %cst_124 = arith.constant dense<0.000000e+00> : vector<8x32xf32>
    %217 = tpu.matmul %215, %216, %cst_124 {dimension_numbers = #tpu.dot_dimension_numbers<[1], [0], [0], [1], [0, 0, 1, 1], [], []>} : vector<8x64xbf16>, vector<64x32xbf16>, vector<8x32xf32> -> vector<8x32xf32>
    %c0_125 = arith.constant 0 : index
    %c0_126 = arith.constant 0 : index
    %218 = vector.load %arg11[%c0_125, %c0_126] : memref<8x1xf32, #tpu.memory_space<vmem>>, vector<8x1xf32>
    %219 = vector.broadcast %218 : vector<8x1xf32> to vector<8x32xf32>
    %220 = arith.addf %217, %219 : vector<8x32xf32>
    %221 = arith.addf %200, %220 : vector<8x32xf32>
    %c0_127 = arith.constant 0 : index
    %c0_128 = arith.constant 0 : index
    %222 = vector.load %arg12[%c0_127, %c0_128] : memref<8x1xf32, #tpu.memory_space<vmem>>, vector<8x1xf32>
    %c0_129 = arith.constant 0 : index
    %c0_130 = arith.constant 0 : index
    %223 = vector.load %arg13[%c0_129, %c0_130] : memref<8x1xf32, #tpu.memory_space<vmem>>, vector<8x1xf32>
    %cst_131 = arith.constant dense<0.000000e+00> : vector<32xf32>
    %224 = vector.multi_reduction <add>, %221, %cst_131 [0] : vector<8x32xf32> to vector<32xf32>
    %225 = vector.shape_cast %224 : vector<32xf32> to vector<1x32xf32>
    %cst_132 = arith.constant 8.000000e+00 : f32
    %226 = vector.broadcast %cst_132 : f32 to vector<1x32xf32>
    %227 = arith.divf %225, %226 : vector<1x32xf32>
    %228 = vector.broadcast %227 : vector<1x32xf32> to vector<8x32xf32>
    %229 = arith.subf %221, %228 : vector<8x32xf32>
    %230 = arith.mulf %229, %229 : vector<8x32xf32>
    %cst_133 = arith.constant dense<0.000000e+00> : vector<32xf32>
    %231 = vector.multi_reduction <add>, %230, %cst_133 [0] : vector<8x32xf32> to vector<32xf32>
    %232 = vector.shape_cast %231 : vector<32xf32> to vector<1x32xf32>
    %cst_134 = arith.constant 8.000000e+00 : f32
    %233 = vector.broadcast %cst_134 : f32 to vector<1x32xf32>
    %234 = arith.divf %232, %233 : vector<1x32xf32>
    %235 = vector.broadcast %227 : vector<1x32xf32> to vector<8x32xf32>
    %236 = arith.subf %221, %235 : vector<8x32xf32>
    %cst_135 = arith.constant 9.99999974E-6 : f32
    %237 = vector.broadcast %cst_135 : f32 to vector<1x32xf32>
    %238 = arith.addf %234, %237 : vector<1x32xf32>
    %239 = math.rsqrt %238 : vector<1x32xf32>
    %240 = vector.broadcast %239 : vector<1x32xf32> to vector<8x32xf32>
    %241 = arith.mulf %236, %240 : vector<8x32xf32>
    %242 = vector.broadcast %222 : vector<8x1xf32> to vector<8x32xf32>
    %243 = arith.mulf %241, %242 : vector<8x32xf32>
    %244 = vector.broadcast %223 : vector<8x1xf32> to vector<8x32xf32>
    %245 = arith.addf %243, %244 : vector<8x32xf32>
    %246 = arith.truncf %245 : vector<8x32xf32> to vector<8x32xbf16>
    %c0_136 = arith.constant 0 : index
    %c0_137 = arith.constant 0 : index
    %c0_138 = arith.constant 0 : index
    %247 = vector.load %arg14[%c0_136, %c0_137, %c0_138] : memref<1x8x32xbf16, #tpu.memory_space<vmem>>, vector<1x8x32xbf16>
    %248 = vector.shape_cast %247 : vector<1x8x32xbf16> to vector<8x32xbf16>
    %249 = vector.shape_cast %246 : vector<8x32xbf16> to vector<1x8x32xbf16>
    tpu.vector_store %arg14[%c0_136, %c0_137, %c0_138], %249 {strides = array<i32>} : memref<1x8x32xbf16, #tpu.memory_space<vmem>>, vector<1x8x32xbf16>,
    return
  }
  func.func @transform_0(%arg0: i32) -> (i32, i32, i32) {
    %c0_i32 = arith.constant 0 : i32
    %c0_i32_0 = arith.constant 0 : i32
    %c0_i32_1 = arith.constant 0 : i32
    return %arg0, %c0_i32, %c0_i32_0 : i32, i32, i32
  }
  func.func @transform_1(%arg0: i32) -> (i32, i32) {
    %c0_i32 = arith.constant 0 : i32
    %c0_i32_0 = arith.constant 0 : i32
    %c0_i32_1 = arith.constant 0 : i32
    return %c0_i32, %c0_i32_0 : i32, i32
  }
  func.func @transform_2(%arg0: i32) -> (i32, i32) {
    %c0_i32 = arith.constant 0 : i32
    %c0_i32_0 = arith.constant 0 : i32
    %c0_i32_1 = arith.constant 0 : i32
    return %c0_i32, %c0_i32_0 : i32, i32
  }
  func.func @transform_3(%arg0: i32) -> (i32, i32) {
    %c0_i32 = arith.constant 0 : i32
    %c0_i32_0 = arith.constant 0 : i32
    %c0_i32_1 = arith.constant 0 : i32
    return %c0_i32, %c0_i32_0 : i32, i32
  }
  func.func @transform_4(%arg0: i32) -> (i32, i32) {
    %c0_i32 = arith.constant 0 : i32
    %c0_i32_0 = arith.constant 0 : i32
    %c0_i32_1 = arith.constant 0 : i32
    return %c0_i32, %c0_i32_0 : i32, i32
  }
  func.func @transform_5(%arg0: i32) -> (i32, i32) {
    %c0_i32 = arith.constant 0 : i32
    %c0_i32_0 = arith.constant 0 : i32
    %c0_i32_1 = arith.constant 0 : i32
    return %c0_i32, %c0_i32_0 : i32, i32
  }
  func.func @transform_6(%arg0: i32) -> (i32, i32) {
    %c0_i32 = arith.constant 0 : i32
    %c0_i32_0 = arith.constant 0 : i32
    %c0_i32_1 = arith.constant 0 : i32
    return %c0_i32, %c0_i32_0 : i32, i32
  }
  func.func @transform_7(%arg0: i32) -> (i32, i32) {
    %c0_i32 = arith.constant 0 : i32
    %c0_i32_0 = arith.constant 0 : i32
    %c0_i32_1 = arith.constant 0 : i32
    return %c0_i32, %c0_i32_0 : i32, i32
  }
  func.func @transform_8(%arg0: i32) -> (i32, i32) {
    %c0_i32 = arith.constant 0 : i32
    %c0_i32_0 = arith.constant 0 : i32
    %c0_i32_1 = arith.constant 0 : i32
    return %c0_i32, %c0_i32_0 : i32, i32
  }
  func.func @transform_9(%arg0: i32) -> (i32, i32) {
    %c0_i32 = arith.constant 0 : i32
    %c0_i32_0 = arith.constant 0 : i32
    %c0_i32_1 = arith.constant 0 : i32
    return %c0_i32, %c0_i32_0 : i32, i32
  }
  func.func @transform_10(%arg0: i32) -> (i32, i32) {
    %c0_i32 = arith.constant 0 : i32
    %c0_i32_0 = arith.constant 0 : i32
    %c0_i32_1 = arith.constant 0 : i32
    return %c0_i32, %c0_i32_0 : i32, i32
  }
  func.func @transform_11(%arg0: i32) -> (i32, i32) {
    %c0_i32 = arith.constant 0 : i32
    %c0_i32_0 = arith.constant 0 : i32
    %c0_i32_1 = arith.constant 0 : i32
    return %c0_i32, %c0_i32_0 : i32, i32
  }
  func.func @transform_12(%arg0: i32) -> (i32, i32) {
    %c0_i32 = arith.constant 0 : i32
    %c0_i32_0 = arith.constant 0 : i32
    %c0_i32_1 = arith.constant 0 : i32
    return %c0_i32, %c0_i32_0 : i32, i32
  }
  func.func @transform_13(%arg0: i32) -> (i32, i32, i32) {
    %c0_i32 = arith.constant 0 : i32
    %c0_i32_0 = arith.constant 0 : i32
    %c0_i32_1 = arith.constant 0 : i32
    return %arg0, %c0_i32, %c0_i32_0 : i32, i32, i32
  }
}

module attributes {stable_mosaic.version = 11 : i64} {
  func.func @_tail_kernel(%arg0: i32, %arg1: i32, %arg2: memref<1x8x32xbf16, #tpu.memory_space<vmem>>, %arg3: memref<1x6x32xf32, #tpu.memory_space<vmem>>, %arg4: memref<1x8x32xf32, #tpu.memory_space<vmem>>, %arg5: memref<16x8xbf16, #tpu.memory_space<vmem>>, %arg6: memref<16x6xbf16, #tpu.memory_space<vmem>>, %arg7: memref<16x1xf32, #tpu.memory_space<vmem>>, %arg8: memref<16x8xbf16, #tpu.memory_space<vmem>>, %arg9: memref<16x1xf32, #tpu.memory_space<vmem>>, %arg10: memref<1x8x32xf32, #tpu.memory_space<vmem>>, %arg11: memref<1x8x32xf32, #tpu.memory_space<vmem>>) attributes {dimension_semantics = [#tpu.dimension_semantics<parallel>, #tpu.dimension_semantics<parallel>], iteration_bounds = array<i64: 2, 1>, scalar_prefetch = 0 : i64, scratch_operands = 0 : i64, tpu.core_type = #tpu.core_type<tc>, window_params = [{transform_indices = @transform_0, window_bounds = array<i64: 1, 8, 32>}, {transform_indices = @transform_1, window_bounds = array<i64: 1, 6, 32>}, {transform_indices = @transform_2, window_bounds = array<i64: 1, 8, 32>}, {pipeline_mode = #tpu.pipeline_mode<synchronous>, transform_indices = @transform_3, window_bounds = array<i64: 16, 8>}, {pipeline_mode = #tpu.pipeline_mode<synchronous>, transform_indices = @transform_4, window_bounds = array<i64: 16, 6>}, {pipeline_mode = #tpu.pipeline_mode<synchronous>, transform_indices = @transform_5, window_bounds = array<i64: 16, 1>}, {pipeline_mode = #tpu.pipeline_mode<synchronous>, transform_indices = @transform_6, window_bounds = array<i64: 16, 8>}, {pipeline_mode = #tpu.pipeline_mode<synchronous>, transform_indices = @transform_7, window_bounds = array<i64: 16, 1>}, {transform_indices = @transform_8, window_bounds = array<i64: 1, 8, 32>}, {transform_indices = @transform_9, window_bounds = array<i64: 1, 8, 32>}]} {
    %c0 = arith.constant 0 : index
    %c0_0 = arith.constant 0 : index
    %0 = vector.load %arg5[%c0, %c0_0] : memref<16x8xbf16, #tpu.memory_space<vmem>>, vector<16x8xbf16>
    %c0_1 = arith.constant 0 : index
    %c0_2 = arith.constant 0 : index
    %c0_3 = arith.constant 0 : index
    %1 = vector.load %arg2[%c0_1, %c0_2, %c0_3] : memref<1x8x32xbf16, #tpu.memory_space<vmem>>, vector<1x8x32xbf16>
    %2 = vector.shape_cast %1 : vector<1x8x32xbf16> to vector<8x32xbf16>
    %cst = arith.constant dense<0.000000e+00> : vector<16x32xf32>
    %3 = tpu.matmul %0, %2, %cst {dimension_numbers = #tpu.dot_dimension_numbers<[1], [0], [0], [1], [0, 0, 1, 1], [], []>} : vector<16x8xbf16>, vector<8x32xbf16>, vector<16x32xf32> -> vector<16x32xf32>
    %c0_4 = arith.constant 0 : index
    %c0_5 = arith.constant 0 : index
    %4 = vector.load %arg6[%c0_4, %c0_5] : memref<16x6xbf16, #tpu.memory_space<vmem>>, vector<16x6xbf16>
    %c0_6 = arith.constant 0 : index
    %c0_7 = arith.constant 0 : index
    %c0_8 = arith.constant 0 : index
    %5 = vector.load %arg3[%c0_6, %c0_7, %c0_8] : memref<1x6x32xf32, #tpu.memory_space<vmem>>, vector<1x6x32xf32>
    %6 = vector.shape_cast %5 : vector<1x6x32xf32> to vector<6x32xf32>
    %7 = arith.truncf %6 : vector<6x32xf32> to vector<6x32xbf16>
    %cst_9 = arith.constant dense<0.000000e+00> : vector<16x32xf32>
    %8 = tpu.matmul %4, %7, %cst_9 {dimension_numbers = #tpu.dot_dimension_numbers<[1], [0], [0], [1], [0, 0, 1, 1], [], []>} : vector<16x6xbf16>, vector<6x32xbf16>, vector<16x32xf32> -> vector<16x32xf32>
    %9 = arith.addf %3, %8 : vector<16x32xf32>
    %c0_10 = arith.constant 0 : index
    %c0_11 = arith.constant 0 : index
    %10 = vector.load %arg7[%c0_10, %c0_11] : memref<16x1xf32, #tpu.memory_space<vmem>>, vector<16x1xf32>
    %11 = vector.broadcast %10 : vector<16x1xf32> to vector<16x32xf32>
    %12 = arith.addf %9, %11 : vector<16x32xf32>
    %13 = vector.extract_strided_slice %12 {offsets = [0, 0], sizes = [8, 32], strides = [1, 1]} : vector<16x32xf32> to vector<8x32xf32>
    %14 = arith.negf %13 : vector<8x32xf32>
    %15 = math.exp %14 : vector<8x32xf32>
    %cst_12 = arith.constant 1.000000e+00 : f32
    %16 = vector.broadcast %cst_12 : f32 to vector<8x32xf32>
    %17 = arith.addf %16, %15 : vector<8x32xf32>
    %18 = arith.divf %16, %17 : vector<8x32xf32>
    %19 = vector.extract_strided_slice %12 {offsets = [8, 0], sizes = [8, 32], strides = [1, 1]} : vector<16x32xf32> to vector<8x32xf32>
    %20 = math.tanh %19 : vector<8x32xf32>
    %21 = arith.mulf %18, %20 : vector<8x32xf32>
    %c0_13 = arith.constant 0 : index
    %c0_14 = arith.constant 0 : index
    %22 = vector.load %arg8[%c0_13, %c0_14] : memref<16x8xbf16, #tpu.memory_space<vmem>>, vector<16x8xbf16>
    %23 = arith.truncf %21 : vector<8x32xf32> to vector<8x32xbf16>
    %cst_15 = arith.constant dense<0.000000e+00> : vector<16x32xf32>
    %24 = tpu.matmul %22, %23, %cst_15 {dimension_numbers = #tpu.dot_dimension_numbers<[1], [0], [0], [1], [0, 0, 1, 1], [], []>} : vector<16x8xbf16>, vector<8x32xbf16>, vector<16x32xf32> -> vector<16x32xf32>
    %c0_16 = arith.constant 0 : index
    %c0_17 = arith.constant 0 : index
    %25 = vector.load %arg9[%c0_16, %c0_17] : memref<16x1xf32, #tpu.memory_space<vmem>>, vector<16x1xf32>
    %26 = vector.broadcast %25 : vector<16x1xf32> to vector<16x32xf32>
    %27 = arith.addf %24, %26 : vector<16x32xf32>
    %c0_18 = arith.constant 0 : index
    %c0_19 = arith.constant 0 : index
    %c0_20 = arith.constant 0 : index
    %28 = vector.load %arg4[%c0_18, %c0_19, %c0_20] : memref<1x8x32xf32, #tpu.memory_space<vmem>>, vector<1x8x32xf32>
    %29 = vector.shape_cast %28 : vector<1x8x32xf32> to vector<8x32xf32>
    %30 = vector.extract_strided_slice %27 {offsets = [0, 0], sizes = [8, 32], strides = [1, 1]} : vector<16x32xf32> to vector<8x32xf32>
    %31 = arith.addf %29, %30 : vector<8x32xf32>
    %cst_21 = arith.constant 0.707106769 : f32
    %32 = vector.broadcast %cst_21 : f32 to vector<8x32xf32>
    %33 = arith.mulf %31, %32 : vector<8x32xf32>
    %c0_22 = arith.constant 0 : index
    %c0_23 = arith.constant 0 : index
    %c0_24 = arith.constant 0 : index
    %34 = vector.load %arg10[%c0_22, %c0_23, %c0_24] : memref<1x8x32xf32, #tpu.memory_space<vmem>>, vector<1x8x32xf32>
    %35 = vector.shape_cast %34 : vector<1x8x32xf32> to vector<8x32xf32>
    %36 = vector.shape_cast %33 : vector<8x32xf32> to vector<1x8x32xf32>
    tpu.vector_store %arg10[%c0_22, %c0_23, %c0_24], %36 {strides = array<i32>} : memref<1x8x32xf32, #tpu.memory_space<vmem>>, vector<1x8x32xf32>,
    %37 = vector.extract_strided_slice %27 {offsets = [8, 0], sizes = [8, 32], strides = [1, 1]} : vector<16x32xf32> to vector<8x32xf32>
    %c0_25 = arith.constant 0 : index
    %c0_26 = arith.constant 0 : index
    %c0_27 = arith.constant 0 : index
    %38 = vector.load %arg11[%c0_25, %c0_26, %c0_27] : memref<1x8x32xf32, #tpu.memory_space<vmem>>, vector<1x8x32xf32>
    %39 = vector.shape_cast %38 : vector<1x8x32xf32> to vector<8x32xf32>
    %40 = vector.shape_cast %37 : vector<8x32xf32> to vector<1x8x32xf32>
    tpu.vector_store %arg11[%c0_25, %c0_26, %c0_27], %40 {strides = array<i32>} : memref<1x8x32xf32, #tpu.memory_space<vmem>>, vector<1x8x32xf32>,
    return
  }
  func.func @transform_0(%arg0: i32, %arg1: i32) -> (i32, i32, i32) {
    %c0_i32 = arith.constant 0 : i32
    %c0_i32_0 = arith.constant 0 : i32
    return %arg0, %c0_i32, %arg1 : i32, i32, i32
  }
  func.func @transform_1(%arg0: i32, %arg1: i32) -> (i32, i32, i32) {
    %c0_i32 = arith.constant 0 : i32
    %c0_i32_0 = arith.constant 0 : i32
    return %arg0, %c0_i32, %arg1 : i32, i32, i32
  }
  func.func @transform_2(%arg0: i32, %arg1: i32) -> (i32, i32, i32) {
    %c0_i32 = arith.constant 0 : i32
    %c0_i32_0 = arith.constant 0 : i32
    return %arg0, %c0_i32, %arg1 : i32, i32, i32
  }
  func.func @transform_3(%arg0: i32, %arg1: i32) -> (i32, i32) {
    %c0_i32 = arith.constant 0 : i32
    %c0_i32_0 = arith.constant 0 : i32
    %c0_i32_1 = arith.constant 0 : i32
    return %c0_i32, %c0_i32_0 : i32, i32
  }
  func.func @transform_4(%arg0: i32, %arg1: i32) -> (i32, i32) {
    %c0_i32 = arith.constant 0 : i32
    %c0_i32_0 = arith.constant 0 : i32
    %c0_i32_1 = arith.constant 0 : i32
    return %c0_i32, %c0_i32_0 : i32, i32
  }
  func.func @transform_5(%arg0: i32, %arg1: i32) -> (i32, i32) {
    %c0_i32 = arith.constant 0 : i32
    %c0_i32_0 = arith.constant 0 : i32
    %c0_i32_1 = arith.constant 0 : i32
    return %c0_i32, %c0_i32_0 : i32, i32
  }
  func.func @transform_6(%arg0: i32, %arg1: i32) -> (i32, i32) {
    %c0_i32 = arith.constant 0 : i32
    %c0_i32_0 = arith.constant 0 : i32
    %c0_i32_1 = arith.constant 0 : i32
    return %c0_i32, %c0_i32_0 : i32, i32
  }
  func.func @transform_7(%arg0: i32, %arg1: i32) -> (i32, i32) {
    %c0_i32 = arith.constant 0 : i32
    %c0_i32_0 = arith.constant 0 : i32
    %c0_i32_1 = arith.constant 0 : i32
    return %c0_i32, %c0_i32_0 : i32, i32
  }
  func.func @transform_8(%arg0: i32, %arg1: i32) -> (i32, i32, i32) {
    %c0_i32 = arith.constant 0 : i32
    %c0_i32_0 = arith.constant 0 : i32
    return %arg0, %c0_i32, %arg1 : i32, i32, i32
  }
  func.func @transform_9(%arg0: i32, %arg1: i32) -> (i32, i32, i32) {
    %c0_i32 = arith.constant 0 : i32
    %c0_i32_0 = arith.constant 0 : i32
    return %arg0, %c0_i32, %arg1 : i32, i32, i32
  }
}

</mosaic_0001>

<bundles_post_ra>
// kernel: residual_block_forward.5
= control target key start
LH: loop header
LB: loop body
LE: loop exit
PB: predicated region body
PF: predicated region fallthrough
CT: control target
= control target key end

     0   :  { %s948_s30 = smov 0   ;;  %s950_s10 = smov 0   ;;  %s1024_s0 = inlined_call_operand.vmem [shape: bf16[2,8,32], index: 0, kind: input, shape index: {}]   ;;  %s1025_s1 = inlined_call_operand.vmem [shape: f32[2,6,32], index: 1, kind: input, shape index: {}]   ;;  %s1026_s2 = inlined_call_operand.vmem [shape: f32[2,8,32], index: 2, kind: input, shape index: {}]   ;;  %s1027_s3 = inlined_call_operand.vmem [shape: bf16[16,8], index: 3, kind: input, shape index: {}]   ;;  %s1028_s4 = inlined_call_operand.vmem [shape: bf16[16,6], index: 4, kind: input, shape index: {}]   ;;  %s1029_s5 = inlined_call_operand.vmem [shape: f32[16,1], index: 5, kind: input, shape index: {}]   ;;  %s1030_s6 = inlined_call_operand.vmem [shape: bf16[16,8], index: 6, kind: input, shape index: {}]   ;;  %s1031_s7 = inlined_call_operand.vmem [shape: f32[16,1], index: 7, kind: input, shape index: {}]   ;;  %s1032_s8 = inlined_call_operand.vmem [shape: f32[2,8,32], index: 8, kind: output, shape index: {0}]   ;;  %s1033_s9 = inlined_call_operand.vmem [shape: f32[2,8,32], index: 9, kind: output, shape index: {1}]  }
   0x1   :  { %s952_s11 = smov 0  }
   0x2 LB: > { %s32_s12 = sadd.s32 1, %s889_s10  ;;  %p794_p0 = scmp.ge.s32.totalorder %s893_s11, 1  ;;  %s893_s11 = sphi %s952_s11, %s20_s11   ;;  %s889_s10 = sphi %s950_s10, %s1035_s10   ;;  %s885_s30 = sphi %s948_s30, %s1034_s30  }
   0x3   : > { %p34_p1 = scmp.ge.s32.totalorder %s32_s12, 2  ;;  %p338_p2 = scmp.lt.s32.totalorder %s893_s11, 3 }
   0x5   : > { %s1037_s12 = smov (%p34_p1, %s32_s12), 0  ;;  %p339_p3 = pnand %p794_p0, %p338_p2 }
   0x6   : > { %p399_p4 = scmp.lt.s32.totalorder (!%p339_p3), %s885_s30, 1  ;;  %v895_v0 = vmov (!%p339_p3), 0.0   ;;  %vm896_vm0 = vmmov (!%p339_p3), 0   ;;  %v550_v1 = vld [vmem:[%s1029_s5] sm:$0xff] (!%p339_p3)  ;;  %vm505_vm1 = vcmask (!%p339_p3), 1043456   ;;  %v897_v2 = vmov (!%p339_p3), 0  }
   0x7   : > { %342 = sbr.rel (%p339_p3) target bundleno = 494 (0x1ee), region = 52  ;;  %821 = vmatprep.subr.bf16.mxu1 (!%p339_p3), %v895_v0  ;;  %815 = vmatprep.subr.bf16.mxu0 (!%p339_p3), %v895_v0  ;;  %v551_v4 = vld [vmem:[%s1029_s5 + $0x8] sm:$0xff] (!%p339_p3)  ;;  %vm451_vm2 = vcmask (!%p339_p3), 1042432   ;;  %v862_v7 = vld [vmem:[%s1027_s3] sm:$0xff] (!%p339_p3)   ;;  %vm501_vm3 = vcmask (!%p339_p3), 64512   ;;  %vm447_vm4 = vcmask (!%p339_p3), 48128  }
   0x8   : > { %823 = vmatprep.mubr.msk.bf16.mxu1 (!%p339_p3), %vm896_vm0, %v895_v0  ;;  %817 = vmatprep.mubr.msk.bf16.mxu0 (!%p339_p3), %vm896_vm0, %v895_v0  ;;  %v863_v10 = vld [vmem:[%s1028_s4] sm:$0xff] (!%p339_p3)   ;;  %v576_v12 = vld [vmem:[%s1031_s7 + $0x8] sm:$0xff] (!%p339_p3)  ;;  %vm642_vm5 = vcmask (!%p339_p3), 261120  }
   0x9   : > { %860 = vset.pattern.permute.xlu0 (!%p339_p3), %v897_v2  ;;  %861 = vset.pattern.permute.xlu1 (!%p339_p3), %v897_v2  ;;  %v575_v11 = vld [vmem:[%s1031_s7] sm:$0xff] (!%p339_p3) }
   0xa   : > { %554 = vperm.xlu0 (!%p339_p3), %860, %v550_v1   ;;  %579 = vperm.xlu1 (!%p339_p3), %861, %v575_v11   ;;  %v864_v35 = vld [vmem:[%s1030_s6] sm:$0xff] (!%p339_p3)  }
   0xe   : > { %s1039_s30 = smov (!%p399_p4, %s885_s30), 1  ;;  %559 = vperm.xlu0 %860, %v551_v4   ;;  %584 = vperm.xlu1 %861, %v576_v12  }
   0xf   : > { %s795_s15 = sshll.u32 %s1039_s30, 2  ;;  %s971_s16 = sshll.u32 %s1039_s30, 3 }
  0x10   : > { %s405_s19 = scalar_lea.vmem %s1024_s0, %s795_s15  ;;  %s412_s22 = scalar_lea.vmem %s1025_s1, %s971_s16 }
  0x11   : > { %v437_v3 = vld [vmem:[%s405_s19] sm:$0xf]  ;;  %s419_s20 = scalar_lea.vmem %s1026_s2, %s971_s16  ;;  %s433_s23 = scalar_lea.vmem %s1033_s9, %s971_s16 }
  0x12   : > { %v507_v5 = vsel %vm505_vm1, %v437_v3, 0  ;;  %v440_v6 = vld [vmem:[%s412_s22] sm:$0x3f]  ;;  %s426_s26 = scalar_lea.vmem %s1032_s8, %s971_s16 }
  0x13   : > { %822 = vmatpush3.bf16.msra.mxu1 %v507_v5  ;;  %v441_v8 = vpack.c.bf16 %v440_v6, %v440_v6  ;;  %v639_v38 = vld [vmem:[%s419_s20] sm:$0xff] }
  0x15   : > { %v453_v9 = vsel %vm451_vm2, %v441_v8, 0 }
  0x16   : > { %816 = vmatpush3.bf16.msra.mxu0 %v453_v9  ;;  %824 = vmatmul.mubr.msk.bf16.vlgmr.msra.gmra.mrb[0].mxu1 %vm501_vm3, %v862_v7 }
  0x17   : > { %827 = vmatprep.subr.bf16.mxu0 %v895_v0 }
  0x19   : > { %818 = vmatmul.mubr.msk.bf16.vlgmr.msra.gmra.mrb[0].mxu0 %vm447_vm4, %v863_v10 }
  0x1a   : > { %829 = vmatprep.mubr.msk.bf16.mxu0 %vm896_vm0, %v895_v0 }
  0x89   : > { %v555_v20 = vpop.permute.xlu0 %554  ;;  %v580_v36 = vpop.permute.xlu1 %579 }
  0x8d   : > { %v560_v26 = vpop.permute.xlu0 %559  ;;  %v585_v42 = vpop.permute.xlu1 %584 }
  0xe9   : > { %v543_v13 = vpop.f32.mrb[0].mxu1 }
  0xea   : > { %v825_v14 = vpop.f32.mrb[1].mxu1 }
  0xeb   : > { %v546_v15 = vpop.f32.mrb[2].mxu1 }
  0xec   : > { %v489_v16 = vpop.f32.mrb[0].mxu0  ;;  %v826_v17 = vpop.f32.mrb[3].mxu1 }
  0xed   : > { %v544_v18 = vadd.f32 %v543_v13, %v489_v16  ;;  %v819_v19 = vpop.f32.mrb[1].mxu0 }
  0xee   : > { %v492_v21 = vpop.f32.mrb[2].mxu0 }
  0xef   : > { %v562_v22 = vadd.f32 %v555_v20, %v544_v18  ;;  %v547_v23 = vadd.f32 %v546_v15, %v492_v21  ;;  %v820_v24 = vpop.f32.mrb[3].mxu0 }
  0xf1   : > { %v804_v25 = vmul.f32 -1.442695, %v562_v22  ;;  %v563_v27 = vadd.f32 %v560_v26, %v547_v23 }
  0xf3   : > { %865 = vpow2.f32 %v804_v25 }
  0xf4   : > { %867 = vtanh.f32 %v563_v27 }
  0xfd   : > { %v866_v28 = vpop.eup %865 }
  0xfe   : > { %v567_v29 = vadd.f32 1.0, %v866_v28  ;;  %v868_v30 = vpop.eup %867 }
 0x100   : > { %869 = vrcp.f32 %v567_v29 }
 0x10a   : > { %v870_v31 = vpop.eup %869 }
 0x10b   : > { %v571_v32 = vmul.f32 %v870_v31, %v868_v30 }
 0x10d   : > { %v574_v33 = vpack.c.bf16 %v571_v32, %v571_v32 }
 0x10f   : > { %v596_v34 = vsel %vm505_vm1, %v574_v33, 0 }
 0x110   : > { %828 = vmatpush3.bf16.msra.mxu0 %v596_v34 }
 0x113   : > { %830 = vmatmul.mubr.msk.bf16.vlgmr.msra.gmra.mrb[4].mxu0 %vm501_vm3, %v864_v35 }
 0x1e6   : > { %v632_v37 = vpop.f32.mrb[4].mxu0 }
 0x1e7   : > { %v633_v39 = vadd.f32 %v632_v37, %v580_v36  ;;  %v831_v40 = vpop.f32.mrb[5].mxu0 }
 0x1e8   : > { %v635_v41 = vpop.f32.mrb[6].mxu0 }
 0x1e9   : > { %v640_v43 = vadd.f32 %v639_v38, %v633_v39  ;;  %v636_v44 = vadd.f32 %v635_v41, %v585_v42  ;;  %v832_v45 = vpop.f32.mrb[7].mxu0 }
 0x1eb   : > { %v641_v46 = vmul.f32 0.70710677, %v640_v43  ;;  %644 = vst.msk [vmem:[%s433_s23] sm:$0xff] %vm642_vm5, %v636_v44 }
 0x1ed   : > { %643 = vst.msk [vmem:[%s426_s26] sm:$0xff] %vm642_vm5, %v641_v46 }
 0x1ee PF: > { %s20_s11 = sadd.s32 1, %s893_s11   ;;  %s1034_s30 = smov %s889_s10 }
 0x1ef   : > { %p17_p5 = scmp.ge.s32.totalorder %s20_s11, 4   ;;  %s1035_s10 = smov %s1037_s12 }
 0x1f1   :  { %19 = sbr.rel (!%p17_p5) target bundleno = 2 (0x2), region = 100 }

// kernel: residual_block_forward.3
= control target key start
LH: loop header
LB: loop body
LE: loop exit
PB: predicated region body
PF: predicated region fallthrough
CT: control target
= control target key end

     0   :  { %s2455_s25 = smov 0   ;;  %s2744_s0 = inlined_call_operand.vmem [shape: f32[2,8,32], index: 0, kind: input, shape index: {}]   ;;  %s2745_s1 = inlined_call_operand.vmem [shape: bf16[24,8], index: 1, kind: input, shape index: {}]   ;;  %s2746_s2 = inlined_call_operand.vmem [shape: f32[24,1], index: 2, kind: input, shape index: {}]   ;;  %s2747_s3 = inlined_call_operand.vmem [shape: bf16[8,8], index: 3, kind: input, shape index: {}]   ;;  %s2748_s4 = inlined_call_operand.vmem [shape: f32[8,1], index: 4, kind: input, shape index: {}]   ;;  %s2749_s5 = inlined_call_operand.vmem [shape: f32[8,1], index: 5, kind: input, shape index: {}]   ;;  %s2750_s6 = inlined_call_operand.vmem [shape: f32[8,1], index: 6, kind: input, shape index: {}]   ;;  %s2751_s7 = inlined_call_operand.vmem [shape: bf16[64,8], index: 7, kind: input, shape index: {}]   ;;  %s2752_s8 = inlined_call_operand.vmem [shape: f32[64,1], index: 8, kind: input, shape index: {}]   ;;  %s2753_s9 = inlined_call_operand.vmem [shape: bf16[8,64], index: 9, kind: input, shape index: {}]   ;;  %s2754_s10 = inlined_call_operand.vmem [shape: f32[8,1], index: 10, kind: input, shape index: {}]   ;;  %s2755_s11 = inlined_call_operand.vmem [shape: f32[8,1], index: 11, kind: input, shape index: {}]   ;;  %s2756_s12 = inlined_call_operand.vmem [shape: f32[8,1], index: 12, kind: input, shape index: {}]   ;;  %s2757_s13 = inlined_call_operand.vmem [shape: bf16[2,8,32], index: 13, kind: output, shape index: {}]  }
   0x1 LB: > { %s2073_s26 = sadd.s32 4294967295, %s2374_s25   ;;  %p2077_p0 = scmp.ge.s32.totalorder %s2374_s25, 1  ;;  %s2374_s25 = sphi %s2455_s25, %s23_s25  }
   0x2   : > { %p386_p1 = scmp.lt.s32.totalorder %s2374_s25, 3 }
   0x4   : > { %p387_p2 = pnand %p2077_p0, %p386_p1 }
   0x5   : > { %p428_p3 = scmp.lt.s32.totalorder (!%p387_p2), %s2073_s26, 1  ;;  %v2310_v0 = vld [vmem:[%s2745_s1] sm:$0xff] (!%p387_p2)   ;;  %vm468_vm0 = vcmask (!%p387_p2), 64512   ;;  %v2376_v2 = vmov (!%p387_p2), 0   ;;  %v443_v3 = vld [vmem:[%s2746_s2 + $0x8] sm:$0xff] (!%p387_p2)  ;;  %vm475_vm1 = vcmask (!%p387_p2), 1043456  }
   0x6   : > { %390 = sbr.rel (%p387_p2) target bundleno = 2232 (0x8b8), region = 72  ;;  %v442_v1 = vld [vmem:[%s2746_s2] sm:$0xff] (!%p387_p2)  ;;  %2161 = vmatprep.mubr.msk.bf16.mxu0 (!%p387_p2), %vm468_vm0, %v2310_v0  ;;  %2308 = vset.pattern.permute.xlu0 (!%p387_p2), %v2376_v2  ;;  %v2311_v7 = vld [vmem:[%s2745_s1 + $0x8] ss:$0 sps:$4 sm:$0xff] (!%p387_p2)   ;;  %v2377_v8 = vmov (!%p387_p2), 0.0   ;;  %vm527_vm2 = vcmask (!%p387_p2), 261120  }
   0x7   : > { %447 = vperm.xlu0 (!%p387_p2), %2308, %v442_v1   ;;  %2165 = vmatprep.subr.bf16.mxu1 (!%p387_p2), %v2377_v8  ;;  %vm556_vm3 = vcmask (!%p387_p2), 1041408   ;;  %s2378_s22 = smov (!%p387_p2), 120   ;;  %s2379_s23 = smov (!%p387_p2), 112   ;;  %vm2380_vm4 = vmmov (!%p387_p2), 0   ;;  %vm552_vm5 = vcmask (!%p387_p2), 31744   ;;  %vm659_vm6 = vcmask (!%p387_p2), 60416  }
   0x8   : > { %2167 = vmatprep.mubr.msk.bf16.mxu1 (!%p387_p2), %vm2380_vm4, %v2377_v8  ;;  %s2381_s24 = smov (!%p387_p2), 104   ;;  %s2382_s29 = smov (!%p387_p2), 8   ;;  %vm928_vm7 = vcmask (!%p387_p2), 126016   ;;  %vm1211_vm8 = vcmask (!%p387_p2), 191616   ;;  %vm1494_vm9 = vcmask (!%p387_p2), 257216   ;;  %vm1937_vm10 = vcmask (!%p387_p2), 523264  }
   0x9   : > { %s2383_s30 = smov (!%p387_p2), 16   ;;  %vm2018_vm11 = vcmask (!%p387_p2), 257024  }
   0xb   : > { %452 = vperm.xlu0 (!%p387_p2), %2308, %v443_v3  }
   0xd   : > { %s2759_s26 = smov (!%p428_p3, %s2073_s26), 1 }
   0xe   : > { %s2078_s14 = sshll.u32 %s2759_s26, 3  ;;  %s2079_s27 = sshll.u32 %s2759_s26, 2 }
   0xf   : > { %s431_s17 = scalar_lea.vmem %s2744_s0, %s2078_s14  ;;  %s2384_s14 = smov 24  }
  0x10   : > { %v2480_v4 = vld [vmem:[%s431_s17] sm:$0xff] }
  0x11   : > { %v441_v5 = vpack.c.bf16 %v2480_v4, %v2480_v4 }
  0x13   : > { %2289 = vmatprep.subr.msk.bf16.mxu0 %vm475_vm1, %v441_v5  ;;  %v477_v6 = vsel %vm475_vm1, %v441_v5, 0 }
  0x14   : > { %2160 = vmatpush3.bf16.msra.mxu0 %v477_v6 }
  0x15   : > { %2171 = vmatprep.subr.bf16.mxu0 %v2377_v8 }
  0x17   : > { %2162 = vmatmul.mubr.msk.bf16.vlgmr.msra.gmra.mrb[0].mxu0 %vm468_vm0, %v2311_v7 }
  0x18   : > { %2173 = vmatprep.mubr.msk.bf16.mxu0 %vm2380_vm4, %v2377_v8 }
  0x86   : > { %v448_v9 = vpop.permute.xlu0 %447 }
  0x8a   : > { %v453_v14 = vpop.permute.xlu0 %452 }
  0xea   : > { %v2492_v10 = vpop.f32.mrb[0].mxu0 }
  0xeb   : > { %v513_v11 = vpop.f32.mrb[1].mxu0 }
  0xec   : > { %v514_v12 = vadd.f32 %v513_v11, %v448_v9  ;;  %v2164_v13 = vpop.f32.mrb[2].mxu0 }
  0xed   : > { %v516_v15 = vpop.f32.mrb[3].mxu0 }
  0xee   : > { %528 = vst.msk [vmem:[#allocation2] sm:$0xff] %vm527_vm2, %v514_v12  ;;  %v517_v16 = vadd.f32 %v516_v15, %v453_v14 }
  0xf0   : > { %529 = vst.msk [vmem:[#allocation2 + $0x8] sm:$0xff] %vm527_vm2, %v517_v16 }
  0xf5   : > { %v788_v17 = vld [vmem:[#allocation2] sm:$0xf]  ;;  %v661_v18 = vld [vmem:[#allocation2 + $0x4] sm:$0xf] }
  0xf6   : > { %v791_v19 = vpack.c.bf16 %v788_v17, %v788_v17  ;;  %v664_v20 = vpack.c.bf16 %v661_v18, %v661_v18  ;;  %v930_v22 = vld [vmem:[#allocation2 + $0x4] sm:$0xf]  ;;  %v1071_v27 = vld [vmem:[#allocation2] sm:$0xf] }
  0xf7   : > { %v532_v21 = vld [vmem:[#allocation2 + $0x8] sm:$0xf]  ;;  %v933_v25 = vpack.c.bf16 %v930_v22, %v930_v22  ;;  %v1213_v26 = vld [vmem:[#allocation2 + $0x4] sm:$0xf]  ;;  %v1074_v29 = vpack.c.bf16 %v1071_v27, %v1071_v27  ;;  %v1354_v31 = vld [vmem:[#allocation2] sm:$0xf] }
  0xf8   : > { %794 = vrot.lane.b32.xlu1 %v791_v19, %s2378_s22  ;;  %666 = vxpose.xlu0.c.b16.start.end [1/1] (short) (narrow) %v664_v20, 16  ;;  %v535_v23 = vpack.c.bf16 %v532_v21, %v532_v21  ;;  %v1216_v28 = vpack.c.bf16 %v1213_v26, %v1213_v26  ;;  %v789_v30 = vld [vmem:[#allocation2 + $0x8] sm:$0xf]  ;;  %v1357_v33 = vpack.c.bf16 %v1354_v31, %v1354_v31  ;;  %v1496_v34 = vld [vmem:[#allocation2 + $0x4] sm:$0xf] }
  0xf9   : > { %v792_v32 = vpack.c.bf16 %v789_v30, %v789_v30  ;;  %v1499_v35 = vpack.c.bf16 %v1496_v34, %v1496_v34  ;;  %v931_v36 = vld [vmem:[#allocation2 + $0xc] sm:$0xf]  ;;  %v531_v38 = vld [vmem:[#allocation2] sm:$0xf]  ;;  %v1072_v40 = vld [vmem:[#allocation2 + $0x8] sm:$0xf] }
  0xfa   : > { %v558_v24 = vsel %vm556_vm3, %v535_v23, 0  ;;  %v934_v37 = vpack.c.bf16 %v931_v36, %v931_v36  ;;  %v534_v39 = vpack.c.bf16 %v531_v38, %v531_v38  ;;  %v1075_v41 = vpack.c.bf16 %v1072_v40, %v1072_v40  ;;  %v1214_v42 = vld [vmem:[#allocation2 + $0xc] sm:$0xf]  ;;  %v1355_v44 = vld [vmem:[#allocation2 + $0x8] sm:$0xf] }
  0xfb   : > { %2166 = vmatpush3.bf16.msra.mxu1 %v558_v24  ;;  %v1217_v43 = vpack.c.bf16 %v1214_v42, %v1214_v42  ;;  %v1358_v45 = vpack.c.bf16 %v1355_v44, %v1355_v44  ;;  %v1497_v46 = vld [vmem:[#allocation2 + $0xc] sm:$0xf] }
  0xfc   : > { %936 = vrot.lane.b32.xlu1 %v933_v25, %s2378_s22  ;;  %2177 = vmatprep.subr.bf16.mxu1 %v2377_v8  ;;  %v1500_v47 = vpack.c.bf16 %v1497_v46, %v1497_v46  ;;  %v662_v55 = vld [vmem:[#allocation2 + $0xc] sm:$0xf] }
  0xfd   : > { %v665_v57 = vpack.c.bf16 %v662_v55, %v662_v55 }
  0xff   : > { %v686_v59 = vsel %vm556_vm3, %v665_v57, 0 }
 0x100   : > { %1219 = vrot.lane.b32.xlu1 %v1216_v28, %s2379_s23 }
 0x101   : > { %1077 = vrot.lane.b32.xlu0 %v1074_v29, %s2379_s23 }
 0x104   : > { %814 = vrot.lane.b32.xlu1 %v792_v32, %s2378_s22 }
 0x105   : > { %1360 = vrot.lane.b32.xlu0 %v1357_v33, %s2381_s24 }
 0x109   : > { %1502 = vrot.lane.b32.xlu0 %v1499_v35, %s2381_s24 }
 0x10d   : > { %956 = vrot.lane.b32.xlu0 %v934_v37, %s2378_s22 }
 0x127   : > { %536 = vxpose.xlu1.c.b16.start.end [1/1] (short) (narrow) %v534_v39, 16 }
 0x12b   : > { %1097 = vrot.lane.b32.xlu1 %v1075_v41, %s2379_s23 }
 0x12f   : > { %1239 = vrot.lane.b32.xlu1 %v1217_v43, %s2379_s23 }
 0x133   : > { %1380 = vrot.lane.b32.xlu1 %v1358_v45, %s2381_s24 }
 0x137   : > { %1522 = vrot.lane.b32.xlu1 %v1500_v47, %s2381_s24 }
 0x15e   : > { %v674_v49 = vpop.trf.xlu0 }
 0x16a   : > { %v795_v48 = vpop.permute.xlu1 %794 }
 0x16b   : > { %797 = vxpose.xlu0.c.b16.start.end [1/1] (short) (narrow) %v795_v48, 16 }
 0x16e   : > { %v937_v50 = vpop.permute.xlu1 %936 }
 0x16f   : > { %939 = vxpose.xlu0.c.b16.start.end [1/1] (short) (narrow) %v937_v50, 16 }
 0x172   : > { %v1220_v52 = vpop.permute.xlu1 %1219 }
 0x173   : > { %v1078_v51 = vpop.permute.xlu0 %1077 }
 0x174   : > { %1080 = vxpose.xlu0.c.b16.start.end [1/1] (short) (narrow) %v1078_v51, 16 }
 0x176   : > { %v815_v56 = vpop.permute.xlu1 %814 }
 0x177   : > { %v1361_v53 = vpop.permute.xlu0 %1360  ;;  %v820_v60 = vsel %vm556_vm3, %v815_v56, 0  ;;  %v444_v56 = vld [vmem:[%s2746_s2 + $0x10] sm:$0xff] }
 0x178   : > { %1222 = vxpose.xlu0.c.b16.start.end [1/1] (short) (narrow) %v1220_v52, 16  ;;  %1363 = vxpose.xlu1.c.b16.start.end [1/1] (short) (narrow) %v1361_v53, 16 }
 0x17b   : > { %v1503_v54 = vpop.permute.xlu0 %1502 }
 0x17c   : > { %1505 = vxpose.xlu0.c.b16.start.end [1/1] (short) (narrow) %v1503_v54, 16  ;;  %2309 = vset.pattern.permute.xlu1 %v2376_v2 }
 0x17f   : > { %v957_v61 = vpop.permute.xlu0 %956 }
 0x180   : > { %v962_v63 = vsel %vm556_vm3, %v957_v61, 0 }
 0x18d   : > { %v544_v58 = vpop.trf.xlu1 }
 0x18e   : > { %2168 = vmatmul.mubr.msk.bf16.vlgmr.msra.gmra.mrb[0].mxu1 %vm552_vm5, %v544_v58 }
 0x18f   : > { %2178 = vmatpush3.bf16.msra.mxu1 %v686_v59  ;;  %2179 = vmatprep.mubr.msk.bf16.mxu1 %vm2380_vm4, %v2377_v8 }
 0x190   : > { %2189 = vmatprep.subr.bf16.mxu1 %v2377_v8 }
 0x196   : > { %2180 = vmatmul.mubr.msk.bf16.vlgmr.msra.gmra.mrb[4].mxu1 %vm552_vm5, %v674_v49 }
 0x197   : > { %2190 = vmatpush3.bf16.msra.mxu1 %v820_v60  ;;  %2191 = vmatprep.mubr.msk.bf16.mxu1 %vm2380_vm4, %v2377_v8 }
 0x198   : > { %2201 = vmatprep.subr.bf16.mxu1 %v2377_v8 }
 0x19d   : > { %v1098_v0 = vpop.permute.xlu1 %1097 }
 0x19e   : > { %v1103_v2 = vsel %vm556_vm3, %v1098_v0, 0 }
 0x1a1   : > { %v1240_v3 = vpop.permute.xlu1 %1239 }
 0x1a2   : > { %v1245_v6 = vsel %vm556_vm3, %v1240_v3, 0 }
 0x1a5   : > { %v1381_v7 = vpop.permute.xlu1 %1380 }
 0x1a6   : > { %v1386_v11 = vsel %vm556_vm3, %v1381_v7, 0 }
 0x1a9   : > { %v1523_v12 = vpop.permute.xlu1 %1522 }
 0x1aa   : > { %v1528_v14 = vsel %vm556_vm3, %v1523_v12, 0 }
 0x1d1   : > { %v805_v62 = vpop.trf.xlu0 }
 0x1d2   : > { %2192 = vmatmul.mubr.msk.bf16.vlgmr.msra.gmra.mrb[8].mxu1 %vm552_vm5, %v805_v62 }
 0x1d3   : > { %2202 = vmatpush3.bf16.msra.mxu1 %v962_v63  ;;  %2203 = vmatprep.mubr.msk.bf16.mxu1 %vm2380_vm4, %v2377_v8 }
 0x1d4   : > { %2213 = vmatprep.subr.bf16.mxu1 %v2377_v8 }
 0x1d5   : > { %v947_v1 = vpop.trf.xlu0 }
 0x1da   : > { %2204 = vmatmul.mubr.msk.bf16.vlgmr.msra.gmra.mrb[12].mxu1 %vm552_vm5, %v947_v1  ;;  %v1088_v5 = vpop.trf.xlu0 }
 0x1db   : > { %2214 = vmatpush3.bf16.msra.mxu1 %v1103_v2  ;;  %2215 = vmatprep.mubr.msk.bf16.mxu1 %vm2380_vm4, %v2377_v8 }
 0x1dc   : > { %2225 = vmatprep.subr.bf16.mxu1 %v2377_v8 }
 0x1de   : > { %v1230_v9 = vpop.trf.xlu0  ;;  %v1371_v13 = vpop.trf.xlu1 }
 0x1e2   : > { %2216 = vmatmul.mubr.msk.bf16.vlgmr.msra.gmra.mrb[16].mxu1 %vm552_vm5, %v1088_v5  ;;  %v1513_v15 = vpop.trf.xlu0 }
 0x1e3   : > { %2226 = vmatpush3.bf16.msra.mxu1 %v1245_v6  ;;  %2227 = vmatprep.mubr.msk.bf16.mxu1 %vm2380_vm4, %v2377_v8 }
 0x1e4   : > { %2237 = vmatprep.subr.bf16.mxu1 %v2377_v8 }
 0x1ea   : > { %2228 = vmatmul.mubr.msk.bf16.vlgmr.msra.gmra.mrb[20].mxu1 %vm552_vm5, %v1230_v9 }
 0x1eb   : > { %2238 = vmatpush3.bf16.msra.mxu1 %v1386_v11  ;;  %2239 = vmatprep.mubr.msk.bf16.mxu1 %vm2380_vm4, %v2377_v8 }
 0x1ec   : > { %2249 = vmatprep.subr.bf16.mxu1 %v2377_v8 }
 0x1f2   : > { %2240 = vmatmul.mubr.msk.bf16.vlgmr.msra.gmra.mrb[24].mxu1 %vm552_vm5, %v1371_v13 }
 0x1f3   : > { %2250 = vmatpush3.bf16.msra.mxu1 %v1528_v14  ;;  %2251 = vmatprep.mubr.msk.bf16.mxu1 %vm2380_vm4, %v2377_v8 }
 0x1f4   : > { %2261 = vmatprep.subr.bf16.mxu1 %v2377_v8 }
 0x1fa   : > { %2252 = vmatmul.mubr.msk.bf16.vlgmr.msra.gmra.mrb[28].mxu1 %vm552_vm5, %v1513_v15 }
 0x1fb   : > { %2263 = vmatprep.mubr.msk.bf16.mxu1 %vm2380_vm4, %v2377_v8 }
 0x261   : > { %v594_v16 = vpop.f32.mrb[0].mxu1 }
 0x262   : > { %v600_v17 = vsel %vm468_vm0, %v594_v16, -inf  ;;  %v2169_v18 = vpop.f32.mrb[1].mxu1 }
 0x263   : > { %601 = vmax.xlane.f32.xlu0 %v600_v17  ;;  %v597_v19 = vpop.f32.mrb[2].mxu1 }
 0x264   : > { %v2170_v20 = vpop.f32.mrb[3].mxu1 }
 0x269   : > { %v722_v21 = vpop.f32.mrb[4].mxu1 }
 0x26a   : > { %v2181_v22 = vpop.f32.mrb[5].mxu1  ;;  %v728_v23 = vsel %vm468_vm0, %v722_v21, -inf }
 0x26b   : > { %729 = vmax.xlane.f32.xlu0 %v728_v23  ;;  %v725_v24 = vpop.f32.mrb[6].mxu1 }
 0x26c   : > { %v2182_v25 = vpop.f32.mrb[7].mxu1 }
 0x2a5   : > { %v856_v26 = vpop.f32.mrb[8].mxu1 }
 0x2a6   : > { %v2193_v27 = vpop.f32.mrb[9].mxu1  ;;  %v862_v28 = vsel %vm468_vm0, %v856_v26, -inf }
 0x2a7   : > { %863 = vmax.xlane.f32.xlu0 %v862_v28  ;;  %v859_v29 = vpop.f32.mrb[10].mxu1 }
 0x2a8   : > { %v2194_v30 = vpop.f32.mrb[11].mxu1 }
 0x2ad   : > { %v998_v31 = vpop.f32.mrb[12].mxu1 }
 0x2ae   : > { %v2205_v32 = vpop.f32.mrb[13].mxu1  ;;  %v1004_v33 = vsel %vm468_vm0, %v998_v31, -inf }
 0x2af   : > { %1005 = vmax.xlane.f32.xlu0 %v1004_v33  ;;  %v1001_v34 = vpop.f32.mrb[14].mxu1 }
 0x2b0   : > { %v2206_v35 = vpop.f32.mrb[15].mxu1 }
 0x2b5   : > { %v1139_v36 = vpop.f32.mrb[16].mxu1 }
 0x2b6   : > { %v2217_v37 = vpop.f32.mrb[17].mxu1  ;;  %v1145_v38 = vsel %vm468_vm0, %v1139_v36, -inf }
 0x2b7   : > { %1146 = vmax.xlane.f32.xlu0 %v1145_v38  ;;  %v1142_v39 = vpop.f32.mrb[18].mxu1 }
 0x2b8   : > { %v2218_v40 = vpop.f32.mrb[19].mxu1 }
 0x2bd   : > { %v2558_v41 = vpop.f32.mrb[20].mxu1 }
 0x2be   : > { %v2229_v42 = vpop.f32.mrb[21].mxu1  ;;  %v1287_v43 = vsel %vm468_vm0, %v2558_v41, -inf }
 0x2bf   : > { %1288 = vmax.xlane.f32.xlu1 %v1287_v43  ;;  %v1284_v44 = vpop.f32.mrb[22].mxu1 }
 0x2c0   : > { %v2230_v45 = vpop.f32.mrb[23].mxu1 }
 0x2c5   : > { %v2562_v46 = vpop.f32.mrb[24].mxu1 }
 0x2c6   : > { %v2241_v47 = vpop.f32.mrb[25].mxu1  ;;  %v1428_v48 = vsel %vm468_vm0, %v2562_v46, -inf }
 0x2c7   : > { %1429 = vmax.xlane.f32.xlu0 %v1428_v48  ;;  %v1425_v49 = vpop.f32.mrb[26].mxu1 }
 0x2c8   : > { %v2242_v50 = vpop.f32.mrb[27].mxu1 }
 0x2cd   : > { %v1564_v51 = vpop.f32.mrb[28].mxu1 }
 0x2ce   : > { %v2253_v52 = vpop.f32.mrb[29].mxu1  ;;  %v1570_v53 = vsel %vm468_vm0, %v1564_v51, -inf }
 0x2cf   : > { %1571 = vmax.xlane.f32.xlu0 %v1570_v53  ;;  %v1567_v54 = vpop.f32.mrb[30].mxu1 }
 0x2d0   : > { %v2254_v55 = vpop.f32.mrb[31].mxu1 }
 0x2e5   : > { %457 = vperm.xlu0 %2308, %v444_v56  }
 0x2f0   : > { %v602_v57 = vpop.xlane.xlu0 %601 }
 0x2f1   : > { %v603_v58 = vsub.f32 %v594_v16, %v602_v57 }
 0x2f3   : > { %v604_v59 = vmul.f32 1.442695, %v603_v58 }
 0x2f5   : > { %2316 = vpow2.f32 %v604_v59 }
 0x2f8   : > { %v730_v60 = vpop.xlane.xlu0 %729 }
 0x2f9   : > { %v731_v61 = vsub.f32 %v722_v21, %v730_v60 }
 0x2fb   : > { %v732_v62 = vmul.f32 1.442695, %v731_v61 }
 0x2fd   : > { %2318 = vpow2.f32 %v732_v62 }
 0x2ff   : > { %v2317_v63 = vpop.eup %2316 }
 0x300   : > { %v606_v0 = vsel %vm468_vm0, %v2317_v63, 0.0 }
 0x301   : > { %607 = vadd.xlane.f32.xlu1 %v606_v0 }
 0x307   : > { %v2571_v1 = vpop.eup %2318 }
 0x308   : > { %v734_v2 = vsel %vm468_vm0, %v2571_v1, 0.0 }
 0x309   : > { %735 = vadd.xlane.f32.xlu1 %v734_v2 }
 0x334   : > { %v864_v3 = vpop.xlane.xlu0 %863 }
 0x335   : > { %v865_v5 = vsub.f32 %v856_v26, %v864_v3 }
 0x337   : > { %v866_v6 = vmul.f32 1.442695, %v865_v5 }
 0x339   : > { %2320 = vpow2.f32 %v866_v6 }
 0x33c   : > { %v1006_v7 = vpop.xlane.xlu0 %1005 }
 0x33d   : > { %v1007_v9 = vsub.f32 %v998_v31, %v1006_v7 }
 0x33f   : > { %v1008_v11 = vmul.f32 1.442695, %v1007_v9 }
 0x341   : > { %2322 = vpow2.f32 %v1008_v11 }
 0x343   : > { %v2575_v12 = vpop.eup %2320 }
 0x344   : > { %v1147_v13 = vpop.xlane.xlu0 %1146  ;;  %v868_v14 = vsel %vm468_vm0, %v2575_v12, 0.0 }
 0x345   : > { %v1148_v15 = vsub.f32 %v1139_v36, %v1147_v13  ;;  %869 = vadd.xlane.f32.xlu1 %v868_v14 }
 0x347   : > { %v1149_v16 = vmul.f32 1.442695, %v1148_v15 }
 0x349   : > { %2324 = vpow2.f32 %v1149_v16 }
 0x34b   : > { %v2579_v17 = vpop.eup %2322 }
 0x34c   : > { %v1010_v18 = vsel %vm468_vm0, %v2579_v17, 0.0  ;;  %v1289_v29 = vpop.xlane.xlu1 %1288 }
 0x34d   : > { %1011 = vadd.xlane.f32.xlu1 %v1010_v18  ;;  %v1290_v30 = vsub.f32 %v2558_v41, %v1289_v29 }
 0x34f   : > { %v1291_v31 = vmul.f32 1.442695, %v1290_v30 }
 0x351   : > { %2326 = vpow2.f32 %v1291_v31 }
 0x353   : > { %v2583_v19 = vpop.eup %2324 }
 0x354   : > { %v1151_v20 = vsel %vm468_vm0, %v2583_v19, 0.0  ;;  %v1430_v21 = vpop.xlane.xlu0 %1429 }
 0x355   : > { %1152 = vadd.xlane.f32.xlu1 %v1151_v20  ;;  %v1431_v32 = vsub.f32 %v2562_v46, %v1430_v21 }
 0x357   : > { %v1432_v33 = vmul.f32 1.442695, %v1431_v32 }
 0x359   : > { %2328 = vpow2.f32 %v1432_v33 }
 0x35b   : > { %v2593_v35 = vpop.eup %2326 }
 0x35c   : > { %v1572_v22 = vpop.xlane.xlu0 %1571  ;;  %v1293_v37 = vsel %vm468_vm0, %v2593_v35, 0.0 }
 0x35d   : > { %v1573_v34 = vsub.f32 %v1564_v51, %v1572_v22 }
 0x363   : > { %v2597_v38 = vpop.eup %2328 }
 0x364   : > { %v458_v23 = vpop.permute.xlu0 %457  ;;  %v1434_v39 = vsel %vm468_vm0, %v2597_v38, 0.0 }
 0x365   : > { %v522_v24 = vadd.f32 %v2492_v10, %v458_v23  ;;  %v1574_v10 = vmul.f32 1.442695, %v1573_v34 }
 0x367   : > { %530 = vst.msk [vmem:[#allocation2 + $0x10] sm:$0xff] %vm527_vm2, %v522_v24  ;;  %2330 = vpow2.f32 %v1574_v10 }
 0x36e   : > { %v932_v25 = vld [vmem:[#allocation2 + $0x14] sm:$0xf]  ;;  %v790_v26 = vld [vmem:[#allocation2 + $0x10] sm:$0xf] }
 0x36f   : > { %v1015_v27 = vpack.c.bf16 %v932_v25, %v932_v25  ;;  %v873_v28 = vpack.c.bf16 %v790_v26, %v790_v26  ;;  %v1073_v48 = vld [vmem:[#allocation2 + $0x10] sm:$0xf]  ;;  %v1215_v55 = vld [vmem:[#allocation2 + $0x14] sm:$0xf] }
 0x370   : > { %v533_v49 = vld [vmem:[#allocation2 + $0x10] sm:$0xf]  ;;  %v1156_v51 = vpack.c.bf16 %v1073_v48, %v1073_v48  ;;  %v1298_v58 = vpack.c.bf16 %v1215_v55, %v1215_v55  ;;  %v1498_v59 = vld [vmem:[#allocation2 + $0x14] sm:$0xf] }
 0x371   : > { %1018 = vrot.lane.b32.xlu0 %v1015_v27, %s2378_s22  ;;  %876 = vrot.lane.b32.xlu1 %v873_v28, %s2378_s22  ;;  %v2601_v40 = vpop.eup %2330  ;;  %v611_v52 = vpack.c.bf16 %v533_v49, %v533_v49  ;;  %v1356_v54 = vld [vmem:[#allocation2 + $0x10] sm:$0xf]  ;;  %v663_v60 = vld [vmem:[#allocation2 + $0x14] sm:$0xf]  ;;  %v1581_v61 = vpack.c.bf16 %v1498_v59, %v1498_v59 }
 0x372   : > { %v1576_v42 = vsel %vm468_vm0, %v2601_v40, 0.0  ;;  %v1439_v57 = vpack.c.bf16 %v1356_v54, %v1356_v54  ;;  %v739_v62 = vpack.c.bf16 %v663_v60, %v663_v60 }
 0x38e   : > { %v608_v36 = vpop.xlane.xlu1 %607 }
 0x38f   : > { %2332 = vrcp.f32 %v608_v36 }
 0x390   : > { %1294 = vadd.xlane.f32.xlu0 %v1293_v37 }
 0x395   : > { %1435 = vadd.xlane.f32.xlu1 %v1434_v39 }
 0x396   : > { %v736_v41 = vpop.xlane.xlu1 %735 }
 0x397   : > { %2334 = vrcp.f32 %v736_v41 }
 0x399   : > { %v2333_v43 = vpop.eup %2332  ;;  %1577 = vadd.xlane.f32.xlu1 %v1576_v42 }
 0x39a   : > { %v610_v44 = vmul.f32 %v2333_v43, %v2317_v63 }
 0x39c   : > { %v612_v45 = vpack.c.bf16 %v610_v44, %v610_v44 }
 0x39e   : > { %v617_v46 = vsel %vm468_vm0, %v612_v45, 0 }
 0x39f   : > { %2172 = vmatpush3.bf16.xpose.msra.mxu0 %v617_v46 }
 0x3a0   : > { %2183 = vmatprep.subr.bf16.mxu0 %v2377_v8 }
 0x3a1   : > { %v2335_v47 = vpop.eup %2334 }
 0x3a2   : > { %v738_v50 = vmul.f32 %v2335_v47, %v2571_v1 }
 0x3a4   : > { %v740_v53 = vpack.c.bf16 %v738_v50, %v738_v50 }
 0x3a6   : > { %1159 = vrot.lane.b32.xlu0 %v1156_v51, %s2379_s23  ;;  %2174 = vmatmul.mubr.msk.bf16.vlgmr.msra.gmra.mrb[4].mxu0 %vm468_vm0, %v611_v52  ;;  %v745_v56 = vsel %vm468_vm0, %v740_v53, 0 }
 0x3a7   : > { %2184 = vmatpush3.bf16.xpose.msra.mxu0 %v745_v56  ;;  %2185 = vmatprep.mubr.msk.bf16.mxu0 %vm2380_vm4, %v2377_v8 }
 0x3a8   : > { %2195 = vmatprep.subr.bf16.mxu0 %v2377_v8 }
 0x3aa   : > { %1442 = vrot.lane.b32.xlu1 %v1439_v57, %s2381_s24  ;;  %1301 = vrot.lane.b32.xlu0 %v1298_v58, %s2379_s23 }
 0x3ae   : > { %1584 = vrot.lane.b32.xlu0 %v1581_v61, %s2381_s24  ;;  %2186 = vmatmul.mubr.msk.bf16.vlgmr.msra.gmra.mrb[8].mxu0 %vm468_vm0, %v739_v62 }
 0x3af   : > { %2197 = vmatprep.mubr.msk.bf16.mxu0 %vm2380_vm4, %v2377_v8 }
 0x3d2   : > { %v870_v63 = vpop.xlane.xlu1 %869 }
 0x3d3   : > { %2336 = vrcp.f32 %v870_v63 }
 0x3da   : > { %v1012_v0 = vpop.xlane.xlu1 %1011 }
 0x3db   : > { %2338 = vrcp.f32 %v1012_v0  ;;  %v1640_v0 = vld [vmem:[%s2748_s4] sm:$0xff] }
 0x3dd   : > { %v2337_v1 = vpop.eup %2336 }
 0x3de   : > { %v872_v2 = vmul.f32 %v2337_v1, %v2575_v12 }
 0x3e0   : > { %v874_v3 = vpack.c.bf16 %v872_v2, %v872_v2  ;;  %v1694_v2 = vld [vmem:[%s2750_s6] sm:$0xff] }
 0x3e2   : > { %v1153_v5 = vpop.xlane.xlu1 %1152  ;;  %v882_v6 = vsel %vm468_vm0, %v874_v3, 0 }
 0x3e3   : > { %2340 = vrcp.f32 %v1153_v5  ;;  %2196 = vmatpush3.bf16.xpose.msra.mxu0 %v882_v6  ;;  %v1019_v18 = vpop.permute.xlu0 %1018 }
 0x3e4   : > { %2207 = vmatprep.subr.bf16.mxu0 %v2377_v8 }
 0x3e5   : > { %v2339_v7 = vpop.eup %2338 }
 0x3e6   : > { %v1014_v9 = vmul.f32 %v2339_v7, %v2579_v17  ;;  %v877_v13 = vpop.permute.xlu1 %876  ;;  %v1739_v7 = vld [vmem:[%s2752_s8 + $0x8] sm:$0xff] }
 0x3e8   : > { %v1016_v11 = vpack.c.bf16 %v1014_v9, %v1014_v9 }
 0x3ea   : > { %2198 = vmatmul.mubr.msk.bf16.vlgmr.msra.gmra.mrb[12].mxu0 %vm468_vm0, %v877_v13  ;;  %v1024_v14 = vsel %vm468_vm0, %v1016_v11, 0  ;;  %v1741_v11 = vld [vmem:[%s2752_s8 + $0x18] sm:$0xff]  ;;  %v1743_v13 = vld [vmem:[%s2752_s8 + $0x28] sm:$0xff] }
 0x3eb   : > { %2208 = vmatpush3.bf16.xpose.msra.mxu0 %v1024_v14  ;;  %2209 = vmatprep.mubr.msk.bf16.mxu0 %vm2380_vm4, %v2377_v8  ;;  %v1745_v14 = vld [vmem:[%s2752_s8 + $0x38] sm:$0xff] }
 0x3ec   : > { %2219 = vmatprep.subr.bf16.mxu0 %v2377_v8 }
 0x3ed   : > { %v2341_v12 = vpop.eup %2340 }
 0x3ee   : > { %v1155_v15 = vmul.f32 %v2341_v12, %v2583_v19  ;;  %v1982_v12 = vld [vmem:[%s2755_s11] sm:$0xff] }
 0x3f0   : > { %v1157_v16 = vpack.c.bf16 %v1155_v15, %v1155_v15  ;;  %v1693_v15 = vld [vmem:[%s2749_s5] sm:$0xff] }
 0x3f2   : > { %2210 = vmatmul.mubr.msk.bf16.vlgmr.msra.gmra.mrb[16].mxu0 %vm468_vm0, %v1019_v18  ;;  %v1165_v17 = vsel %vm468_vm0, %v1157_v16, 0  ;;  %v1738_v16 = vld [vmem:[%s2752_s8] sm:$0xff] }
 0x3f3   : > { %2220 = vmatpush3.bf16.xpose.msra.mxu0 %v1165_v17  ;;  %2221 = vmatprep.mubr.msk.bf16.mxu0 %vm2380_vm4, %v2377_v8  ;;  %v1740_v17 = vld [vmem:[%s2752_s8 + $0x10] sm:$0xff] }
 0x3f4   : > { %2231 = vmatprep.subr.bf16.mxu0 %v2377_v8 }
 0x41d   : > { %v1295_v20 = vpop.xlane.xlu0 %1294 }
 0x41e   : > { %2342 = vrcp.f32 %v1295_v20  ;;  %v1742_v20 = vld [vmem:[%s2752_s8 + $0x20] sm:$0xff] }
 0x421   : > { %v1160_v21 = vpop.permute.xlu0 %1159 }
 0x422   : > { %2222 = vmatmul.mubr.msk.bf16.vlgmr.msra.gmra.mrb[20].mxu0 %vm468_vm0, %v1160_v21  ;;  %v1436_v22 = vpop.xlane.xlu1 %1435 }
 0x423   : > { %2344 = vrcp.f32 %v1436_v22  ;;  %2233 = vmatprep.mubr.msk.bf16.mxu0 %vm2380_vm4, %v2377_v8  ;;  %v1744_v22 = vld [vmem:[%s2752_s8 + $0x30] sm:$0xff] }
 0x425   : > { %v1302_v31 = vpop.permute.xlu0 %1301 }
 0x426   : > { %v1578_v19 = vpop.xlane.xlu1 %1577 }
 0x427   : > { %2346 = vrcp.f32 %v1578_v19  ;;  %v1931_v19 = vld [vmem:[%s2754_s10] sm:$0xff] }
 0x428   : > { %v2343_v23 = vpop.eup %2342 }
 0x429   : > { %v1297_v24 = vmul.f32 %v2343_v23, %v2593_v35  ;;  %v1585_v36 = vpop.permute.xlu0 %1584  ;;  %v1983_v23 = vld [vmem:[%s2756_s12] sm:$0xff] }
 0x42a   : > { %v1443_v10 = vpop.permute.xlu1 %1442 }
 0x42b   : > { %v1299_v25 = vpack.c.bf16 %v1297_v24, %v1297_v24 }
 0x42d   : > { %v2345_v26 = vpop.eup %2344  ;;  %v1307_v27 = vsel %vm468_vm0, %v1299_v25, 0 }
 0x42e   : > { %2232 = vmatpush3.bf16.xpose.msra.mxu0 %v1307_v27  ;;  %v1438_v28 = vmul.f32 %v2345_v26, %v2597_v38 }
 0x42f   : > { %2243 = vmatprep.subr.bf16.mxu0 %v2377_v8 }
 0x430   : > { %v1440_v29 = vpack.c.bf16 %v1438_v28, %v1438_v28 }
 0x431   : > { %v2347_v30 = vpop.eup %2346 }
 0x432   : > { %v1448_v32 = vsel %vm468_vm0, %v1440_v29, 0  ;;  %v1580_v33 = vmul.f32 %v2347_v30, %v2601_v40 }
 0x434   : > { %v1582_v34 = vpack.c.bf16 %v1580_v33, %v1580_v33 }
 0x435   : > { %2234 = vmatmul.mubr.msk.bf16.vlgmr.msra.gmra.mrb[24].mxu0 %vm468_vm0, %v1302_v31  ;;  %v1637_v31 = vld [vmem:[%s2747_s3] sm:$0xf] }
 0x436   : > { %2244 = vmatpush3.bf16.xpose.msra.mxu0 %v1448_v32  ;;  %2245 = vmatprep.mubr.msk.bf16.mxu0 %vm2380_vm4, %v2377_v8  ;;  %v1590_v35 = vsel %vm468_vm0, %v1582_v34, 0  ;;  %v2312_v32 = vld [vmem:[%s2751_s7] sm:$0xff]  }
 0x437   : > { %2255 = vmatprep.subr.bf16.mxu0 %v2377_v8 }
 0x43d   : > { %2246 = vmatmul.mubr.msk.bf16.vlgmr.msra.gmra.mrb[28].mxu0 %vm468_vm0, %v1443_v10 }
 0x43e   : > { %2256 = vmatpush3.bf16.xpose.msra.mxu0 %v1590_v35  ;;  %2257 = vmatprep.mubr.msk.bf16.mxu0 %vm2380_vm4, %v2377_v8 }
 0x445   : > { %2258 = vmatmul.mubr.msk.bf16.vlgmr.msra.gmra.mrb[32].mxu0 %vm468_vm0, %v1585_v36 }
 0x446   : > { %2269 = vmatprep.mubr.msk.bf16.mxu0 %vm468_vm0, %v2312_v32 }
 0x479   : > { %v653_v37 = vpop.f32.mrb[4].mxu0 }
 0x47a   : > { %660 = vst.msk [vmem:[#allocation3] sm:$0xf] %vm659_vm6, %v653_v37  ;;  %v2175_v38 = vpop.f32.mrb[5].mxu0 }
 0x47b   : > { %v656_v39 = vpop.f32.mrb[6].mxu0 }
 0x47c   : > { %v2176_v40 = vpop.f32.mrb[7].mxu0 }
 0x481   : > { %v781_v41 = vpop.f32.mrb[8].mxu0 }
 0x482   : > { %787 = vst.msk [vmem:[#allocation3 + $0x4] sm:$0xf] %vm659_vm6, %v781_v41  ;;  %v2187_v42 = vpop.f32.mrb[9].mxu0 }
 0x483   : > { %v784_v43 = vpop.f32.mrb[10].mxu0 }
 0x484   : > { %v2188_v44 = vpop.f32.mrb[11].mxu0 }
 0x4bd   : > { %v918_v45 = vpop.f32.mrb[12].mxu0 }
 0x4be   : > { %925 = vrot.lane.b32.xlu0 %v918_v45, %s2382_s29  ;;  %v2199_v46 = vpop.f32.mrb[13].mxu0 }
 0x4bf   : > { %v921_v47 = vpop.f32.mrb[14].mxu0 }
 0x4c0   : > { %v2200_v48 = vpop.f32.mrb[15].mxu0 }
 0x4c5   : > { %v1060_v49 = vpop.f32.mrb[16].mxu0 }
 0x4c6   : > { %1067 = vrot.lane.b32.xlu0 %v1060_v49, %s2382_s29  ;;  %v2211_v50 = vpop.f32.mrb[17].mxu0 }
 0x4c7   : > { %v1063_v51 = vpop.f32.mrb[18].mxu0 }
 0x4c8   : > { %v2212_v52 = vpop.f32.mrb[19].mxu0 }
 0x4f5   : > { %v1201_v53 = vpop.f32.mrb[20].mxu0 }
 0x4f6   : > { %1208 = vrot.lane.b32.xlu0 %v1201_v53, %s2383_s30  ;;  %v2223_v54 = vpop.f32.mrb[21].mxu0 }
 0x4f7   : > { %v1204_v55 = vpop.f32.mrb[22].mxu0 }
 0x4f8   : > { %v2224_v56 = vpop.f32.mrb[23].mxu0 }
 0x508   : > { %v1343_v57 = vpop.f32.mrb[24].mxu0 }
 0x509   : > { %1350 = vrot.lane.b32.xlu1 %v1343_v57, %s2383_s30  ;;  %v2235_v58 = vpop.f32.mrb[25].mxu0  ;;  %s435_s30 = scalar_lea.vmem %s2757_s13, %s2079_s27 }
 0x50a   : > { %v1346_v59 = vpop.f32.mrb[26].mxu0 }
 0x50b   : > { %v2236_v60 = vpop.f32.mrb[27].mxu0 }
 0x510   : > { %v1484_v61 = vpop.f32.mrb[28].mxu0 }
 0x511   : > { %1491 = vrot.lane.b32.xlu0 %v1484_v61, %s2384_s14  ;;  %v2247_v62 = vpop.f32.mrb[29].mxu0 }
 0x512   : > { %v1487_v63 = vpop.f32.mrb[30].mxu0 }
 0x513   : > { %v2248_v1 = vpop.f32.mrb[31].mxu0 }
 0x514   : > { %v2313_v1 = vld [vmem:[%s2751_s7 + $0x8] sm:$0xff]  }
 0x515   : > { %1643 = vperm.xlu0 %2308, %v1640_v0  }
 0x518   : > { %v1626_v3 = vpop.f32.mrb[32].mxu0 }
 0x519   : > { %1725 = vperm.xlu0 %2308, %v1694_v2   ;;  %1633 = vrot.lane.b32.xlu1 %v1626_v3, %s2384_s14  ;;  %v2259_v5 = vpop.f32.mrb[33].mxu0  ;;  %v2314_v2 = vld [vmem:[%s2751_s7 + $0x10] sm:$0xff]   ;;  %v2315_v3 = vld [vmem:[%s2751_s7 + $0x18] sm:$0xff]  }
 0x51a   : > { %v1629_v6 = vpop.f32.mrb[34].mxu0 }
 0x51b   : > { %v2260_v9 = vpop.f32.mrb[35].mxu0 }
 0x51d   : > { %1753 = vperm.xlu0 %2308, %v1739_v7   ;;  %1719 = vperm.xlu1 %2309, %v1693_v15  }
 0x521   : > { %1763 = vperm.xlu0 %2308, %v1741_v11   ;;  %1748 = vperm.xlu1 %2309, %v1738_v16  }
 0x525   : > { %1773 = vperm.xlu0 %2308, %v1743_v13   ;;  %1758 = vperm.xlu1 %2309, %v1740_v17  }
 0x529   : > { %1783 = vperm.xlu0 %2308, %v1745_v14   ;;  %1768 = vperm.xlu1 %2309, %v1742_v20  }
 0x52d   : > { %2007 = vperm.xlu0 %2308, %v1982_v12   ;;  %1778 = vperm.xlu1 %2309, %v1744_v22  }
 0x530   : > { %v926_v18 = vpop.permute.xlu0 %925 }
 0x531   : > { %929 = vst.msk [vmem:[#allocation3] sm:$0xf] %vm928_vm7, %v926_v18  ;;  %1934 = vperm.xlu1 %2309, %v1931_v19  }
 0x535   : > { %2013 = vperm.xlu1 %2309, %v1983_v23  }
 0x538   : > { %v1068_v21 = vpop.permute.xlu0 %1067 }
 0x539   : > { %1070 = vst.msk [vmem:[#allocation3 + $0x4] sm:$0xf] %vm928_vm7, %v1068_v21 }
 0x568   : > { %v1209_v24 = vpop.permute.xlu0 %1208 }
 0x569   : > { %1212 = vst.msk [vmem:[#allocation3] sm:$0xf] %vm1211_vm8, %v1209_v24 }
 0x57b   : > { %v1351_v25 = vpop.permute.xlu1 %1350 }
 0x57c   : > { %1353 = vst.msk [vmem:[#allocation3 + $0x4] sm:$0xf] %vm1211_vm8, %v1351_v25 }
 0x583   : > { %v1492_v26 = vpop.permute.xlu0 %1491 }
 0x584   : > { %1495 = vst.msk [vmem:[#allocation3] sm:$0xf] %vm1494_vm9, %v1492_v26 }
 0x58b   : > { %v1634_v27 = vpop.permute.xlu1 %1633 }
 0x58c   : > { %1636 = vst.msk [vmem:[#allocation3 + $0x4] sm:$0xf] %vm1494_vm9, %v1634_v27 }
 0x593   : > { %v1638_v28 = vld [vmem:[#allocation3] sm:$0xff] }
 0x594   : > { %v1639_v29 = vpack.c.bf16 %v1638_v28, %v1638_v28  ;;  %v1644_v33 = vpop.permute.xlu0 %1643 }
 0x596   : > { %v1650_v30 = vsel %vm475_vm1, %v1639_v29, 0 }
 0x597   : > { %2262 = vmatpush3.bf16.msra.mxu1 %v1650_v30 }
 0x598   : > { %2277 = vmatprep.subr.bf16.mxu1 %v2377_v8  ;;  %v1726_v61 = vpop.permute.xlu0 %1725 }
 0x59a   : > { %2264 = vmatmul.mubr.msk.bf16.vlgmr.msra.gmra.mrb[32].mxu1 %vm468_vm0, %v1637_v31 }
 0x59b   : > { %2285 = vmatprep.mubr.msk.bf16.mxu1 %vm2380_vm4, %v2377_v8 }
 0x59c   : > { %v1720_v59 = vpop.permute.xlu1 %1719  ;;  %v1754_v6 = vpop.permute.xlu0 %1753 }
 0x5a0   : > { %v1749_v5 = vpop.permute.xlu1 %1748  ;;  %v1764_v9 = vpop.permute.xlu0 %1763 }
 0x5a4   : > { %v1759_v7 = vpop.permute.xlu1 %1758  ;;  %v1774_v21 = vpop.permute.xlu0 %1773 }
 0x5a8   : > { %v1769_v12 = vpop.permute.xlu1 %1768  ;;  %v1784_v29 = vpop.permute.xlu0 %1783 }
 0x5ac   : > { %v1779_v25 = vpop.permute.xlu1 %1778 }
 0x66d   : > { %v1686_v34 = vpop.f32.mrb[32].mxu1 }
 0x66e   : > { %v1687_v10 = vadd.f32 %v1686_v34, %v1644_v33  ;;  %v2265_v35 = vpop.f32.mrb[33].mxu1 }
 0x66f   : > { %v1689_v36 = vpop.f32.mrb[34].mxu1 }
 0x670   : > { %v1692_v37 = vadd.f32 %v1687_v10, %v2480_v4  ;;  %v2266_v38 = vpop.f32.mrb[35].mxu1 }
 0x672   : > { %v1695_v39 = vsel %vm527_vm2, %v1692_v37, 0.0 }
 0x673   : > { %v1696_v40 = vrot.slane %v1695_v39, 4 }
 0x675   : > { %v1697_v41 = vadd.f32 %v1696_v40, %v1695_v39 }
 0x677   : > { %v1698_v42 = vrot.slane %v1697_v41, 2 }
 0x679   : > { %v1699_v43 = vadd.f32 %v1698_v42, %v1697_v41 }
 0x67b   : > { %v1700_v44 = vrot.slane %v1699_v43, 1 }
 0x67d   : > { %v1701_v45 = vadd.f32 %v1700_v44, %v1699_v43 }
 0x67f   : > { %v1703_v46 = vmul.f32 0.125, %v1701_v45 }
 0x681   : > { %v1704_v47 = vsub.f32 %v1692_v37, %v1703_v46 }
 0x683   : > { %v1705_v48 = vmul.f32 %v1704_v47, %v1704_v47 }
 0x685   : > { %v1706_v49 = vsel %vm527_vm2, %v1705_v48, 0.0 }
 0x686   : > { %v1707_v50 = vrot.slane %v1706_v49, 4 }
 0x688   : > { %v1708_v51 = vadd.f32 %v1707_v50, %v1706_v49 }
 0x68a   : > { %v1709_v52 = vrot.slane %v1708_v51, 2 }
 0x68c   : > { %v1710_v53 = vadd.f32 %v1709_v52, %v1708_v51 }
 0x68e   : > { %v1711_v54 = vrot.slane %v1710_v53, 1 }
 0x690   : > { %v1712_v4 = vadd.f32 %v1711_v54, %v1710_v53 }
 0x692   : > { %v1713_v55 = vmul.f32 0.125, %v1712_v4 }
 0x694   : > { %v1714_v56 = vadd.f32 1e-05, %v1713_v55 }
 0x696   : > { %2348 = vrsqrt.f32 %v1714_v56 }
 0x6a0   : > { %v2349_v57 = vpop.eup %2348 }
 0x6a1   : > { %v1716_v58 = vmul.f32 %v2349_v57, %v1704_v47 }
 0x6a3   : > { %v1722_v60 = vmul.f32 %v1720_v59, %v1716_v58 }
 0x6a5   : > { %v2710_v62 = vadd.f32 %v1726_v61, %v1722_v60 }
 0x6a7   : > { %v1737_v63 = vpack.c.bf16 %v2710_v62, %v2710_v62 }
 0x6a9   : > { %2290 = vmatprep.subr.msk.bf16.mxu0 %vm475_vm1, %v1737_v63  ;;  %v1819_v0 = vsel %vm475_vm1, %v1737_v63, 0 }
 0x6aa   : > { %2268 = vmatpush3.bf16.msra.mxu0 %v1819_v0 }
 0x6ad   : > { %2270 = vmatmul.mubr.msk.bf16.vlgmr.msra.gmra.mrb[36].mxu0 %vm468_vm0, %v2313_v1 }
 0x6ae   : > { %2273 = vmatprep.mubr.msk.bf16.mxu0 %vm468_vm0, %v2314_v2 }
 0x6b5   : > { %2274 = vmatmul.mubr.msk.bf16.gmra.mrb[40].mxu0 %vm468_vm0, %v2315_v3 }
 0x780   : > { %v2271_v11 = vpop.f32.mrb[36].mxu0 }
 0x781   : > { %v1864_v13 = vadd.f32 %v2271_v11, %v1759_v7  ;;  %v1855_v14 = vpop.f32.mrb[37].mxu0 }
 0x782   : > { %v1856_v15 = vadd.f32 %v1855_v14, %v1749_v5  ;;  %v2272_v16 = vpop.f32.mrb[38].mxu0  ;;  %v1926_v14 = vld [vmem:[%s2753_s9] sm:$0xf] }
 0x783   : > { %v1896_v18 = vmul.f32 0.70710677, %v1864_v13  ;;  %v1867_v17 = vadd.f32 %v2272_v16, %v1764_v9  ;;  %v1858_v20 = vpop.f32.mrb[39].mxu0  ;;  %v1888_v44 = vmul.f32 0.5, %v1864_v13 }
 0x784   : > { %v1894_v22 = vmul.f32 0.70710677, %v1856_v15  ;;  %v1859_v19 = vadd.f32 %v1858_v20, %v1754_v6  ;;  %v1886_v47 = vmul.f32 0.5, %v1856_v15 }
 0x785   : > { %2350 = verf.f32 %v1896_v18  ;;  %v1897_v23 = vmul.f32 0.70710677, %v1867_v17  ;;  %v1889_v45 = vmul.f32 0.5, %v1867_v17 }
 0x786   : > { %2352 = verf.f32 %v1894_v22  ;;  %v1895_v24 = vmul.f32 0.70710677, %v1859_v19  ;;  %v1887_v48 = vmul.f32 0.5, %v1859_v19 }
 0x787   : > { %2354 = verf.f32 %v1897_v23 }
 0x788   : > { %2356 = verf.f32 %v1895_v24  ;;  %v2275_v26 = vpop.f32.mrb[40].mxu0 }
 0x789   : > { %v1880_v27 = vadd.f32 %v2275_v26, %v1779_v25  ;;  %v1871_v28 = vpop.f32.mrb[41].mxu0 }
 0x78a   : > { %v1872_v30 = vadd.f32 %v1871_v28, %v1769_v12  ;;  %v2276_v31 = vpop.f32.mrb[42].mxu0  ;;  %v1935_v12 = vpop.permute.xlu1 %1934 }
 0x78b   : > { %v1900_v32 = vmul.f32 0.70710677, %v1880_v27  ;;  %v1883_v33 = vadd.f32 %v2276_v31, %v1784_v29  ;;  %v1874_v34 = vpop.f32.mrb[43].mxu0  ;;  %v1892_v61 = vmul.f32 0.5, %v1880_v27 }
 0x78c   : > { %v1898_v10 = vmul.f32 0.70710677, %v1872_v30  ;;  %v1875_v35 = vadd.f32 %v1874_v34, %v1774_v21  ;;  %v1890_v1 = vmul.f32 0.5, %v1872_v30 }
 0x78d   : > { %2358 = verf.f32 %v1900_v32  ;;  %v1901_v36 = vmul.f32 0.70710677, %v1883_v33  ;;  %v1893_v63 = vmul.f32 0.5, %v1883_v33 }
 0x78e   : > { %2360 = verf.f32 %v1898_v10  ;;  %v1899_v37 = vmul.f32 0.70710677, %v1875_v35  ;;  %v1891_v2 = vmul.f32 0.5, %v1875_v35 }
 0x78f   : > { %v2351_v38 = vpop.eup %2350  ;;  %2362 = verf.f32 %v1901_v36 }
 0x790   : > { %v2353_v39 = vpop.eup %2352  ;;  %v1912_v40 = vadd.f32 1.0, %v2351_v38  ;;  %2364 = verf.f32 %v1899_v37 }
 0x791   : > { %v2355_v41 = vpop.eup %2354  ;;  %v1910_v42 = vadd.f32 1.0, %v2353_v39  ;;  %v2008_v39 = vpop.permute.xlu0 %2007 }
 0x792   : > { %v2357_v43 = vpop.eup %2356  ;;  %v1913_v46 = vadd.f32 1.0, %v2355_v41  ;;  %v1920_v50 = vmul.f32 %v1912_v40, %v1888_v44  ;;  %v2014_v41 = vpop.permute.xlu1 %2013 }
 0x793   : > { %v1911_v49 = vadd.f32 1.0, %v2357_v43  ;;  %v1918_v52 = vmul.f32 %v1910_v42, %v1886_v47 }
 0x794   : > { %v1921_v51 = vmul.f32 %v1913_v46, %v1889_v45 }
 0x795   : > { %v1919_v53 = vmul.f32 %v1911_v49, %v1887_v48 }
 0x796   : > { %v1928_v54 = vpack.c.bf16 %v1921_v51, %v1920_v50 }
 0x797   : > { %v2359_v4 = vpop.eup %2358  ;;  %v1927_v55 = vpack.c.bf16 %v1919_v53, %v1918_v52 }
 0x798   : > { %v2361_v56 = vpop.eup %2360  ;;  %v1916_v57 = vadd.f32 1.0, %v2359_v4 }
 0x799   : > { %v2363_v58 = vpop.eup %2362  ;;  %v1914_v59 = vadd.f32 1.0, %v2361_v56  ;;  %2278 = vmatpush3.bf16.msra.mxu1 %v1927_v55 }
 0x79a   : > { %v2365_v60 = vpop.eup %2364  ;;  %v1917_v0 = vadd.f32 1.0, %v2363_v58  ;;  %2279 = vmatprep.subr.bf16.mxu1 %v2377_v8  ;;  %v1924_v5 = vmul.f32 %v1916_v57, %v1892_v61 }
 0x79b   : > { %v1915_v3 = vadd.f32 1.0, %v2365_v60  ;;  %v1922_v7 = vmul.f32 %v1914_v59, %v1890_v1 }
 0x79c   : > { %v1925_v6 = vmul.f32 %v1917_v0, %v1893_v63 }
 0x79d   : > { %v1923_v9 = vmul.f32 %v1915_v3, %v1891_v2  ;;  %2280 = vmatpush3.bf16.msra.mxu1 %v1928_v54 }
 0x79e   : > { %v1930_v11 = vpack.c.bf16 %v1925_v6, %v1924_v5  ;;  %2281 = vmatprep.subr.bf16.mxu1 %v2377_v8 }
 0x79f   : > { %v1929_v13 = vpack.c.bf16 %v1923_v9, %v1922_v7 }
 0x7a1   : > { %2282 = vmatpush3.bf16.msra.mxu1 %v1929_v13 }
 0x7a2   : > { %2283 = vmatprep.subr.bf16.mxu1 %v2377_v8 }
 0x7a5   : > { %2284 = vmatpush3.bf16.msra.mxu1 %v1930_v11 }
 0x7a8   : > { %2286 = vmatmul.mubr.msk.bf16.vlgmr.msra.gmra.mrb[36].mxu1 %vm1937_vm10, %v1926_v14 }
 0x87b   : > { %v1975_v15 = vpop.f32.mrb[36].mxu1 }
 0x87c   : > { %v1976_v16 = vadd.f32 %v1975_v15, %v1935_v12  ;;  %v2287_v18 = vpop.f32.mrb[37].mxu1 }
 0x87d   : > { %v1978_v17 = vpop.f32.mrb[38].mxu1 }
 0x87e   : > { %v1981_v20 = vadd.f32 %v1976_v16, %v2710_v62  ;;  %v2288_v21 = vpop.f32.mrb[39].mxu1 }
 0x880   : > { %v1984_v22 = vsel %vm527_vm2, %v1981_v20, 0.0 }
 0x881   : > { %v1985_v19 = vrot.slane %v1984_v22, 4 }
 0x883   : > { %v1986_v23 = vadd.f32 %v1985_v19, %v1984_v22 }
 0x885   : > { %v1987_v8 = vrot.slane %v1986_v23, 2 }
 0x887   : > { %v1988_v24 = vadd.f32 %v1987_v8, %v1986_v23 }
 0x889   : > { %v1989_v25 = vrot.slane %v1988_v24, 1 }
 0x88b   : > { %v1990_v26 = vadd.f32 %v1989_v25, %v1988_v24 }
 0x88d   : > { %v1991_v27 = vmul.f32 0.125, %v1990_v26 }
 0x88f   : > { %v1992_v28 = vsub.f32 %v1981_v20, %v1991_v27 }
 0x891   : > { %v1993_v29 = vmul.f32 %v1992_v28, %v1992_v28 }
 0x893   : > { %v1994_v30 = vsel %vm527_vm2, %v1993_v29, 0.0 }
 0x894   : > { %v1995_v31 = vrot.slane %v1994_v30, 4 }
 0x896   : > { %v1996_v32 = vadd.f32 %v1995_v31, %v1994_v30 }
 0x898   : > { %v1997_v33 = vrot.slane %v1996_v32, 2 }
 0x89a   : > { %v1998_v34 = vadd.f32 %v1997_v33, %v1996_v32 }
 0x89c   : > { %v1999_v62 = vrot.slane %v1998_v34, 1 }
 0x89e   : > { %v2000_v10 = vadd.f32 %v1999_v62, %v1998_v34 }
 0x8a0   : > { %v2001_v35 = vmul.f32 0.125, %v2000_v10 }
 0x8a2   : > { %v2002_v36 = vadd.f32 1e-05, %v2001_v35 }
 0x8a4   : > { %2366 = vrsqrt.f32 %v2002_v36 }
 0x8ae   : > { %v2367_v37 = vpop.eup %2366 }
 0x8af   : > { %v2004_v38 = vmul.f32 %v2367_v37, %v1992_v28 }
 0x8b1   : > { %v2010_v40 = vmul.f32 %v2008_v39, %v2004_v38 }
 0x8b3   : > { %v2016_v42 = vadd.f32 %v2014_v41, %v2010_v40 }
 0x8b5   : > { %v2017_v43 = vpack.c.bf16 %v2016_v42, %v2016_v42 }
 0x8b7   : > { %2019 = vst.msk [vmem:[%s435_s30] sm:$0xf] %vm2018_vm11, %v2017_v43 }
 0x8b8 PF: > { %s23_s25 = sadd.s32 1, %s2374_s25  }
 0x8b9   : > { %p20_p4 = scmp.ge.s32.totalorder %s23_s25, 4  }
 0x8bb   :  { %22 = sbr.rel (!%p20_p4) target bundleno = 1 (0x1), region = 102 }

// kernel: residual_block_forward.4
= control target key start
LH: loop header
LB: loop body
LE: loop exit
PB: predicated region body
PF: predicated region fallthrough
CT: control target
= control target key end

     0   :  { %s3780_s25 = smov 0   ;;  %s4314_s0 = inlined_call_operand.vmem [shape: bf16[2,8,32], index: 0, kind: input, shape index: {}]   ;;  %s4315_s1 = inlined_call_operand.vmem [shape: bf16[24,8], index: 1, kind: input, shape index: {}]   ;;  %s4316_s2 = inlined_call_operand.vmem [shape: f32[24,1], index: 2, kind: input, shape index: {}]   ;;  %s4317_s3 = inlined_call_operand.vmem [shape: bf16[8,8], index: 3, kind: input, shape index: {}]   ;;  %s4318_s4 = inlined_call_operand.vmem [shape: f32[8,1], index: 4, kind: input, shape index: {}]   ;;  %s4319_s5 = inlined_call_operand.vmem [shape: f32[8,1], index: 5, kind: input, shape index: {}]   ;;  %s4320_s6 = inlined_call_operand.vmem [shape: f32[8,1], index: 6, kind: input, shape index: {}]   ;;  %s4321_s7 = inlined_call_operand.vmem [shape: bf16[64,8], index: 7, kind: input, shape index: {}]   ;;  %s4322_s8 = inlined_call_operand.vmem [shape: f32[64,1], index: 8, kind: input, shape index: {}]   ;;  %s4323_s9 = inlined_call_operand.vmem [shape: bf16[8,64], index: 9, kind: input, shape index: {}]   ;;  %s4324_s10 = inlined_call_operand.vmem [shape: f32[8,1], index: 10, kind: input, shape index: {}]   ;;  %s4325_s11 = inlined_call_operand.vmem [shape: f32[8,1], index: 11, kind: input, shape index: {}]   ;;  %s4326_s12 = inlined_call_operand.vmem [shape: f32[8,1], index: 12, kind: input, shape index: {}]   ;;  %s4327_s13 = inlined_call_operand.vmem [shape: bf16[2,8,32], index: 13, kind: output, shape index: {}]  }
   0x1 LB: > { %s3205_s26 = sadd.s32 4294967295, %s3691_s25   ;;  %p3209_p0 = scmp.ge.s32.totalorder %s3691_s25, 1  ;;  %s3691_s25 = sphi %s3780_s25, %s23_s25  }
   0x2   : > { %p386_p1 = scmp.lt.s32.totalorder %s3691_s25, 3 }
   0x4   : > { %p387_p2 = pnand %p3209_p0, %p386_p1 }
   0x5   : > { %p428_p3 = scmp.lt.s32.totalorder (!%p387_p2), %s3205_s26, 1  ;;  %v3594_v0 = vld [vmem:[%s4315_s1] sm:$0xff] (!%p387_p2)   ;;  %vm468_vm0 = vcmask (!%p387_p2), 64512   ;;  %v3693_v2 = vmov (!%p387_p2), 0   ;;  %vm475_vm1 = vcmask (!%p387_p2), 1043456   ;;  %v443_v3 = vld [vmem:[%s4316_s2 + $0x8] sm:$0xff] (!%p387_p2) }
   0x6   : > { %390 = sbr.rel (%p387_p2) target bundleno = 2386 (0x952), region = 72  ;;  %v442_v1 = vld [vmem:[%s4316_s2] sm:$0xff] (!%p387_p2)  ;;  %3341 = vmatprep.mubr.msk.bf16.mxu0 (!%p387_p2), %vm468_vm0, %v3594_v0  ;;  %3592 = vset.pattern.permute.xlu0 (!%p387_p2), %v3693_v2  ;;  %v3595_v6 = vld [vmem:[%s4315_s1 + $0x8] ss:$0 sps:$4 sm:$0xff] (!%p387_p2)   ;;  %v3694_v7 = vmov (!%p387_p2), 0.0   ;;  %vm527_vm2 = vcmask (!%p387_p2), 261120  }
   0x7   : > { %447 = vperm.xlu0 (!%p387_p2), %3592, %v442_v1   ;;  %3345 = vmatprep.subr.bf16.mxu1 (!%p387_p2), %v3694_v7  ;;  %vm556_vm3 = vcmask (!%p387_p2), 1041408   ;;  %s3695_s22 = smov (!%p387_p2), 120   ;;  %s3696_s23 = smov (!%p387_p2), 124   ;;  %vm3698_vm4 = vmmov (!%p387_p2), 0   ;;  %vm552_vm5 = vcmask (!%p387_p2), 31744   ;;  %vm600_vm6 = vcmask (!%p387_p2), 27648  }
   0x8   : > { %s3697_s24 = smov (!%p387_p2), 116   ;;  %3347 = vmatprep.mubr.msk.bf16.mxu1 (!%p387_p2), %vm3698_vm4, %v3694_v7  ;;  %s3699_s27 = smov (!%p387_p2), 112   ;;  %vm928_vm7 = vcmask (!%p387_p2), 60448   ;;  %vm1211_vm8 = vcmask (!%p387_p2), 93248   ;;  %vm1494_vm9 = vcmask (!%p387_p2), 126048   ;;  %vm1777_vm10 = vcmask (!%p387_p2), 158848  }
   0x9   : > { %s3700_s28 = smov (!%p387_p2), 108   ;;  %s3701_s29 = smov (!%p387_p2), 104   ;;  %vm2060_vm11 = vcmask (!%p387_p2), 191648   ;;  %vm2343_vm12 = vcmask (!%p387_p2), 224448   ;;  %vm2626_vm13 = vcmask (!%p387_p2), 257248   ;;  %vm3069_vm14 = vcmask (!%p387_p2), 523264  }
   0xa   : > { %s3702_s30 = smov (!%p387_p2), 100   ;;  %s3703_s18 = smov (!%p387_p2), 4   ;;  %vm3150_vm15 = vcmask (!%p387_p2), 257024  }
   0xb   : > { %452 = vperm.xlu0 (!%p387_p2), %3592, %v443_v3   ;;  %s3704_s19 = smov (!%p387_p2), 8   ;;  %s3705_s20 = smov (!%p387_p2), 12  }
   0xc   : > { %s3706_s21 = smov (!%p387_p2), 16  }
   0xd   : > { %s4329_s26 = smov (!%p428_p3, %s3205_s26), 1 }
   0xe   : > { %s3210_s14 = sshll.u32 %s4329_s26, 2 }
   0xf   : > { %s3804_s17 = scalar_lea.vmem %s4314_s0, %s3210_s14 }
  0x10   : > { %v437_v4 = vld [vmem:[%s3804_s17] sm:$0xf] }
  0x11   : > { %3565 = vmatprep.subr.msk.bf16.mxu0 %vm475_vm1, %v437_v4  ;;  %v477_v5 = vsel %vm475_vm1, %v437_v4, 0 }
  0x12   : > { %3340 = vmatpush3.bf16.msra.mxu0 %v477_v5 }
  0x13   : > { %3351 = vmatprep.subr.bf16.mxu0 %v3694_v7 }
  0x15   : > { %3342 = vmatmul.mubr.msk.bf16.vlgmr.msra.gmra.mrb[0].mxu0 %vm468_vm0, %v3595_v6 }
  0x16   : > { %3353 = vmatprep.mubr.msk.bf16.mxu0 %vm3698_vm4, %v3694_v7 }
  0x86   : > { %v448_v8 = vpop.permute.xlu0 %447 }
  0x8a   : > { %v453_v13 = vpop.permute.xlu0 %452 }
  0xe8   : > { %v3818_v9 = vpop.f32.mrb[0].mxu0 }
  0xe9   : > { %v513_v10 = vpop.f32.mrb[1].mxu0 }
  0xea   : > { %v514_v11 = vadd.f32 %v513_v10, %v448_v8  ;;  %v3344_v12 = vpop.f32.mrb[2].mxu0 }
  0xeb   : > { %v516_v14 = vpop.f32.mrb[3].mxu0 }
  0xec   : > { %528 = vst.msk [vmem:[#allocation2] sm:$0xff] %vm527_vm2, %v514_v11  ;;  %v517_v15 = vadd.f32 %v516_v14, %v453_v13 }
  0xee   : > { %529 = vst.msk [vmem:[#allocation2 + $0x8] sm:$0xff] %vm527_vm2, %v517_v15 }
  0xf3   : > { %v1071_v16 = vld [vmem:[#allocation2] sm:$0xf]  ;;  %v930_v22 = vld [vmem:[#allocation2 + $0x4] sm:$0xf] }
  0xf4   : > { %v788_v17 = vld [vmem:[#allocation2] sm:$0xf]  ;;  %v1074_v18 = vpack.c.bf16 %v1071_v16, %v1071_v16  ;;  %v933_v26 = vpack.c.bf16 %v930_v22, %v930_v22  ;;  %v1496_v27 = vld [vmem:[#allocation2 + $0x4] sm:$0xf] }
  0xf5   : > { %v791_v19 = vpack.c.bf16 %v788_v17, %v788_v17  ;;  %v532_v20 = vld [vmem:[#allocation2 + $0x8] sm:$0xf]  ;;  %v1354_v21 = vld [vmem:[#allocation2] sm:$0xf]  ;;  %v1213_v28 = vld [vmem:[#allocation2 + $0x4] sm:$0xf]  ;;  %v1499_v29 = vpack.c.bf16 %v1496_v27, %v1496_v27 }
  0xf6   : > { %1077 = vrot.lane.b32.xlu0 %v1074_v18, %s3695_s22  ;;  %v535_v23 = vpack.c.bf16 %v532_v20, %v532_v20  ;;  %v1357_v25 = vpack.c.bf16 %v1354_v21, %v1354_v21  ;;  %v1216_v30 = vpack.c.bf16 %v1213_v28, %v1213_v28  ;;  %v1637_v31 = vld [vmem:[#allocation2] sm:$0xf]  ;;  %v661_v33 = vld [vmem:[#allocation2 + $0x4] sm:$0xf]  ;;  %v789_v48 = vld [vmem:[#allocation2 + $0x8] sm:$0xf] }
  0xf7   : > { %794 = vrot.lane.b32.xlu1 %v791_v19, %s3696_s23  ;;  %v1640_v32 = vpack.c.bf16 %v1637_v31, %v1637_v31  ;;  %v531_v34 = vld [vmem:[#allocation2] sm:$0xf]  ;;  %v664_v35 = vpack.c.bf16 %v661_v33, %v661_v33  ;;  %v1779_v37 = vld [vmem:[#allocation2 + $0x4] sm:$0xf]  ;;  %v792_v50 = vpack.c.bf16 %v789_v48, %v789_v48  ;;  %v1072_v52 = vld [vmem:[#allocation2 + $0x8] sm:$0xf] }
  0xf8   : > { %v558_v24 = vsel %vm556_vm3, %v535_v23, 0  ;;  %v534_v36 = vpack.c.bf16 %v531_v34, %v531_v34  ;;  %v1782_v38 = vpack.c.bf16 %v1779_v37, %v1779_v37  ;;  %v1920_v39 = vld [vmem:[#allocation2] sm:$0xf]  ;;  %v2062_v43 = vld [vmem:[#allocation2 + $0x4] sm:$0xf]  ;;  %v1075_v54 = vpack.c.bf16 %v1072_v52, %v1072_v52 }
  0xf9   : > { %3346 = vmatpush3.bf16.msra.mxu1 %v558_v24  ;;  %v2203_v40 = vld [vmem:[#allocation2] sm:$0xf]  ;;  %v1923_v41 = vpack.c.bf16 %v1920_v39, %v1920_v39  ;;  %v2065_v45 = vpack.c.bf16 %v2062_v43, %v2062_v43  ;;  %v2345_v47 = vld [vmem:[#allocation2 + $0x4] sm:$0xf]  ;;  %v931_v55 = vld [vmem:[#allocation2 + $0xc] sm:$0xf] }
  0xfa   : > { %1360 = vrot.lane.b32.xlu0 %v1357_v25, %s3697_s24  ;;  %3357 = vmatprep.subr.bf16.mxu1 %v3694_v7  ;;  %v2206_v42 = vpack.c.bf16 %v2203_v40, %v2203_v40  ;;  %v2486_v44 = vld [vmem:[#allocation2] sm:$0xf]  ;;  %v2348_v49 = vpack.c.bf16 %v2345_v47, %v2345_v47  ;;  %v2628_v51 = vld [vmem:[#allocation2 + $0x4] sm:$0xf]  ;;  %v1214_v56 = vld [vmem:[#allocation2 + $0xc] sm:$0xf]  ;;  %v934_v57 = vpack.c.bf16 %v931_v55, %v931_v55 }
  0xfb   : > { %936 = vrot.lane.b32.xlu1 %v933_v26, %s3696_s23  ;;  %v2489_v46 = vpack.c.bf16 %v2486_v44, %v2486_v44  ;;  %v2631_v53 = vpack.c.bf16 %v2628_v51, %v2628_v51  ;;  %v1217_v58 = vpack.c.bf16 %v1214_v56, %v1214_v56  ;;  %v1355_v59 = vld [vmem:[#allocation2 + $0x8] sm:$0xf]  ;;  %v1497_v60 = vld [vmem:[#allocation2 + $0xc] sm:$0xf] }
  0xfc   : > { %v1358_v61 = vpack.c.bf16 %v1355_v59, %v1355_v59  ;;  %v1500_v62 = vpack.c.bf16 %v1497_v60, %v1497_v60  ;;  %v1638_v63 = vld [vmem:[#allocation2 + $0x8] sm:$0xf]  ;;  %v1780_v0 = vld [vmem:[#allocation2 + $0xc] sm:$0xf] }
  0xfd   : > { %v1641_v1 = vpack.c.bf16 %v1638_v63, %v1638_v63  ;;  %v1783_v3 = vpack.c.bf16 %v1780_v0, %v1780_v0  ;;  %v1921_v4 = vld [vmem:[#allocation2 + $0x8] sm:$0xf]  ;;  %v2063_v5 = vld [vmem:[#allocation2 + $0xc] sm:$0xf] }
  0xfe   : > { %1502 = vrot.lane.b32.xlu0 %v1499_v29, %s3697_s24  ;;  %v1924_v6 = vpack.c.bf16 %v1921_v4, %v1921_v4  ;;  %v2066_v8 = vpack.c.bf16 %v2063_v5, %v2063_v5  ;;  %v2346_v16 = vld [vmem:[#allocation2 + $0xc] sm:$0xf]  ;;  %v2204_v17 = vld [vmem:[#allocation2 + $0x8] sm:$0xf] }
  0xff   : > { %1219 = vrot.lane.b32.xlu1 %v1216_v30, %s3695_s22  ;;  %v2349_v18 = vpack.c.bf16 %v2346_v16, %v2346_v16  ;;  %v2207_v19 = vpack.c.bf16 %v2204_v17, %v2204_v17  ;;  %v662_v20 = vld [vmem:[#allocation2 + $0xc] sm:$0xf] }
 0x100   : > { %v665_v21 = vpack.c.bf16 %v662_v20, %v662_v20  ;;  %v2629_v31 = vld [vmem:[#allocation2 + $0xc] sm:$0xf] }
 0x101   : > { %v2632_v33 = vpack.c.bf16 %v2629_v31, %v2629_v31 }
 0x102   : > { %1643 = vrot.lane.b32.xlu0 %v1640_v32, %s3699_s27  ;;  %v686_v23 = vsel %vm556_vm3, %v665_v21, 0  ;;  %v2487_v32 = vld [vmem:[#allocation2 + $0x8] sm:$0xf] }
 0x120   : > { %666 = vxpose.xlu0.c.b16.start.end [1/1] (short) (narrow) %v664_v35, 16  ;;  %v2490_v35 = vpack.c.bf16 %v2487_v32, %v2487_v32 }
 0x122   : > { %536 = vxpose.xlu1.c.b16.start.end [1/1] (short) (narrow) %v534_v36, 16 }
 0x126   : > { %1785 = vrot.lane.b32.xlu1 %v1782_v38, %s3699_s27 }
 0x129   : > { %1926 = vrot.lane.b32.xlu0 %v1923_v41, %s3700_s28 }
 0x12a   : > { %2209 = vrot.lane.b32.xlu1 %v2206_v42, %s3701_s29 }
 0x12d   : > { %2068 = vrot.lane.b32.xlu0 %v2065_v45, %s3700_s28  ;;  %v444_v45 = vld [vmem:[%s4316_s2 + $0x10] sm:$0xff] }
 0x12e   : > { %2492 = vrot.lane.b32.xlu1 %v2489_v46, %s3702_s30 }
 0x131   : > { %2351 = vrot.lane.b32.xlu0 %v2348_v49, %s3701_s29 }
 0x132   : > { %814 = vrot.lane.b32.xlu1 %v792_v50, %s3696_s23 }
 0x135   : > { %2634 = vrot.lane.b32.xlu0 %v2631_v53, %s3702_s30 }
 0x136   : > { %1097 = vrot.lane.b32.xlu1 %v1075_v54, %s3695_s22 }
 0x139   : > { %956 = vrot.lane.b32.xlu0 %v934_v57, %s3696_s23 }
 0x13a   : > { %1239 = vrot.lane.b32.xlu1 %v1217_v58, %s3695_s22 }
 0x13d   : > { %1380 = vrot.lane.b32.xlu0 %v1358_v61, %s3697_s24 }
 0x13e   : > { %1522 = vrot.lane.b32.xlu1 %v1500_v62, %s3697_s24 }
 0x141   : > { %1663 = vrot.lane.b32.xlu0 %v1641_v1, %s3699_s27 }
 0x142   : > { %1805 = vrot.lane.b32.xlu1 %v1783_v3, %s3699_s27 }
 0x145   : > { %1946 = vrot.lane.b32.xlu0 %v1924_v6, %s3700_s28 }
 0x146   : > { %2088 = vrot.lane.b32.xlu1 %v2066_v8, %s3700_s28 }
 0x168   : > { %v1078_v10 = vpop.permute.xlu0 %1077 }
 0x169   : > { %v795_v11 = vpop.permute.xlu1 %794 }
 0x16a   : > { %797 = vxpose.xlu0.c.b16.start.end [1/1] (short) (narrow) %v795_v11, 16 }
 0x16c   : > { %v1361_v13 = vpop.permute.xlu0 %1360 }
 0x16d   : > { %v937_v12 = vpop.permute.xlu1 %936 }
 0x16e   : > { %1080 = vxpose.xlu0.c.b16.start.end [1/1] (short) (narrow) %v1078_v10, 16  ;;  %939 = vxpose.xlu1.c.b16.start.end [1/1] (short) (narrow) %v937_v12, 16 }
 0x170   : > { %v1503_v15 = vpop.permute.xlu0 %1502 }
 0x171   : > { %v1220_v14 = vpop.permute.xlu1 %1219 }
 0x172   : > { %1363 = vxpose.xlu0.c.b16.start.end [1/1] (short) (narrow) %v1361_v13, 16  ;;  %1222 = vxpose.xlu1.c.b16.start.end [1/1] (short) (narrow) %v1220_v14, 16 }
 0x174   : > { %v1644_v24 = vpop.permute.xlu0 %1643 }
 0x176   : > { %1505 = vxpose.xlu1.c.b16.start.end [1/1] (short) (narrow) %v1503_v15, 16 }
 0x17a   : > { %2371 = vrot.lane.b32.xlu1 %v2349_v18, %s3701_s29 }
 0x17b   : > { %2229 = vrot.lane.b32.xlu0 %v2207_v19, %s3701_s29 }
 0x186   : > { %v674_v25 = vpop.trf.xlu0 }
 0x188   : > { %v544_v22 = vpop.trf.xlu1 }
 0x189   : > { %3348 = vmatmul.mubr.msk.bf16.vlgmr.msra.gmra.mrb[0].mxu1 %vm552_vm5, %v544_v22 }
 0x18a   : > { %3358 = vmatpush3.bf16.msra.mxu1 %v686_v23  ;;  %3359 = vmatprep.mubr.msk.bf16.mxu1 %vm3698_vm4, %v3694_v7 }
 0x18b   : > { %3369 = vmatprep.subr.bf16.mxu1 %v3694_v7 }
 0x191   : > { %3360 = vmatmul.mubr.msk.bf16.vlgmr.msra.gmra.mrb[4].mxu1 %vm552_vm5, %v674_v25 }
 0x192   : > { %3371 = vmatprep.mubr.msk.bf16.mxu1 %vm3698_vm4, %v3694_v7 }
 0x198   : > { %v1786_v26 = vpop.permute.xlu1 %1785 }
 0x199   : > { %1646 = vxpose.xlu0.c.b16.start.end [1/1] (short) (narrow) %v1644_v24, 16 }
 0x19b   : > { %v1927_v27 = vpop.permute.xlu0 %1926 }
 0x19c   : > { %v2210_v28 = vpop.permute.xlu1 %2209 }
 0x19d   : > { %1929 = vxpose.xlu0.c.b16.start.end [1/1] (short) (narrow) %v1927_v27, 16  ;;  %1788 = vxpose.xlu1.c.b16.start.end [1/1] (short) (narrow) %v1786_v26, 16 }
 0x19f   : > { %v2069_v29 = vpop.permute.xlu0 %2068 }
 0x1a0   : > { %v2493_v30 = vpop.permute.xlu1 %2492 }
 0x1a1   : > { %2071 = vxpose.xlu1.c.b16.start.end [1/1] (short) (narrow) %v2069_v29, 16 }
 0x1a3   : > { %v2352_v37 = vpop.permute.xlu0 %2351 }
 0x1a4   : > { %v815_v34 = vpop.permute.xlu1 %814 }
 0x1a5   : > { %v820_v36 = vsel %vm556_vm3, %v815_v34, 0  ;;  %2654 = vrot.lane.b32.xlu1 %v2632_v33, %s3702_s30 }
 0x1a6   : > { %2512 = vrot.lane.b32.xlu0 %v2490_v35, %s3702_s30  ;;  %3370 = vmatpush3.bf16.msra.mxu1 %v820_v36 }
 0x1a7   : > { %3381 = vmatprep.subr.bf16.mxu1 %v3694_v7  ;;  %v2635_v38 = vpop.permute.xlu0 %2634 }
 0x1a8   : > { %v1098_v39 = vpop.permute.xlu1 %1097 }
 0x1a9   : > { %v1103_v52 = vsel %vm556_vm3, %v1098_v39, 0 }
 0x1ab   : > { %v957_v40 = vpop.permute.xlu0 %956 }
 0x1ac   : > { %v1240_v41 = vpop.permute.xlu1 %1239  ;;  %v962_v49 = vsel %vm556_vm3, %v957_v40, 0 }
 0x1ad   : > { %v1245_v53 = vsel %vm556_vm3, %v1240_v41, 0 }
 0x1af   : > { %v1381_v42 = vpop.permute.xlu0 %1380 }
 0x1b0   : > { %v1523_v43 = vpop.permute.xlu1 %1522  ;;  %v1386_v55 = vsel %vm556_vm3, %v1381_v42, 0 }
 0x1b1   : > { %v1528_v57 = vsel %vm556_vm3, %v1523_v43, 0 }
 0x1b3   : > { %v1664_v44 = vpop.permute.xlu0 %1663 }
 0x1b4   : > { %v1806_v46 = vpop.permute.xlu1 %1805  ;;  %v1669_v59 = vsel %vm556_vm3, %v1664_v44, 0 }
 0x1b5   : > { %v1811_v62 = vsel %vm556_vm3, %v1806_v46, 0 }
 0x1b7   : > { %v1947_v47 = vpop.permute.xlu0 %1946 }
 0x1b8   : > { %v2089_v50 = vpop.permute.xlu1 %2088  ;;  %v1952_v1 = vsel %vm556_vm3, %v1947_v47, 0 }
 0x1b9   : > { %v2094_v4 = vsel %vm556_vm3, %v2089_v50, 0 }
 0x1c4   : > { %2212 = vxpose.xlu0.c.b16.start.end [1/1] (short) (narrow) %v2210_v28, 16 }
 0x1c8   : > { %2354 = vxpose.xlu1.c.b16.start.end [1/1] (short) (narrow) %v2352_v37, 16  ;;  %2495 = vxpose.xlu0.c.b16.start.end [1/1] (short) (narrow) %v2493_v30, 16 }
 0x1cc   : > { %3593 = vset.pattern.permute.xlu1 %v3693_v2  ;;  %2637 = vxpose.xlu0.c.b16.start.end [1/1] (short) (narrow) %v2635_v38, 16 }
 0x1cd   : > { %457 = vperm.xlu1 %3593, %v444_v45  }
 0x1d0   : > { %v805_v48 = vpop.trf.xlu0 }
 0x1d1   : > { %3372 = vmatmul.mubr.msk.bf16.vlgmr.msra.gmra.mrb[8].mxu1 %vm552_vm5, %v805_v48 }
 0x1d2   : > { %3382 = vmatpush3.bf16.msra.mxu1 %v962_v49  ;;  %3383 = vmatprep.mubr.msk.bf16.mxu1 %vm3698_vm4, %v3694_v7 }
 0x1d3   : > { %3393 = vmatprep.subr.bf16.mxu1 %v3694_v7 }
 0x1d4   : > { %v947_v51 = vpop.trf.xlu1  ;;  %v1088_v2 = vpop.trf.xlu0 }
 0x1d8   : > { %v1230_v54 = vpop.trf.xlu1  ;;  %v1371_v56 = vpop.trf.xlu0 }
 0x1d9   : > { %3384 = vmatmul.mubr.msk.bf16.vlgmr.msra.gmra.mrb[12].mxu1 %vm552_vm5, %v947_v51 }
 0x1da   : > { %3394 = vmatpush3.bf16.msra.mxu1 %v1103_v52  ;;  %3395 = vmatprep.mubr.msk.bf16.mxu1 %vm3698_vm4, %v3694_v7 }
 0x1db   : > { %3405 = vmatprep.subr.bf16.mxu1 %v3694_v7 }
 0x1dc   : > { %v1513_v58 = vpop.trf.xlu1 }
 0x1e1   : > { %3396 = vmatmul.mubr.msk.bf16.vlgmr.msra.gmra.mrb[16].mxu1 %vm552_vm5, %v1088_v2 }
 0x1e2   : > { %3406 = vmatpush3.bf16.msra.mxu1 %v1245_v53  ;;  %3407 = vmatprep.mubr.msk.bf16.mxu1 %vm3698_vm4, %v3694_v7 }
 0x1e3   : > { %3417 = vmatprep.subr.bf16.mxu1 %v3694_v7 }
 0x1e9   : > { %3408 = vmatmul.mubr.msk.bf16.vlgmr.msra.gmra.mrb[20].mxu1 %vm552_vm5, %v1230_v54 }
 0x1ea   : > { %3418 = vmatpush3.bf16.msra.mxu1 %v1386_v55  ;;  %3419 = vmatprep.mubr.msk.bf16.mxu1 %vm3698_vm4, %v3694_v7 }
 0x1eb   : > { %3429 = vmatprep.subr.bf16.mxu1 %v3694_v7 }
 0x1ec   : > { %v2372_v63 = vpop.permute.xlu1 %2371 }
 0x1ed   : > { %v2230_v60 = vpop.permute.xlu0 %2229  ;;  %v2377_v11 = vsel %vm556_vm3, %v2372_v63, 0 }
 0x1ee   : > { %v2235_v6 = vsel %vm556_vm3, %v2230_v60, 0 }
 0x1f1   : > { %3420 = vmatmul.mubr.msk.bf16.vlgmr.msra.gmra.mrb[24].mxu1 %vm552_vm5, %v1371_v56 }
 0x1f2   : > { %3430 = vmatpush3.bf16.msra.mxu1 %v1528_v57  ;;  %3431 = vmatprep.mubr.msk.bf16.mxu1 %vm3698_vm4, %v3694_v7 }
 0x1f3   : > { %3441 = vmatprep.subr.bf16.mxu1 %v3694_v7 }
 0x1f9   : > { %3432 = vmatmul.mubr.msk.bf16.vlgmr.msra.gmra.mrb[28].mxu1 %vm552_vm5, %v1513_v58 }
 0x1fa   : > { %3442 = vmatpush3.bf16.msra.mxu1 %v1669_v59  ;;  %3443 = vmatprep.mubr.msk.bf16.mxu1 %vm3698_vm4, %v3694_v7 }
 0x1fb   : > { %3453 = vmatprep.subr.bf16.mxu1 %v3694_v7 }
 0x1ff   : > { %v1654_v61 = vpop.trf.xlu0 }
 0x201   : > { %3444 = vmatmul.mubr.msk.bf16.vlgmr.msra.gmra.mrb[32].mxu1 %vm552_vm5, %v1654_v61 }
 0x202   : > { %3454 = vmatpush3.bf16.msra.mxu1 %v1811_v62  ;;  %3455 = vmatprep.mubr.msk.bf16.mxu1 %vm3698_vm4, %v3694_v7 }
 0x203   : > { %3465 = vmatprep.subr.bf16.mxu1 %v3694_v7  ;;  %v1796_v0 = vpop.trf.xlu1  ;;  %v1937_v3 = vpop.trf.xlu0 }
 0x207   : > { %v2079_v5 = vpop.trf.xlu1 }
 0x209   : > { %3456 = vmatmul.mubr.msk.bf16.vlgmr.msra.gmra.mrb[36].mxu1 %vm552_vm5, %v1796_v0 }
 0x20a   : > { %3466 = vmatpush3.bf16.msra.mxu1 %v1952_v1  ;;  %3467 = vmatprep.mubr.msk.bf16.mxu1 %vm3698_vm4, %v3694_v7 }
 0x20b   : > { %3477 = vmatprep.subr.bf16.mxu1 %v3694_v7 }
 0x211   : > { %3468 = vmatmul.mubr.msk.bf16.vlgmr.msra.gmra.mrb[40].mxu1 %vm552_vm5, %v1937_v3 }
 0x212   : > { %3478 = vmatpush3.bf16.msra.mxu1 %v2094_v4  ;;  %3479 = vmatprep.mubr.msk.bf16.mxu1 %vm3698_vm4, %v3694_v7 }
 0x213   : > { %3489 = vmatprep.subr.bf16.mxu1 %v3694_v7 }
 0x217   : > { %v2655_v12 = vpop.permute.xlu1 %2654 }
 0x218   : > { %v2513_v8 = vpop.permute.xlu0 %2512  ;;  %v2660_v16 = vsel %vm556_vm3, %v2655_v12, 0 }
 0x219   : > { %3480 = vmatmul.mubr.msk.bf16.vlgmr.msra.gmra.mrb[44].mxu1 %vm552_vm5, %v2079_v5  ;;  %v2518_v14 = vsel %vm556_vm3, %v2513_v8, 0 }
 0x21a   : > { %3490 = vmatpush3.bf16.msra.mxu1 %v2235_v6  ;;  %3491 = vmatprep.mubr.msk.bf16.mxu1 %vm3698_vm4, %v3694_v7 }
 0x21b   : > { %3501 = vmatprep.subr.bf16.mxu1 %v3694_v7 }
 0x22a   : > { %v2220_v10 = vpop.trf.xlu0 }
 0x22b   : > { %3492 = vmatmul.mubr.msk.bf16.vlgmr.msra.gmra.mrb[48].mxu1 %vm552_vm5, %v2220_v10 }
 0x22c   : > { %3502 = vmatpush3.bf16.msra.mxu1 %v2377_v11  ;;  %3503 = vmatprep.mubr.msk.bf16.mxu1 %vm3698_vm4, %v3694_v7 }
 0x22d   : > { %3513 = vmatprep.subr.bf16.mxu1 %v3694_v7 }
 0x22e   : > { %v2362_v13 = vpop.trf.xlu1  ;;  %v2503_v15 = vpop.trf.xlu0 }
 0x232   : > { %v2645_v17 = vpop.trf.xlu0 }
 0x233   : > { %3504 = vmatmul.mubr.msk.bf16.vlgmr.msra.gmra.mrb[52].mxu1 %vm552_vm5, %v2362_v13 }
 0x234   : > { %3514 = vmatpush3.bf16.msra.mxu1 %v2518_v14  ;;  %3515 = vmatprep.mubr.msk.bf16.mxu1 %vm3698_vm4, %v3694_v7 }
 0x235   : > { %3525 = vmatprep.subr.bf16.mxu1 %v3694_v7 }
 0x23b   : > { %3516 = vmatmul.mubr.msk.bf16.vlgmr.msra.gmra.mrb[56].mxu1 %vm552_vm5, %v2503_v15 }
 0x23c   : > { %3526 = vmatpush3.bf16.msra.mxu1 %v2660_v16  ;;  %3527 = vmatprep.mubr.msk.bf16.mxu1 %vm3698_vm4, %v3694_v7 }
 0x23d   : > { %3537 = vmatprep.subr.bf16.mxu1 %v3694_v7 }
 0x243   : > { %3528 = vmatmul.mubr.msk.bf16.vlgmr.msra.gmra.mrb[60].mxu1 %vm552_vm5, %v2645_v17 }
 0x244   : > { %3539 = vmatprep.mubr.msk.bf16.mxu1 %vm3698_vm4, %v3694_v7 }
 0x24c   : > { %v458_v18 = vpop.permute.xlu1 %457 }
 0x24d   : > { %v522_v19 = vadd.f32 %v3818_v9, %v458_v18 }
 0x24f   : > { %530 = vst.msk [vmem:[#allocation2 + $0x10] sm:$0xff] %vm527_vm2, %v522_v19 }
 0x256   : > { %v932_v20 = vld [vmem:[#allocation2 + $0x14] sm:$0xf]  ;;  %v790_v21 = vld [vmem:[#allocation2 + $0x10] sm:$0xf] }
 0x257   : > { %v1015_v22 = vpack.c.bf16 %v932_v20, %v932_v20  ;;  %v873_v23 = vpack.c.bf16 %v790_v21, %v790_v21  ;;  %v1073_v24 = vld [vmem:[#allocation2 + $0x10] sm:$0xf]  ;;  %v1215_v36 = vld [vmem:[#allocation2 + $0x14] sm:$0xf] }
 0x258   : > { %v1156_v25 = vpack.c.bf16 %v1073_v24, %v1073_v24  ;;  %v1356_v26 = vld [vmem:[#allocation2 + $0x10] sm:$0xf]  ;;  %v1298_v37 = vpack.c.bf16 %v1215_v36, %v1215_v36  ;;  %v1498_v53 = vld [vmem:[#allocation2 + $0x14] sm:$0xf] }
 0x259   : > { %1018 = vrot.lane.b32.xlu1 %v1015_v22, %s3696_s23  ;;  %876 = vrot.lane.b32.xlu0 %v873_v23, %s3696_s23  ;;  %v1439_v9 = vpack.c.bf16 %v1356_v26, %v1356_v26  ;;  %v1581_v56 = vpack.c.bf16 %v1498_v53, %v1498_v53  ;;  %v1781_v26 = vld [vmem:[#allocation2 + $0x14] sm:$0xf]  ;;  %s3708_s23 = smov 24  }
 0x25c   : > { %v3942_v27 = vpop.f32.mrb[0].mxu1 }
 0x25d   : > { %1159 = vrot.lane.b32.xlu1 %v1156_v25, %s3695_s22  ;;  %v3349_v28 = vpop.f32.mrb[1].mxu1  ;;  %v601_v35 = vsel %vm600_vm6, %v3942_v27, -inf }
 0x25e   : > { %v597_v29 = vpop.f32.mrb[2].mxu1  ;;  %v1864_v28 = vpack.c.bf16 %v1781_v26, %v1781_v26 }
 0x25f   : > { %v3350_v30 = vpop.f32.mrb[3].mxu1 }
 0x261   : > { %1442 = vrot.lane.b32.xlu1 %v1439_v9, %s3697_s24 }
 0x264   : > { %v3946_v31 = vpop.f32.mrb[4].mxu1 }
 0x265   : > { %v3361_v32 = vpop.f32.mrb[5].mxu1  ;;  %v728_v43 = vsel %vm600_vm6, %v3946_v31, -inf }
 0x266   : > { %v725_v33 = vpop.f32.mrb[6].mxu1 }
 0x267   : > { %v3362_v34 = vpop.f32.mrb[7].mxu1 }
 0x278   : > { %602 = vmax.xlane.f32.xlu0 %v601_v35 }
 0x28e   : > { %1301 = vrot.lane.b32.xlu0 %v1298_v37, %s3695_s22  ;;  %s3707_s22 = smov 20  }
 0x2a4   : > { %v3951_v38 = vpop.f32.mrb[8].mxu1 }
 0x2a5   : > { %v3373_v39 = vpop.f32.mrb[9].mxu1  ;;  %v862_v46 = vsel %vm600_vm6, %v3951_v38, -inf }
 0x2a6   : > { %v859_v40 = vpop.f32.mrb[10].mxu1 }
 0x2a7   : > { %v3374_v41 = vpop.f32.mrb[11].mxu1 }
 0x2ac   : > { %v3953_v42 = vpop.f32.mrb[12].mxu1 }
 0x2ad   : > { %729 = vmax.xlane.f32.xlu0 %v728_v43  ;;  %v1004_v44 = vsel %vm600_vm6, %v3953_v42, -inf  ;;  %v3385_v45 = vpop.f32.mrb[13].mxu1 }
 0x2ae   : > { %1005 = vmax.xlane.f32.xlu1 %v1004_v44  ;;  %v1001_v47 = vpop.f32.mrb[14].mxu1 }
 0x2af   : > { %v3386_v48 = vpop.f32.mrb[15].mxu1 }
 0x2b1   : > { %863 = vmax.xlane.f32.xlu0 %v862_v46 }
 0x2b4   : > { %v3961_v49 = vpop.f32.mrb[16].mxu1 }
 0x2b5   : > { %v1145_v50 = vsel %vm600_vm6, %v3961_v49, -inf  ;;  %v3397_v51 = vpop.f32.mrb[17].mxu1 }
 0x2b6   : > { %1146 = vmax.xlane.f32.xlu0 %v1145_v50  ;;  %v1142_v52 = vpop.f32.mrb[18].mxu1 }
 0x2b7   : > { %v3398_v2 = vpop.f32.mrb[19].mxu1 }
 0x2bc   : > { %v3965_v54 = vpop.f32.mrb[20].mxu1 }
 0x2bd   : > { %v1287_v55 = vsel %vm600_vm6, %v3965_v54, -inf  ;;  %v3409_v57 = vpop.f32.mrb[21].mxu1 }
 0x2be   : > { %1288 = vmax.xlane.f32.xlu0 %v1287_v55  ;;  %v1284_v58 = vpop.f32.mrb[22].mxu1 }
 0x2bf   : > { %1584 = vrot.lane.b32.xlu1 %v1581_v56, %s3697_s24  ;;  %v3410_v59 = vpop.f32.mrb[23].mxu1  ;;  %s3709_s24 = smov 28  }
 0x2c4   : > { %v3970_v60 = vpop.f32.mrb[24].mxu1 }
 0x2c5   : > { %v1428_v61 = vsel %vm600_vm6, %v3970_v60, -inf  ;;  %v3421_v62 = vpop.f32.mrb[25].mxu1 }
 0x2c6   : > { %1429 = vmax.xlane.f32.xlu0 %v1428_v61  ;;  %v1425_v63 = vpop.f32.mrb[26].mxu1 }
 0x2c7   : > { %v3422_v0 = vpop.f32.mrb[27].mxu1 }
 0x2cb   : > { %v3991_v32 = vpop.permute.xlu0 %876  ;;  %v4009_v58 = vpop.permute.xlu1 %1018 }
 0x2cc   : > { %v3974_v1 = vpop.f32.mrb[28].mxu1 }
 0x2cd   : > { %v1570_v3 = vsel %vm600_vm6, %v3974_v1, -inf  ;;  %v3433_v4 = vpop.f32.mrb[29].mxu1 }
 0x2ce   : > { %1571 = vmax.xlane.f32.xlu0 %v1570_v3  ;;  %v1567_v5 = vpop.f32.mrb[30].mxu1 }
 0x2cf   : > { %v3434_v6 = vpop.f32.mrb[31].mxu1  ;;  %v4011_v61 = vpop.permute.xlu1 %1159 }
 0x2d3   : > { %v4017_v3 = vpop.permute.xlu1 %1442 }
 0x2d4   : > { %v3978_v8 = vpop.f32.mrb[32].mxu1 }
 0x2d5   : > { %v3445_v10 = vpop.f32.mrb[33].mxu1 }
 0x2d6   : > { %v1708_v11 = vpop.f32.mrb[34].mxu1 }
 0x2d7   : > { %v3446_v12 = vpop.f32.mrb[35].mxu1 }
 0x2dc   : > { %v3980_v13 = vpop.f32.mrb[36].mxu1 }
 0x2dd   : > { %v3457_v14 = vpop.f32.mrb[37].mxu1  ;;  %v1853_v4 = vsel %vm600_vm6, %v3980_v13, -inf }
 0x2de   : > { %v1850_v15 = vpop.f32.mrb[38].mxu1 }
 0x2df   : > { %v3458_v16 = vpop.f32.mrb[39].mxu1 }
 0x2e4   : > { %v3982_v17 = vpop.f32.mrb[40].mxu1 }
 0x2e5   : > { %v3469_v18 = vpop.f32.mrb[41].mxu1  ;;  %v1994_v10 = vsel %vm600_vm6, %v3982_v17, -inf }
 0x2e6   : > { %v1991_v19 = vpop.f32.mrb[42].mxu1 }
 0x2e7   : > { %v3470_v20 = vpop.f32.mrb[43].mxu1 }
 0x2ec   : > { %v3984_v21 = vpop.f32.mrb[44].mxu1 }
 0x2ed   : > { %v2136_v22 = vsel %vm600_vm6, %v3984_v21, -inf  ;;  %v3481_v23 = vpop.f32.mrb[45].mxu1 }
 0x2ee   : > { %2137 = vmax.xlane.f32.xlu1 %v2136_v22  ;;  %v2133_v24 = vpop.f32.mrb[46].mxu1 }
 0x2ef   : > { %v3482_v25 = vpop.f32.mrb[47].mxu1 }
 0x2fe   : > { %v3988_v29 = vpop.f32.mrb[48].mxu1 }
 0x2ff   : > { %1867 = vrot.lane.b32.xlu1 %v1864_v28, %s3699_s27  ;;  %v3493_v9 = vpop.f32.mrb[49].mxu1  ;;  %v2277_v14 = vsel %vm600_vm6, %v3988_v29, -inf }
 0x300   : > { %v2274_v30 = vpop.f32.mrb[50].mxu1 }
 0x301   : > { %v3494_v33 = vpop.f32.mrb[51].mxu1 }
 0x305   : > { %v603_v34 = vpop.xlane.xlu0 %602 }
 0x306   : > { %v604_v35 = vsub.f32 %v3942_v27, %v603_v34  ;;  %v3994_v36 = vpop.f32.mrb[52].mxu1  ;;  %v1711_v27 = vsel %vm600_vm6, %v3978_v8, -inf }
 0x307   : > { %v3505_v37 = vpop.f32.mrb[53].mxu1  ;;  %v2419_v20 = vsel %vm600_vm6, %v3994_v36, -inf }
 0x308   : > { %v605_v39 = vmul.f32 1.442695, %v604_v35  ;;  %v2416_v40 = vpop.f32.mrb[54].mxu1 }
 0x309   : > { %v3506_v41 = vpop.f32.mrb[55].mxu1  ;;  %v4006_v53 = vpop.permute.xlu0 %1301 }
 0x30a   : > { %3600 = vpow2.f32 %v605_v39 }
 0x30e   : > { %v3996_v43 = vpop.f32.mrb[56].mxu1 }
 0x30f   : > { %v3517_v44 = vpop.f32.mrb[57].mxu1  ;;  %v2560_v23 = vsel %vm600_vm6, %v3996_v43, -inf }
 0x310   : > { %v2557_v45 = vpop.f32.mrb[58].mxu1  ;;  %v1639_v44 = vld [vmem:[#allocation2 + $0x10] sm:$0xf] }
 0x311   : > { %v3518_v46 = vpop.f32.mrb[59].mxu1  ;;  %v1722_v45 = vpack.c.bf16 %v1639_v44, %v1639_v44 }
 0x314   : > { %v3998_v47 = vpop.eup %3600 }
 0x315   : > { %v607_v48 = vsel %vm600_vm6, %v3998_v47, 0.0 }
 0x316   : > { %608 = vadd.xlane.f32.xlu0 %v607_v48  ;;  %v4002_v50 = vpop.f32.mrb[60].mxu1 }
 0x317   : > { %v3529_v51 = vpop.f32.mrb[61].mxu1 }
 0x318   : > { %v2699_v52 = vpop.f32.mrb[62].mxu1 }
 0x319   : > { %v3530_v2 = vpop.f32.mrb[63].mxu1 }
 0x31a   : > { %1712 = vmax.xlane.f32.xlu0 %v1711_v27 }
 0x33a   : > { %v730_v55 = vpop.xlane.xlu0 %729 }
 0x33b   : > { %v731_v56 = vsub.f32 %v3946_v31, %v730_v55  ;;  %v1006_v6 = vpop.xlane.xlu1 %1005 }
 0x33c   : > { %v1007_v15 = vsub.f32 %v3953_v42, %v1006_v6  ;;  %v2064_v6 = vld [vmem:[#allocation2 + $0x14] sm:$0xf] }
 0x33d   : > { %v732_v57 = vmul.f32 1.442695, %v731_v56 }
 0x33e   : > { %v864_v59 = vpop.xlane.xlu0 %863  ;;  %v1008_v19 = vmul.f32 1.442695, %v1007_v15 }
 0x33f   : > { %3602 = vpow2.f32 %v732_v57  ;;  %v865_v5 = vsub.f32 %v3951_v38, %v864_v59  ;;  %v4062_v46 = vpop.permute.xlu1 %1584 }
 0x341   : > { %v866_v16 = vmul.f32 1.442695, %v865_v5 }
 0x343   : > { %v1147_v0 = vpop.xlane.xlu0 %1146 }
 0x344   : > { %v1148_v38 = vsub.f32 %v3961_v49, %v1147_v0  ;;  %v2702_v49 = vsel %vm600_vm6, %v4002_v50, -inf }
 0x346   : > { %v1149_v42 = vmul.f32 1.442695, %v1148_v38 }
 0x349   : > { %v4013_v62 = vpop.eup %3602 }
 0x34a   : > { %v734_v63 = vsel %vm600_vm6, %v4013_v62, 0.0 }
 0x34b   : > { %735 = vadd.xlane.f32.xlu0 %v734_v63  ;;  %v1289_v31 = vpop.xlane.xlu0 %1288 }
 0x34c   : > { %v1290_v24 = vsub.f32 %v3965_v54, %v1289_v31  ;;  %v533_v31 = vld [vmem:[#allocation2 + $0x10] sm:$0xf] }
 0x34d   : > { %v612_v5 = vpack.c.bf16 %v533_v31, %v533_v31 }
 0x34e   : > { %v1291_v26 = vmul.f32 1.442695, %v1290_v24 }
 0x34f   : > { %1854 = vmax.xlane.f32.xlu0 %v1853_v4 }
 0x353   : > { %1995 = vmax.xlane.f32.xlu0 %v1994_v10  ;;  %v1430_v11 = vpop.xlane.xlu0 %1429  ;;  %v2147_v10 = vpack.c.bf16 %v2064_v6, %v2064_v6 }
 0x354   : > { %v1431_v12 = vsub.f32 %v3970_v60, %v1430_v11 }
 0x356   : > { %v1432_v18 = vmul.f32 1.442695, %v1431_v12 }
 0x357   : > { %2278 = vmax.xlane.f32.xlu0 %v2277_v14 }
 0x358   : > { %3604 = vpow2.f32 %v1432_v18 }
 0x359   : > { %3606 = vpow2.f32 %v866_v16 }
 0x35a   : > { %3608 = vpow2.f32 %v1008_v19 }
 0x35b   : > { %2420 = vmax.xlane.f32.xlu0 %v2419_v20  ;;  %v1572_v22 = vpop.xlane.xlu0 %1571 }
 0x35c   : > { %v1573_v60 = vsub.f32 %v3974_v1, %v1572_v22 }
 0x35e   : > { %v1574_v25 = vmul.f32 1.442695, %v1573_v60 }
 0x35f   : > { %2561 = vmax.xlane.f32.xlu0 %v2560_v23 }
 0x360   : > { %3610 = vpow2.f32 %v1574_v25 }
 0x361   : > { %3612 = vpow2.f32 %v1149_v42 }
 0x362   : > { %v4037_v28 = vpop.eup %3604  ;;  %3614 = vpow2.f32 %v1291_v26 }
 0x363   : > { %v4039_v9 = vpop.eup %3606  ;;  %2703 = vmax.xlane.f32.xlu0 %v2702_v49  ;;  %v1434_v1 = vsel %vm600_vm6, %v4037_v28, 0.0 }
 0x364   : > { %1435 = vadd.xlane.f32.xlu1 %v1434_v1  ;;  %v868_v54 = vsel %vm600_vm6, %v4039_v9, 0.0  ;;  %v4045_v30 = vpop.eup %3608 }
 0x365   : > { %v1010_v34 = vsel %vm600_vm6, %v4045_v30, 0.0 }
 0x367   : > { %869 = vadd.xlane.f32.xlu0 %v868_v54 }
 0x36a   : > { %v4047_v33 = vpop.eup %3610 }
 0x36b   : > { %v4051_v35 = vpop.eup %3612  ;;  %1011 = vadd.xlane.f32.xlu0 %v1010_v34  ;;  %v1576_v37 = vsel %vm600_vm6, %v4047_v33, 0.0 }
 0x36c   : > { %1577 = vadd.xlane.f32.xlu1 %v1576_v37  ;;  %v1151_v39 = vsel %vm600_vm6, %v4051_v35, 0.0  ;;  %v4057_v40 = vpop.eup %3614 }
 0x36d   : > { %v1293_v41 = vsel %vm600_vm6, %v4057_v40, 0.0 }
 0x36f   : > { %1152 = vadd.xlane.f32.xlu0 %v1151_v39 }
 0x373   : > { %1294 = vadd.xlane.f32.xlu0 %v1293_v41 }
 0x37b   : > { %v2138_v48 = vpop.xlane.xlu1 %2137 }
 0x37c   : > { %v2139_v51 = vsub.f32 %v3984_v21, %v2138_v48 }
 0x37e   : > { %v2140_v55 = vmul.f32 1.442695, %v2139_v51 }
 0x37f   : > { %v4116_v31 = vpop.permute.xlu1 %1867 }
 0x389   : > { %1725 = vrot.lane.b32.xlu0 %v1722_v45, %s3699_s27 }
 0x3a3   : > { %v609_v27 = vpop.xlane.xlu0 %608 }
 0x3a4   : > { %3616 = vrcp.f32 %v609_v27 }
 0x3a7   : > { %v1713_v52 = vpop.xlane.xlu0 %1712 }
 0x3a8   : > { %v1714_v2 = vsub.f32 %v3978_v8, %v1713_v52 }
 0x3aa   : > { %v1715_v56 = vmul.f32 1.442695, %v1714_v2  ;;  %v1922_v2 = vld [vmem:[#allocation2 + $0x10] sm:$0xf] }
 0x3ac   : > { %3618 = vpow2.f32 %v1715_v56 }
 0x3ad   : > { %3620 = vpow2.f32 %v2140_v55 }
 0x3ae   : > { %v3617_v57 = vpop.eup %3616 }
 0x3af   : > { %v611_v59 = vmul.f32 %v3617_v57, %v3998_v47  ;;  %v2005_v57 = vpack.c.bf16 %v1922_v2, %v1922_v2 }
 0x3b1   : > { %v613_v63 = vpack.c.bf16 %v611_v59, %v611_v59 }
 0x3b3   : > { %v618_v0 = vsel %vm552_vm5, %v613_v63, 0 }
 0x3b4   : > { %3352 = vmatpush3.bf16.xpose.msra.mxu0 %v618_v0 }
 0x3b5   : > { %3363 = vmatprep.subr.bf16.mxu0 %v3694_v7 }
 0x3b6   : > { %v4069_v4 = vpop.eup %3618 }
 0x3b7   : > { %v1717_v21 = vsel %vm600_vm6, %v4069_v4, 0.0  ;;  %v4073_v8 = vpop.eup %3620 }
 0x3b8   : > { %1718 = vadd.xlane.f32.xlu0 %v1717_v21  ;;  %v2142_v47 = vsel %vm600_vm6, %v4073_v8, 0.0 }
 0x3bb   : > { %3354 = vmatmul.mubr.msk.bf16.vlgmr.msra.gmra.mrb[4].mxu0 %vm552_vm5, %v612_v5 }
 0x3bc   : > { %2143 = vadd.xlane.f32.xlu0 %v2142_v47  ;;  %3365 = vmatprep.mubr.msk.bf16.mxu0 %vm3698_vm4, %v3694_v7 }
 0x3d2   : > { %2150 = vrot.lane.b32.xlu0 %v2147_v10, %s3700_s28 }
 0x3d8   : > { %v736_v11 = vpop.xlane.xlu0 %735 }
 0x3d9   : > { %3622 = vrcp.f32 %v736_v11 }
 0x3dc   : > { %v1855_v12 = vpop.xlane.xlu0 %1854 }
 0x3dd   : > { %v1856_v14 = vsub.f32 %v3980_v13, %v1855_v12 }
 0x3df   : > { %v1857_v15 = vmul.f32 1.442695, %v1856_v14  ;;  %v2488_v14 = vld [vmem:[#allocation2 + $0x10] sm:$0xf] }
 0x3e0   : > { %v1996_v16 = vpop.xlane.xlu0 %1995 }
 0x3e1   : > { %3624 = vpow2.f32 %v1857_v15  ;;  %v1997_v18 = vsub.f32 %v3982_v17, %v1996_v16  ;;  %v663_v17 = vld [vmem:[#allocation2 + $0x14] sm:$0xf]  ;;  %v2571_v16 = vpack.c.bf16 %v2488_v14, %v2488_v14 }
 0x3e3   : > { %v3623_v19 = vpop.eup %3622  ;;  %v1998_v38 = vmul.f32 1.442695, %v1997_v18 }
 0x3e4   : > { %v2279_v20 = vpop.xlane.xlu0 %2278  ;;  %v738_v22 = vmul.f32 %v3623_v19, %v4013_v62  ;;  %v2630_v19 = vld [vmem:[#allocation2 + $0x14] sm:$0xf] }
 0x3e5   : > { %3626 = vpow2.f32 %v1998_v38  ;;  %v2280_v60 = vsub.f32 %v3988_v29, %v2279_v20  ;;  %v739_v29 = vpack.c.bf16 %v663_v17, %v663_v17 }
 0x3e6   : > { %v740_v23 = vpack.c.bf16 %v738_v22, %v738_v22 }
 0x3e7   : > { %v2281_v42 = vmul.f32 1.442695, %v2280_v60 }
 0x3e8   : > { %v4085_v24 = vpop.xlane.xlu0 %2420  ;;  %v745_v25 = vsel %vm552_vm5, %v740_v23, 0 }
 0x3e9   : > { %3628 = vpow2.f32 %v2281_v42  ;;  %3364 = vmatpush3.bf16.xpose.msra.mxu0 %v745_v25 }
 0x3ea   : > { %3375 = vmatprep.subr.bf16.mxu0 %v3694_v7 }
 0x3eb   : > { %v4089_v13 = vpop.eup %3624 }
 0x3ec   : > { %v2562_v49 = vpop.xlane.xlu0 %2561  ;;  %v1859_v62 = vsel %vm600_vm6, %v4089_v13, 0.0 }
 0x3ed   : > { %v2563_v26 = vsub.f32 %v3996_v43, %v2562_v49  ;;  %1860 = vadd.xlane.f32.xlu1 %v1859_v62  ;;  %v2347_v62 = vld [vmem:[#allocation2 + $0x14] sm:$0xf] }
 0x3ef   : > { %v4094_v1 = vpop.eup %3626  ;;  %v2564_v54 = vmul.f32 1.442695, %v2563_v26 }
 0x3f0   : > { %v4096_v34 = vpop.xlane.xlu0 %2703  ;;  %3366 = vmatmul.mubr.msk.bf16.vlgmr.msra.gmra.mrb[8].mxu0 %vm552_vm5, %v739_v29  ;;  %v2000_v37 = vsel %vm600_vm6, %v4094_v1, 0.0 }
 0x3f1   : > { %3630 = vpow2.f32 %v2564_v54  ;;  %2001 = vadd.xlane.f32.xlu1 %v2000_v37  ;;  %3377 = vmatprep.mubr.msk.bf16.mxu0 %vm3698_vm4, %v3694_v7 }
 0x3f3   : > { %v4103_v39 = vpop.eup %3628 }
 0x3f4   : > { %v870_v43 = vpop.xlane.xlu0 %869  ;;  %v2283_v41 = vsel %vm600_vm6, %v4103_v39, 0.0 }
 0x3f5   : > { %2284 = vadd.xlane.f32.xlu1 %v2283_v41  ;;  %3632 = vrcp.f32 %v870_v43 }
 0x3f8   : > { %v1012_v44 = vpop.xlane.xlu0 %1011 }
 0x3f9   : > { %3634 = vrcp.f32 %v1012_v44 }
 0x3fb   : > { %v4107_v45 = vpop.eup %3630 }
 0x3fc   : > { %v2566_v48 = vsel %vm600_vm6, %v4107_v45, 0.0  ;;  %v1153_v27 = vpop.xlane.xlu0 %1152 }
 0x3fd   : > { %2567 = vadd.xlane.f32.xlu0 %v2566_v48  ;;  %3636 = vrcp.f32 %v1153_v27 }
 0x3ff   : > { %v3633_v51 = vpop.eup %3632 }
 0x400   : > { %v872_v52 = vmul.f32 %v3633_v51, %v4039_v9  ;;  %v1295_v59 = vpop.xlane.xlu0 %1294  ;;  %v1436_v9 = vpop.xlane.xlu1 %1435 }
 0x401   : > { %3638 = vrcp.f32 %v1295_v59 }
 0x402   : > { %v874_v56 = vpack.c.bf16 %v872_v52, %v872_v52  ;;  %3640 = vrcp.f32 %v1436_v9 }
 0x403   : > { %v3635_v55 = vpop.eup %3634 }
 0x404   : > { %v882_v63 = vsel %vm552_vm5, %v874_v56, 0  ;;  %v1014_v0 = vmul.f32 %v3635_v55, %v4045_v30  ;;  %v2205_v30 = vld [vmem:[#allocation2 + $0x10] sm:$0xf]  ;;  %v1578_v15 = vpop.xlane.xlu1 %1577  ;;  %v1726_v26 = vpop.permute.xlu0 %1725 }
 0x405   : > { %3376 = vmatpush3.bf16.xpose.msra.mxu0 %v882_v63  ;;  %v2288_v10 = vpack.c.bf16 %v2205_v30, %v2205_v30  ;;  %3642 = vrcp.f32 %v1578_v15 }
 0x406   : > { %2008 = vrot.lane.b32.xlu1 %v2005_v57, %s3700_s28  ;;  %3387 = vmatprep.subr.bf16.mxu0 %v3694_v7  ;;  %v1016_v21 = vpack.c.bf16 %v1014_v0, %v1014_v0 }
 0x407   : > { %v3637_v5 = vpop.eup %3636 }
 0x408   : > { %v1024_v47 = vsel %vm552_vm5, %v1016_v21, 0  ;;  %v1155_v6 = vmul.f32 %v3637_v5, %v4051_v35 }
 0x40a   : > { %v1157_v11 = vpack.c.bf16 %v1155_v6, %v1155_v6 }
 0x40b   : > { %v3639_v12 = vpop.eup %3638 }
 0x40c   : > { %3378 = vmatmul.mubr.msk.bf16.vlgmr.msra.gmra.mrb[12].mxu0 %vm552_vm5, %v3991_v32  ;;  %v2422_v32 = vsub.f32 %v3994_v36, %v4085_v24  ;;  %v1165_v35 = vsel %vm552_vm5, %v1157_v11, 0  ;;  %v1297_v18 = vmul.f32 %v3639_v12, %v4057_v40  ;;  %v2705_v36 = vsub.f32 %v4002_v50, %v4096_v34  ;;  %v3641_v22 = vpop.eup %3640 }
 0x40d   : > { %3388 = vmatpush3.bf16.xpose.msra.mxu0 %v1024_v47  ;;  %3389 = vmatprep.mubr.msk.bf16.mxu0 %vm3698_vm4, %v3694_v7  ;;  %v1438_v23 = vmul.f32 %v3641_v22, %v4037_v28 }
 0x40e   : > { %3399 = vmatprep.subr.bf16.mxu0 %v3694_v7  ;;  %v2423_v38 = vmul.f32 1.442695, %v2422_v32  ;;  %v1299_v20 = vpack.c.bf16 %v1297_v18, %v1297_v18  ;;  %v2706_v40 = vmul.f32 1.442695, %v2705_v36 }
 0x40f   : > { %v1440_v50 = vpack.c.bf16 %v1438_v23, %v1438_v23  ;;  %v3643_v42 = vpop.eup %3642 }
 0x410   : > { %3644 = vpow2.f32 %v2423_v38  ;;  %v1307_v60 = vsel %vm552_vm5, %v1299_v20, 0 }
 0x411   : > { %3646 = vpow2.f32 %v2706_v40  ;;  %v1448_v24 = vsel %vm552_vm5, %v1440_v50, 0 }
 0x413   : > { %2291 = vrot.lane.b32.xlu0 %v2288_v10, %s3701_s29 }
 0x414   : > { %3390 = vmatmul.mubr.msk.bf16.vlgmr.msra.gmra.mrb[16].mxu0 %vm552_vm5, %v4009_v58  ;;  %v2713_v58 = vpack.c.bf16 %v2630_v19, %v2630_v19 }
 0x415   : > { %3400 = vmatpush3.bf16.xpose.msra.mxu0 %v1165_v35  ;;  %3401 = vmatprep.mubr.msk.bf16.mxu0 %vm3698_vm4, %v3694_v7 }
 0x416   : > { %3411 = vmatprep.subr.bf16.mxu0 %v3694_v7 }
 0x417   : > { %2574 = vrot.lane.b32.xlu0 %v2571_v16, %s3702_s30 }
 0x41a   : > { %v4150_v25 = vpop.eup %3644 }
 0x41b   : > { %2716 = vrot.lane.b32.xlu0 %v2713_v58, %s3702_s30  ;;  %v2425_v28 = vsel %vm600_vm6, %v4150_v25, 0.0  ;;  %v4157_v49 = vpop.eup %3646 }
 0x41c   : > { %3402 = vmatmul.mubr.msk.bf16.vlgmr.msra.gmra.mrb[20].mxu0 %vm552_vm5, %v4011_v61  ;;  %v1580_v61 = vmul.f32 %v3643_v42, %v4047_v33  ;;  %v2708_v33 = vsel %vm600_vm6, %v4157_v49, 0.0 }
 0x41d   : > { %3412 = vmatpush3.bf16.xpose.msra.mxu0 %v1307_v60  ;;  %3413 = vmatprep.mubr.msk.bf16.mxu0 %vm3698_vm4, %v3694_v7 }
 0x41e   : > { %3423 = vmatprep.subr.bf16.mxu0 %v3694_v7  ;;  %v1582_v17 = vpack.c.bf16 %v1580_v61, %v1580_v61 }
 0x424   : > { %3414 = vmatmul.mubr.msk.bf16.vlgmr.msra.gmra.mrb[24].mxu0 %vm552_vm5, %v4006_v53  ;;  %v1590_v53 = vsel %vm552_vm5, %v1582_v17, 0 }
 0x425   : > { %3424 = vmatpush3.bf16.xpose.msra.mxu0 %v1448_v24  ;;  %3425 = vmatprep.mubr.msk.bf16.mxu0 %vm3698_vm4, %v3694_v7 }
 0x426   : > { %3435 = vmatprep.subr.bf16.mxu0 %v3694_v7 }
 0x42a   : > { %2426 = vadd.xlane.f32.xlu1 %v2425_v28 }
 0x42c   : > { %3426 = vmatmul.mubr.msk.bf16.vlgmr.msra.gmra.mrb[28].mxu0 %vm552_vm5, %v4017_v3  ;;  %v2430_v3 = vpack.c.bf16 %v2347_v62, %v2347_v62 }
 0x42d   : > { %3436 = vmatpush3.bf16.xpose.msra.mxu0 %v1590_v53  ;;  %3437 = vmatprep.mubr.msk.bf16.mxu0 %vm3698_vm4, %v3694_v7 }
 0x42e   : > { %2709 = vadd.xlane.f32.xlu1 %v2708_v33  ;;  %3447 = vmatprep.subr.bf16.mxu0 %v3694_v7 }
 0x434   : > { %3438 = vmatmul.mubr.msk.bf16.vlgmr.msra.gmra.mrb[32].mxu0 %vm552_vm5, %v4062_v46 }
 0x435   : > { %3449 = vmatprep.mubr.msk.bf16.mxu0 %vm3698_vm4, %v3694_v7 }
 0x43f   : > { %2433 = vrot.lane.b32.xlu1 %v2430_v3, %s3701_s29  ;;  %s435_s29 = scalar_lea.vmem %s4327_s13, %s3210_s14 }
 0x445   : > { %v1719_v29 = vpop.xlane.xlu0 %1718 }
 0x446   : > { %3648 = vrcp.f32 %v1719_v29 }
 0x449   : > { %v2144_v44 = vpop.xlane.xlu0 %2143 }
 0x450   : > { %v3649_v54 = vpop.eup %3648 }
 0x451   : > { %v1721_v34 = vmul.f32 %v3649_v54, %v4069_v4 }
 0x453   : > { %v1723_v37 = vpack.c.bf16 %v1721_v34, %v1721_v34 }
 0x455   : > { %v1731_v43 = vsel %vm552_vm5, %v1723_v37, 0 }
 0x456   : > { %3448 = vmatpush3.bf16.xpose.msra.mxu0 %v1731_v43 }
 0x457   : > { %3459 = vmatprep.subr.bf16.mxu0 %v3694_v7 }
 0x45d   : > { %3450 = vmatmul.mubr.msk.bf16.vlgmr.msra.gmra.mrb[36].mxu0 %vm552_vm5, %v1726_v26 }
 0x45e   : > { %3461 = vmatprep.mubr.msk.bf16.mxu0 %vm3698_vm4, %v3694_v7 }
 0x47a   : > { %v1861_v46 = vpop.xlane.xlu1 %1860 }
 0x47b   : > { %3650 = vrcp.f32 %v1861_v46 }
 0x47e   : > { %v2002_v41 = vpop.xlane.xlu1 %2001 }
 0x47f   : > { %3652 = vrcp.f32 %v2002_v41 }
 0x480   : > { %3654 = vrcp.f32 %v2144_v44 }
 0x482   : > { %v2285_v52 = vpop.xlane.xlu1 %2284 }
 0x483   : > { %3656 = vrcp.f32 %v2285_v52 }
 0x485   : > { %v3651_v48 = vpop.eup %3650 }
 0x486   : > { %v1863_v4 = vmul.f32 %v3651_v48, %v4089_v13  ;;  %v2009_v47 = vpop.permute.xlu1 %2008 }
 0x488   : > { %v1865_v27 = vpack.c.bf16 %v1863_v4, %v1863_v4 }
 0x489   : > { %v3653_v51 = vpop.eup %3652 }
 0x48a   : > { %v1873_v2 = vsel %vm552_vm5, %v1865_v27, 0  ;;  %v2004_v55 = vmul.f32 %v3653_v51, %v4094_v1  ;;  %v3655_v59 = vpop.eup %3654 }
 0x48b   : > { %3460 = vmatpush3.bf16.xpose.msra.mxu0 %v1873_v2  ;;  %v2146_v5 = vmul.f32 %v3655_v59, %v4073_v8 }
 0x48c   : > { %3471 = vmatprep.subr.bf16.mxu0 %v3694_v7  ;;  %v2006_v57 = vpack.c.bf16 %v2004_v55, %v2004_v55 }
 0x48d   : > { %v2148_v1 = vpack.c.bf16 %v2146_v5, %v2146_v5  ;;  %v3657_v9 = vpop.eup %3656 }
 0x48e   : > { %v654_v56 = vpop.f32.mrb[4].mxu0  ;;  %v2014_v13 = vsel %vm552_vm5, %v2006_v57, 0  ;;  %v2287_v30 = vmul.f32 %v3657_v9, %v4103_v39 }
 0x48f   : > { %660 = vst.msk [vmem:[#allocation3] sm:$0xf] %vm600_vm6, %v654_v56  ;;  %v3355_v63 = vpop.f32.mrb[5].mxu0  ;;  %v2156_v6 = vsel %vm552_vm5, %v2148_v1, 0 }
 0x490   : > { %v657_v0 = vpop.f32.mrb[6].mxu0  ;;  %v2289_v8 = vpack.c.bf16 %v2287_v30, %v2287_v30 }
 0x491   : > { %v3356_v21 = vpop.f32.mrb[7].mxu0 }
 0x492   : > { %3462 = vmatmul.mubr.msk.bf16.vlgmr.msra.gmra.mrb[40].mxu0 %vm552_vm5, %v4116_v31  ;;  %v2151_v31 = vpop.permute.xlu0 %2150  ;;  %v2297_v10 = vsel %vm552_vm5, %v2289_v8, 0 }
 0x493   : > { %3472 = vmatpush3.bf16.xpose.msra.mxu0 %v2014_v13  ;;  %3473 = vmatprep.mubr.msk.bf16.mxu0 %vm3698_vm4, %v3694_v7 }
 0x494   : > { %3483 = vmatprep.subr.bf16.mxu0 %v3694_v7 }
 0x496   : > { %v2568_v11 = vpop.xlane.xlu0 %2567 }
 0x49a   : > { %3474 = vmatmul.mubr.msk.bf16.vlgmr.msra.gmra.mrb[44].mxu0 %vm552_vm5, %v2009_v47  ;;  %v2292_v39 = vpop.permute.xlu0 %2291 }
 0x49b   : > { %3484 = vmatpush3.bf16.xpose.msra.mxu0 %v2156_v6  ;;  %3485 = vmatprep.mubr.msk.bf16.mxu0 %vm3698_vm4, %v3694_v7 }
 0x49c   : > { %3495 = vmatprep.subr.bf16.mxu0 %v3694_v7 }
 0x4a2   : > { %3486 = vmatmul.mubr.msk.bf16.vlgmr.msra.gmra.mrb[48].mxu0 %vm552_vm5, %v2151_v31 }
 0x4a3   : > { %3496 = vmatpush3.bf16.xpose.msra.mxu0 %v2297_v10  ;;  %3497 = vmatprep.mubr.msk.bf16.mxu0 %vm3698_vm4, %v3694_v7 }
 0x4a4   : > { %3507 = vmatprep.subr.bf16.mxu0 %v3694_v7 }
 0x4aa   : > { %3498 = vmatmul.mubr.msk.bf16.vlgmr.msra.gmra.mrb[52].mxu0 %vm552_vm5, %v2292_v39 }
 0x4ab   : > { %3509 = vmatprep.mubr.msk.bf16.mxu0 %vm3698_vm4, %v3694_v7 }
 0x4b7   : > { %v2427_v12 = vpop.xlane.xlu1 %2426 }
 0x4b8   : > { %3658 = vrcp.f32 %v2427_v12 }
 0x4b9   : > { %3660 = vrcp.f32 %v2568_v11 }
 0x4bb   : > { %v2710_v14 = vpop.xlane.xlu1 %2709 }
 0x4bc   : > { %3662 = vrcp.f32 %v2710_v14 }
 0x4bf   : > { %v2434_v60 = vpop.permute.xlu1 %2433 }
 0x4c2   : > { %v3659_v32 = vpop.eup %3658 }
 0x4c3   : > { %v781_v15 = vpop.f32.mrb[8].mxu0  ;;  %v2429_v35 = vmul.f32 %v3659_v32, %v4150_v25  ;;  %v3661_v16 = vpop.eup %3660 }
 0x4c4   : > { %787 = vst.msk [vmem:[#allocation3 + $0x4] sm:$0xf] %vm600_vm6, %v781_v15  ;;  %v3367_v18 = vpop.f32.mrb[9].mxu0  ;;  %v2570_v20 = vmul.f32 %v3661_v16, %v4107_v45  ;;  %v2575_v45 = vpop.permute.xlu0 %2574 }
 0x4c5   : > { %v784_v19 = vpop.f32.mrb[10].mxu0  ;;  %v2431_v38 = vpack.c.bf16 %v2429_v35, %v2429_v35 }
 0x4c6   : > { %v3368_v36 = vpop.f32.mrb[11].mxu0  ;;  %v2572_v22 = vpack.c.bf16 %v2570_v20, %v2570_v20  ;;  %v3663_v40 = vpop.eup %3662 }
 0x4c7   : > { %v2439_v58 = vsel %vm552_vm5, %v2431_v38, 0  ;;  %v2712_v50 = vmul.f32 %v3663_v40, %v4157_v49 }
 0x4c8   : > { %3508 = vmatpush3.bf16.xpose.msra.mxu0 %v2439_v58  ;;  %v2580_v23 = vsel %vm552_vm5, %v2572_v22, 0  ;;  %v2717_v61 = vpop.permute.xlu0 %2716 }
 0x4c9   : > { %3519 = vmatprep.subr.bf16.mxu0 %v3694_v7  ;;  %v2714_v42 = vpack.c.bf16 %v2712_v50, %v2712_v50  ;;  %v2772_v50 = vld [vmem:[%s4318_s4] sm:$0xff] }
 0x4cb   : > { %v2722_v24 = vsel %vm552_vm5, %v2714_v42, 0 }
 0x4cf   : > { %3510 = vmatmul.mubr.msk.bf16.vlgmr.msra.gmra.mrb[56].mxu0 %vm552_vm5, %v2434_v60 }
 0x4d0   : > { %3520 = vmatpush3.bf16.xpose.msra.mxu0 %v2580_v23  ;;  %3521 = vmatprep.mubr.msk.bf16.mxu0 %vm3698_vm4, %v3694_v7 }
 0x4d1   : > { %3531 = vmatprep.subr.bf16.mxu0 %v3694_v7 }
 0x4d7   : > { %3522 = vmatmul.mubr.msk.bf16.vlgmr.msra.gmra.mrb[60].mxu0 %vm552_vm5, %v2575_v45  ;;  %v2826_v45 = vld [vmem:[%s4320_s6] sm:$0xff] }
 0x4d8   : > { %3532 = vmatpush3.bf16.xpose.msra.mxu0 %v2722_v24  ;;  %3533 = vmatprep.mubr.msk.bf16.mxu0 %vm3698_vm4, %v3694_v7 }
 0x4df   : > { %3534 = vmatmul.mubr.msk.bf16.vlgmr.msra.gmra.mrb[64].mxu0 %vm552_vm5, %v2717_v61  ;;  %v918_v25 = vpop.f32.mrb[12].mxu0 }
 0x4e0   : > { %925 = vrot.lane.b32.xlu0 %v918_v25, %s3703_s18  ;;  %v3379_v28 = vpop.f32.mrb[13].mxu0 }
 0x4e1   : > { %v921_v17 = vpop.f32.mrb[14].mxu0  ;;  %v2871_v28 = vld [vmem:[%s4322_s8 + $0x8] sm:$0xff] }
 0x4e2   : > { %v3380_v49 = vpop.f32.mrb[15].mxu0  ;;  %v2825_v17 = vld [vmem:[%s4319_s5] sm:$0xff] }
 0x4e7   : > { %v1060_v53 = vpop.f32.mrb[16].mxu0 }
 0x4e8   : > { %1067 = vrot.lane.b32.xlu0 %v1060_v53, %s3703_s18  ;;  %v3391_v33 = vpop.f32.mrb[17].mxu0  ;;  %v2873_v53 = vld [vmem:[%s4322_s8 + $0x18] sm:$0xff] }
 0x4e9   : > { %v1063_v62 = vpop.f32.mrb[18].mxu0  ;;  %v2870_v33 = vld [vmem:[%s4322_s8] sm:$0xff] }
 0x4ea   : > { %v3392_v3 = vpop.f32.mrb[19].mxu0  ;;  %v2875_v62 = vld [vmem:[%s4322_s8 + $0x28] sm:$0xff] }
 0x4eb   : > { %v2872_v3 = vld [vmem:[%s4322_s8 + $0x10] sm:$0xff] }
 0x4ef   : > { %v1201_v26 = vpop.f32.mrb[20].mxu0 }
 0x4f0   : > { %1208 = vrot.lane.b32.xlu0 %v1201_v26, %s3704_s19  ;;  %v3403_v29 = vpop.f32.mrb[21].mxu0  ;;  %v2877_v26 = vld [vmem:[%s4322_s8 + $0x38] sm:$0xff] }
 0x4f1   : > { %v1204_v54 = vpop.f32.mrb[22].mxu0  ;;  %v2874_v29 = vld [vmem:[%s4322_s8 + $0x20] sm:$0xff] }
 0x4f2   : > { %v3404_v34 = vpop.f32.mrb[23].mxu0  ;;  %v3114_v54 = vld [vmem:[%s4325_s11] sm:$0xff] }
 0x4f3   : > { %v2876_v34 = vld [vmem:[%s4322_s8 + $0x30] sm:$0xff] }
 0x4f7   : > { %v1343_v37 = vpop.f32.mrb[24].mxu0 }
 0x4f8   : > { %1350 = vrot.lane.b32.xlu1 %v1343_v37, %s3704_s19  ;;  %v3415_v43 = vpop.f32.mrb[25].mxu0  ;;  %v3063_v37 = vld [vmem:[%s4324_s10] sm:$0xff] }
 0x4f9   : > { %v1346_v46 = vpop.f32.mrb[26].mxu0  ;;  %v3115_v43 = vld [vmem:[%s4326_s12] sm:$0xff] }
 0x4fa   : > { %v3416_v41 = vpop.f32.mrb[27].mxu0 }
 0x4ff   : > { %v1484_v44 = vpop.f32.mrb[28].mxu0 }
 0x500   : > { %1491 = vrot.lane.b32.xlu0 %v1484_v44, %s3705_s20  ;;  %v3427_v48 = vpop.f32.mrb[29].mxu0 }
 0x501   : > { %v1487_v4 = vpop.f32.mrb[30].mxu0 }
 0x502   : > { %v3428_v27 = vpop.f32.mrb[31].mxu0 }
 0x507   : > { %v1626_v51 = vpop.f32.mrb[32].mxu0 }
 0x508   : > { %1633 = vrot.lane.b32.xlu1 %v1626_v51, %s3705_s20  ;;  %v3439_v52 = vpop.f32.mrb[33].mxu0 }
 0x509   : > { %v1629_v2 = vpop.f32.mrb[34].mxu0 }
 0x50a   : > { %v3440_v55 = vpop.f32.mrb[35].mxu0 }
 0x530   : > { %v1767_v56 = vpop.f32.mrb[36].mxu0 }
 0x531   : > { %1774 = vrot.lane.b32.xlu0 %v1767_v56, %s3706_s21  ;;  %v3451_v57 = vpop.f32.mrb[37].mxu0  ;;  %v2769_v56 = vld [vmem:[%s4317_s3] sm:$0xf] }
 0x532   : > { %v1770_v59 = vpop.f32.mrb[38].mxu0  ;;  %v3596_v57 = vld [vmem:[%s4321_s7] sm:$0xff]  }
 0x533   : > { %v3452_v63 = vpop.f32.mrb[39].mxu0  ;;  %3545 = vmatprep.mubr.msk.bf16.mxu0 %vm468_vm0, %v3596_v57  ;;  %v3684_v59 = vld [vmem:[%s3804_s17] sm:$0xf] }
 0x534   : > { %v438_v63 = vunpack.c.l.bf16 %v3684_v59 }
 0x552   : > { %v926_v0 = vpop.permute.xlu0 %925 }
 0x553   : > { %929 = vst.msk [vmem:[#allocation3] sm:$0xf] %vm928_vm7, %v926_v0 }
 0x55a   : > { %v1068_v21 = vpop.permute.xlu0 %1067 }
 0x55b   : > { %1070 = vst.msk [vmem:[#allocation3 + $0x4] sm:$0xf] %vm928_vm7, %v1068_v21 }
 0x562   : > { %v1209_v13 = vpop.permute.xlu0 %1208 }
 0x563   : > { %1212 = vst.msk [vmem:[#allocation3] sm:$0xf] %vm1211_vm8, %v1209_v13 }
 0x565   : > { %v1909_v5 = vpop.f32.mrb[40].mxu0 }
 0x566   : > { %1916 = vrot.lane.b32.xlu1 %v1909_v5, %s3706_s21  ;;  %v3463_v1 = vpop.f32.mrb[41].mxu0 }
 0x567   : > { %v1912_v9 = vpop.f32.mrb[42].mxu0 }
 0x568   : > { %v3464_v47 = vpop.f32.mrb[43].mxu0 }
 0x56a   : > { %v1351_v6 = vpop.permute.xlu1 %1350 }
 0x56b   : > { %1353 = vst.msk [vmem:[#allocation3 + $0x4] sm:$0xf] %vm1211_vm8, %v1351_v6 }
 0x56d   : > { %v2050_v30 = vpop.f32.mrb[44].mxu0 }
 0x56e   : > { %2057 = vrot.lane.b32.xlu0 %v2050_v30, %s3707_s22  ;;  %v3475_v8 = vpop.f32.mrb[45].mxu0 }
 0x56f   : > { %v2053_v31 = vpop.f32.mrb[46].mxu0 }
 0x570   : > { %v3476_v10 = vpop.f32.mrb[47].mxu0 }
 0x572   : > { %v1492_v11 = vpop.permute.xlu0 %1491 }
 0x573   : > { %1495 = vst.msk [vmem:[#allocation3] sm:$0xf] %vm1494_vm9, %v1492_v11 }
 0x575   : > { %v2192_v39 = vpop.f32.mrb[48].mxu0 }
 0x576   : > { %2199 = vrot.lane.b32.xlu1 %v2192_v39, %s3707_s22  ;;  %v3487_v12 = vpop.f32.mrb[49].mxu0 }
 0x577   : > { %v2195_v14 = vpop.f32.mrb[50].mxu0 }
 0x578   : > { %v3488_v32 = vpop.f32.mrb[51].mxu0 }
 0x57a   : > { %v1634_v15 = vpop.permute.xlu1 %1633 }
 0x57b   : > { %1636 = vst.msk [vmem:[#allocation3 + $0x4] sm:$0xf] %vm1494_vm9, %v1634_v15 }
 0x57d   : > { %v2333_v35 = vpop.f32.mrb[52].mxu0 }
 0x57e   : > { %2340 = vrot.lane.b32.xlu0 %v2333_v35, %s3708_s23  ;;  %v3499_v16 = vpop.f32.mrb[53].mxu0 }
 0x57f   : > { %v2336_v18 = vpop.f32.mrb[54].mxu0 }
 0x580   : > { %v3500_v19 = vpop.f32.mrb[55].mxu0 }
 0x5a2   : > { %v2475_v38 = vpop.f32.mrb[56].mxu0 }
 0x5a3   : > { %v1775_v36 = vpop.permute.xlu0 %1774  ;;  %2482 = vrot.lane.b32.xlu1 %v2475_v38, %s3708_s23  ;;  %v3511_v58 = vpop.f32.mrb[57].mxu0 }
 0x5a4   : > { %1778 = vst.msk [vmem:[#allocation3] sm:$0xf] %vm1777_vm10, %v1775_v36  ;;  %v2478_v20 = vpop.f32.mrb[58].mxu0 }
 0x5a5   : > { %v3512_v22 = vpop.f32.mrb[59].mxu0 }
 0x5aa   : > { %v2616_v40 = vpop.f32.mrb[60].mxu0 }
 0x5ab   : > { %2623 = vrot.lane.b32.xlu0 %v2616_v40, %s3709_s24  ;;  %v3523_v60 = vpop.f32.mrb[61].mxu0 }
 0x5ac   : > { %v2619_v23 = vpop.f32.mrb[62].mxu0 }
 0x5ad   : > { %v3524_v42 = vpop.f32.mrb[63].mxu0 }
 0x5af   : > { %2775 = vperm.xlu0 %3592, %v2772_v50  }
 0x5b2   : > { %v2758_v24 = vpop.f32.mrb[64].mxu0 }
 0x5b3   : > { %2857 = vperm.xlu0 %3592, %v2826_v45   ;;  %2765 = vrot.lane.b32.xlu1 %v2758_v24, %s3709_s24  ;;  %v3535_v61 = vpop.f32.mrb[65].mxu0 }
 0x5b4   : > { %v2761_v25 = vpop.f32.mrb[66].mxu0  ;;  %v3597_v61 = vld [vmem:[%s4321_s7 + $0x8] sm:$0xff]  }
 0x5b5   : > { %v3536_v49 = vpop.f32.mrb[67].mxu0  ;;  %v3598_v25 = vld [vmem:[%s4321_s7 + $0x10] sm:$0xff]  }
 0x5b7   : > { %2885 = vperm.xlu0 %3592, %v2871_v28   ;;  %2851 = vperm.xlu1 %3593, %v2825_v17   ;;  %v3599_v28 = vld [vmem:[%s4321_s7 + $0x18] sm:$0xff]  }
 0x5bb   : > { %2895 = vperm.xlu0 %3592, %v2873_v53   ;;  %2880 = vperm.xlu1 %3593, %v2870_v33  }
 0x5bf   : > { %2905 = vperm.xlu0 %3592, %v2875_v62   ;;  %2890 = vperm.xlu1 %3593, %v2872_v3  }
 0x5c3   : > { %2915 = vperm.xlu0 %3592, %v2877_v26   ;;  %2900 = vperm.xlu1 %3593, %v2874_v29  }
 0x5c7   : > { %3139 = vperm.xlu0 %3592, %v3114_v54   ;;  %2910 = vperm.xlu1 %3593, %v2876_v34  }
 0x5cb   : > { %3066 = vperm.xlu1 %3593, %v3063_v37  }
 0x5cf   : > { %3145 = vperm.xlu1 %3593, %v3115_v43  }
 0x5d8   : > { %v1917_v46 = vpop.permute.xlu1 %1916 }
 0x5d9   : > { %1919 = vst.msk [vmem:[#allocation3 + $0x4] sm:$0xf] %vm1777_vm10, %v1917_v46 }
 0x5e0   : > { %v2058_v41 = vpop.permute.xlu0 %2057 }
 0x5e1   : > { %2061 = vst.msk [vmem:[#allocation3] sm:$0xf] %vm2060_vm11, %v2058_v41 }
 0x5e8   : > { %v2200_v44 = vpop.permute.xlu1 %2199 }
 0x5e9   : > { %2202 = vst.msk [vmem:[#allocation3 + $0x4] sm:$0xf] %vm2060_vm11, %v2200_v44 }
 0x5f0   : > { %v2341_v48 = vpop.permute.xlu0 %2340 }
 0x5f1   : > { %2344 = vst.msk [vmem:[#allocation3] sm:$0xf] %vm2343_vm12, %v2341_v48 }
 0x615   : > { %v2483_v4 = vpop.permute.xlu1 %2482 }
 0x616   : > { %2485 = vst.msk [vmem:[#allocation3 + $0x4] sm:$0xf] %vm2343_vm12, %v2483_v4 }
 0x61d   : > { %v2624_v27 = vpop.permute.xlu0 %2623 }
 0x61e   : > { %2627 = vst.msk [vmem:[#allocation3] sm:$0xf] %vm2626_vm13, %v2624_v27 }
 0x625   : > { %v2766_v51 = vpop.permute.xlu1 %2765 }
 0x626   : > { %2768 = vst.msk [vmem:[#allocation3 + $0x4] sm:$0xf] %vm2626_vm13, %v2766_v51 }
 0x62d   : > { %v2770_v52 = vld [vmem:[#allocation3] sm:$0xff] }
 0x62e   : > { %v2771_v2 = vpack.c.bf16 %v2770_v52, %v2770_v52  ;;  %v2776_v0 = vpop.permute.xlu0 %2775 }
 0x630   : > { %v2782_v55 = vsel %vm475_vm1, %v2771_v2, 0 }
 0x631   : > { %3538 = vmatpush3.bf16.msra.mxu1 %v2782_v55 }
 0x632   : > { %3553 = vmatprep.subr.bf16.mxu1 %v3694_v7  ;;  %v2858_v50 = vpop.permute.xlu0 %2857 }
 0x634   : > { %3540 = vmatmul.mubr.msk.bf16.vlgmr.msra.gmra.mrb[64].mxu1 %vm468_vm0, %v2769_v56 }
 0x635   : > { %3561 = vmatprep.mubr.msk.bf16.mxu1 %vm3698_vm4, %v3694_v7 }
 0x636   : > { %v2852_v60 = vpop.permute.xlu1 %2851  ;;  %v2886_v49 = vpop.permute.xlu0 %2885 }
 0x63a   : > { %v2881_v17 = vpop.permute.xlu1 %2880  ;;  %v2896_v33 = vpop.permute.xlu0 %2895 }
 0x63e   : > { %v2891_v53 = vpop.permute.xlu1 %2890  ;;  %v2906_v41 = vpop.permute.xlu0 %2905 }
 0x642   : > { %v2901_v29 = vpop.permute.xlu1 %2900  ;;  %v2916_v56 = vpop.permute.xlu0 %2915 }
 0x646   : > { %v2911_v51 = vpop.permute.xlu1 %2910 }
 0x707   : > { %v2818_v21 = vpop.f32.mrb[64].mxu1 }
 0x708   : > { %v2819_v13 = vadd.f32 %v2818_v21, %v2776_v0  ;;  %v3541_v5 = vpop.f32.mrb[65].mxu1 }
 0x709   : > { %v2821_v1 = vpop.f32.mrb[66].mxu1 }
 0x70a   : > { %v2824_v9 = vadd.f32 %v2819_v13, %v438_v63  ;;  %v3542_v47 = vpop.f32.mrb[67].mxu1 }
 0x70c   : > { %v2827_v6 = vsel %vm527_vm2, %v2824_v9, 0.0 }
 0x70d   : > { %v2828_v30 = vrot.slane %v2827_v6, 4 }
 0x70f   : > { %v2829_v8 = vadd.f32 %v2828_v30, %v2827_v6 }
 0x711   : > { %v2830_v31 = vrot.slane %v2829_v8, 2 }
 0x713   : > { %v2831_v10 = vadd.f32 %v2830_v31, %v2829_v8 }
 0x715   : > { %v2832_v11 = vrot.slane %v2831_v10, 1 }
 0x717   : > { %v2833_v39 = vadd.f32 %v2832_v11, %v2831_v10 }
 0x719   : > { %v2835_v12 = vmul.f32 0.125, %v2833_v39 }
 0x71b   : > { %v2836_v14 = vsub.f32 %v2824_v9, %v2835_v12 }
 0x71d   : > { %v2837_v32 = vmul.f32 %v2836_v14, %v2836_v14 }
 0x71f   : > { %v2838_v15 = vsel %vm527_vm2, %v2837_v32, 0.0 }
 0x720   : > { %v2839_v35 = vrot.slane %v2838_v15, 4 }
 0x722   : > { %v2840_v16 = vadd.f32 %v2839_v35, %v2838_v15 }
 0x724   : > { %v2841_v18 = vrot.slane %v2840_v16, 2 }
 0x726   : > { %v2842_v19 = vadd.f32 %v2841_v18, %v2840_v16 }
 0x728   : > { %v2843_v38 = vrot.slane %v2842_v19, 1 }
 0x72a   : > { %v2844_v36 = vadd.f32 %v2843_v38, %v2842_v19 }
 0x72c   : > { %v2845_v58 = vmul.f32 0.125, %v2844_v36 }
 0x72e   : > { %v2846_v20 = vadd.f32 1e-05, %v2845_v58 }
 0x730   : > { %3664 = vrsqrt.f32 %v2846_v20 }
 0x73a   : > { %v3665_v22 = vpop.eup %3664 }
 0x73b   : > { %v2848_v40 = vmul.f32 %v3665_v22, %v2836_v14 }
 0x73d   : > { %v2854_v23 = vmul.f32 %v2852_v60, %v2848_v40 }
 0x73f   : > { %v4279_v42 = vadd.f32 %v2858_v50, %v2854_v23 }
 0x741   : > { %v2869_v45 = vpack.c.bf16 %v4279_v42, %v4279_v42 }
 0x743   : > { %3566 = vmatprep.subr.msk.bf16.mxu0 %vm475_vm1, %v2869_v45  ;;  %v2951_v24 = vsel %vm475_vm1, %v2869_v45, 0 }
 0x744   : > { %3544 = vmatpush3.bf16.msra.mxu0 %v2951_v24 }
 0x747   : > { %3546 = vmatmul.mubr.msk.bf16.vlgmr.msra.gmra.mrb[68].mxu0 %vm468_vm0, %v3597_v61 }
 0x748   : > { %3549 = vmatprep.mubr.msk.bf16.mxu0 %vm468_vm0, %v3598_v25 }
 0x74f   : > { %3550 = vmatmul.mubr.msk.bf16.gmra.mrb[72].mxu0 %vm468_vm0, %v3599_v28 }
 0x81a   : > { %v3547_v62 = vpop.f32.mrb[68].mxu0 }
 0x81b   : > { %v2996_v3 = vadd.f32 %v3547_v62, %v2891_v53  ;;  %v2987_v26 = vpop.f32.mrb[69].mxu0 }
 0x81c   : > { %v2988_v54 = vadd.f32 %v2987_v26, %v2881_v17  ;;  %v3548_v34 = vpop.f32.mrb[70].mxu0  ;;  %v3058_v26 = vld [vmem:[%s4323_s9] sm:$0xf] }
 0x81d   : > { %v3028_v37 = vmul.f32 0.70710677, %v2996_v3  ;;  %v2999_v43 = vadd.f32 %v3548_v34, %v2896_v33  ;;  %v2990_v46 = vpop.f32.mrb[71].mxu0  ;;  %v3020_v11 = vmul.f32 0.5, %v2996_v3 }
 0x81e   : > { %v3026_v44 = vmul.f32 0.70710677, %v2988_v54  ;;  %v2991_v48 = vadd.f32 %v2990_v46, %v2886_v49  ;;  %v3018_v14 = vmul.f32 0.5, %v2988_v54 }
 0x81f   : > { %3666 = verf.f32 %v3028_v37  ;;  %v3029_v4 = vmul.f32 0.70710677, %v2999_v43  ;;  %v3021_v39 = vmul.f32 0.5, %v2999_v43 }
 0x820   : > { %3668 = verf.f32 %v3026_v44  ;;  %v3027_v27 = vmul.f32 0.70710677, %v2991_v48  ;;  %v3019_v32 = vmul.f32 0.5, %v2991_v48 }
 0x821   : > { %3670 = verf.f32 %v3029_v4 }
 0x822   : > { %3672 = verf.f32 %v3027_v27  ;;  %v3551_v52 = vpop.f32.mrb[72].mxu0 }
 0x823   : > { %v3012_v2 = vadd.f32 %v3551_v52, %v2911_v51  ;;  %v3003_v55 = vpop.f32.mrb[73].mxu0 }
 0x824   : > { %v3004_v57 = vadd.f32 %v3003_v55, %v2901_v29  ;;  %v3552_v59 = vpop.f32.mrb[74].mxu0  ;;  %v3067_v29 = vpop.permute.xlu1 %3066 }
 0x825   : > { %v3032_v63 = vmul.f32 0.70710677, %v3012_v2  ;;  %v3015_v0 = vadd.f32 %v3552_v59, %v2916_v56  ;;  %v3006_v21 = vpop.f32.mrb[75].mxu0  ;;  %v3024_v50 = vmul.f32 0.5, %v3012_v2 }
 0x826   : > { %v3030_v13 = vmul.f32 0.70710677, %v3004_v57  ;;  %v3007_v5 = vadd.f32 %v3006_v21, %v2906_v41  ;;  %v3022_v61 = vmul.f32 0.5, %v3004_v57 }
 0x827   : > { %3674 = verf.f32 %v3032_v63  ;;  %v3033_v1 = vmul.f32 0.70710677, %v3015_v0  ;;  %v3025_v45 = vmul.f32 0.5, %v3015_v0 }
 0x828   : > { %3676 = verf.f32 %v3030_v13  ;;  %v3031_v9 = vmul.f32 0.70710677, %v3007_v5  ;;  %v3023_v25 = vmul.f32 0.5, %v3007_v5 }
 0x829   : > { %v3667_v47 = vpop.eup %3666  ;;  %3678 = verf.f32 %v3033_v1 }
 0x82a   : > { %v3669_v6 = vpop.eup %3668  ;;  %v3044_v30 = vadd.f32 1.0, %v3667_v47  ;;  %3680 = verf.f32 %v3031_v9 }
 0x82b   : > { %v3671_v8 = vpop.eup %3670  ;;  %v3042_v31 = vadd.f32 1.0, %v3669_v6  ;;  %v3140_v6 = vpop.permute.xlu0 %3139 }
 0x82c   : > { %v3673_v10 = vpop.eup %3672  ;;  %v3045_v12 = vadd.f32 1.0, %v3671_v8  ;;  %v3052_v35 = vmul.f32 %v3044_v30, %v3020_v11  ;;  %v3146_v8 = vpop.permute.xlu1 %3145 }
 0x82d   : > { %v3043_v15 = vadd.f32 1.0, %v3673_v10  ;;  %v3050_v18 = vmul.f32 %v3042_v31, %v3018_v14 }
 0x82e   : > { %v3053_v16 = vmul.f32 %v3045_v12, %v3021_v39 }
 0x82f   : > { %v3051_v19 = vmul.f32 %v3043_v15, %v3019_v32 }
 0x830   : > { %v3060_v38 = vpack.c.bf16 %v3053_v16, %v3052_v35 }
 0x831   : > { %v3675_v36 = vpop.eup %3674  ;;  %v3059_v58 = vpack.c.bf16 %v3051_v19, %v3050_v18 }
 0x832   : > { %v3677_v20 = vpop.eup %3676  ;;  %v3048_v22 = vadd.f32 1.0, %v3675_v36 }
 0x833   : > { %v3679_v40 = vpop.eup %3678  ;;  %v3046_v60 = vadd.f32 1.0, %v3677_v20  ;;  %3554 = vmatpush3.bf16.msra.mxu1 %v3059_v58 }
 0x834   : > { %v3681_v23 = vpop.eup %3680  ;;  %v3049_v24 = vadd.f32 1.0, %v3679_v40  ;;  %3555 = vmatprep.subr.bf16.mxu1 %v3694_v7  ;;  %v3056_v17 = vmul.f32 %v3048_v22, %v3024_v50 }
 0x835   : > { %v3047_v28 = vadd.f32 1.0, %v3681_v23  ;;  %v3054_v53 = vmul.f32 %v3046_v60, %v3022_v61 }
 0x836   : > { %v3057_v49 = vmul.f32 %v3049_v24, %v3025_v45 }
 0x837   : > { %v3055_v33 = vmul.f32 %v3047_v28, %v3023_v25  ;;  %3556 = vmatpush3.bf16.msra.mxu1 %v3060_v38 }
 0x838   : > { %v3062_v62 = vpack.c.bf16 %v3057_v49, %v3056_v17  ;;  %3557 = vmatprep.subr.bf16.mxu1 %v3694_v7 }
 0x839   : > { %v3061_v3 = vpack.c.bf16 %v3055_v33, %v3054_v53 }
 0x83b   : > { %3558 = vmatpush3.bf16.msra.mxu1 %v3061_v3 }
 0x83c   : > { %3559 = vmatprep.subr.bf16.mxu1 %v3694_v7 }
 0x83f   : > { %3560 = vmatpush3.bf16.msra.mxu1 %v3062_v62 }
 0x842   : > { %3562 = vmatmul.mubr.msk.bf16.vlgmr.msra.gmra.mrb[68].mxu1 %vm3069_vm14, %v3058_v26 }
 0x915   : > { %v3107_v54 = vpop.f32.mrb[68].mxu1 }
 0x916   : > { %v3108_v34 = vadd.f32 %v3107_v54, %v3067_v29  ;;  %v3563_v37 = vpop.f32.mrb[69].mxu1 }
 0x917   : > { %v3110_v43 = vpop.f32.mrb[70].mxu1 }
 0x918   : > { %v3113_v46 = vadd.f32 %v3108_v34, %v4279_v42  ;;  %v3564_v41 = vpop.f32.mrb[71].mxu1 }
 0x91a   : > { %v3116_v44 = vsel %vm527_vm2, %v3113_v46, 0.0 }
 0x91b   : > { %v3117_v48 = vrot.slane %v3116_v44, 4 }
 0x91d   : > { %v3118_v4 = vadd.f32 %v3117_v48, %v3116_v44 }
 0x91f   : > { %v3119_v7 = vrot.slane %v3118_v4, 2 }
 0x921   : > { %v3120_v27 = vadd.f32 %v3119_v7, %v3118_v4 }
 0x923   : > { %v3121_v51 = vrot.slane %v3120_v27, 1 }
 0x925   : > { %v3122_v52 = vadd.f32 %v3121_v51, %v3120_v27 }
 0x927   : > { %v3123_v2 = vmul.f32 0.125, %v3122_v52 }
 0x929   : > { %v3124_v55 = vsub.f32 %v3113_v46, %v3123_v2 }
 0x92b   : > { %v3125_v56 = vmul.f32 %v3124_v55, %v3124_v55 }
 0x92d   : > { %v3126_v57 = vsel %vm527_vm2, %v3125_v56, 0.0 }
 0x92e   : > { %v3127_v59 = vrot.slane %v3126_v57, 4 }
 0x930   : > { %v3128_v63 = vadd.f32 %v3127_v59, %v3126_v57 }
 0x932   : > { %v3129_v0 = vrot.slane %v3128_v63, 2 }
 0x934   : > { %v3130_v21 = vadd.f32 %v3129_v0, %v3128_v63 }
 0x936   : > { %v3131_v42 = vrot.slane %v3130_v21, 1 }
 0x938   : > { %v3132_v13 = vadd.f32 %v3131_v42, %v3130_v21 }
 0x93a   : > { %v3133_v5 = vmul.f32 0.125, %v3132_v13 }
 0x93c   : > { %v3134_v1 = vadd.f32 1e-05, %v3133_v5 }
 0x93e   : > { %3682 = vrsqrt.f32 %v3134_v1 }
 0x948   : > { %v3683_v9 = vpop.eup %3682 }
 0x949   : > { %v3136_v47 = vmul.f32 %v3683_v9, %v3124_v55 }
 0x94b   : > { %v3142_v30 = vmul.f32 %v3140_v6, %v3136_v47 }
 0x94d   : > { %v3148_v31 = vadd.f32 %v3146_v8, %v3142_v30 }
 0x94f   : > { %v3149_v10 = vpack.c.bf16 %v3148_v31, %v3148_v31 }
 0x951   : > { %3151 = vst.msk [vmem:[%s435_s29] sm:$0xf] %vm3150_vm15, %v3149_v10 }
 0x952 PF: > { %s23_s25 = sadd.s32 1, %s3691_s25  }
 0x953   : > { %p20_p4 = scmp.ge.s32.totalorder %s23_s25, 4  }
 0x955   :  { %22 = sbr.rel (!%p20_p4) target bundleno = 1 (0x1), region = 102 }

</bundles_post_ra>
